<compile_context>
chip_gen: v7x
topology: tpu7x:2x2x1
jax: 0.10.0
libtpu: 0.0.40
codegen_flags: <defaults>
</compile_context>

<pallas_src>
import jax
import jax.numpy as jnp
from jax.experimental import pallas as pl
from jax.experimental.pallas import tpu as pltpu


def _round_up(x: int, m: int) -> int:
    return ((x + m - 1) // m) * m


def _make_mlp_kernel(num_layers: int, compute_dtype, pack: int):
    """num_layers bias-free Linear layers with ReLU between them (none after the
    last), fused in VMEM.

    pack == 1: natural (tm, dim_out) output block.
    pack  > 1: the tile's rows are processed in `pack` strided phases and the
               pre-placed last-layer weights emit one lane-dense
               (tm//pack, pack*dim_out) block directly from the MXU."""

    def kernel(x_ref, *refs):
        w_refs = refs[:num_layers]
        o_ref = refs[num_layers]

        # Hidden-layer weights are tiny; hoist their VMEM->vreg loads out of any
        # per-phase loop (JAX does not CSE these).
        w_hidden = [w_refs[li][...] for li in range(num_layers - 1)]

        def hidden_stack(h):
            for w in w_hidden:
                acc = jnp.dot(h, w, preferred_element_type=jnp.float32)
                # ReLU on the f32 accumulator (VPU); downcast only the operand
                # fed to the next MXU pass.
                h = jnp.maximum(acc, 0.0).astype(compute_dtype)
            return h

        if pack == 1:
            # In-kernel cast of x: free VPU work hidden under the input DMA.
            h = hidden_stack(x_ref[...].astype(compute_dtype))
            acc = jnp.dot(h, w_refs[-1][...], preferred_element_type=jnp.float32)
            o_ref[...] = acc.astype(o_ref.dtype)
        else:
            sub = x_ref.shape[0] // pack            # rows per phase
            acc = jnp.zeros(o_ref.shape, jnp.float32)
            for j in range(pack):
                # Rows j, j+pack, j+2*pack, ... of this tile (strided sublane load).
                xj = x_ref[pl.ds(j, sub, stride=pack), :].astype(compute_dtype)
                hj = hidden_stack(xj)
                # w_refs[-1][j] holds the last-layer weight pre-placed at lane
                # offset j*dim_out, so this dot lands phase j's outputs in the
                # right lane group of the dense block (MXU does the relayout).
                acc = acc + jnp.dot(hj, w_refs[-1][j],
                                    preferred_element_type=jnp.float32)
            o_ref[...] = acc.astype(o_ref.dtype)

    return kernel


def mlp_pallas(x, weights_t, *, tm: int = 2048, compute_dtype=jnp.bfloat16,
               out_dtype=None, pack_output: bool = True):
    """x: [N, dim_in]; weights_t: list of [in_dim, out_dim] arrays (already
    transposed from PyTorch's [out, in]).  Returns [N, dim_out] in `out_dtype`
    (defaults to x.dtype; pass bf16 if downstream tolerates it to halve the
    store-side HBM traffic)."""
    N, dim_in = x.shape
    num_layers = len(weights_t)
    dim_out = weights_t[-1].shape[1]
    out_dtype = jnp.dtype(out_dtype) if out_dtype is not None else jnp.dtype(x.dtype)

    # Weights are a few KB: a one-off wrapper cast is negligible (and halves the
    # one-time weight DMA).  x is NOT cast here -- the kernel casts it in VMEM.
    wc = [w.astype(compute_dtype) for w in weights_t]

    # Lane-dense output packing factor: pack rows so pack*dim_out == 128.
    pack = 128 // dim_out if (0 < dim_out < 128 and 128 % dim_out == 0) else 1
    if not (pack_output and pack > 1 and N % pack == 0):
        pack = 1

    # Row-tile size.  Bigger tiles amortize the ~0.35us/grid-step overhead:
    # sweep up to 4096-8192 on v5e/v6e; cap near 2048-4096 on v7x (64 MiB VMEM)
    # and keep several tiles so its two TensorCores stay load-balanced.
    unit = 8 * pack if pack > 1 else 8
    tm = min(tm, max(512, _round_up(pl.cdiv(N, 8), unit)))  # aim for >=8 tiles at large N
    tm = min(tm, _round_up(N, unit))                         # never exceed the row count
    tm = _round_up(max(tm, unit), unit)
    grid = (pl.cdiv(N, tm),)

    kernel_weights = list(wc)
    if pack > 1:
        last_in = wc[-1].shape[0]
        # Pre-place the last-layer weight at each phase's lane offset so the
        # final matmul writes a lane-dense block directly.
        w_last = jnp.zeros((pack, last_in, pack * dim_out), compute_dtype)
        for j in range(pack):
            w_last = w_last.at[j, :, j * dim_out:(j + 1) * dim_out].set(wc[-1])
        kernel_weights[-1] = w_last
        out_rows, out_cols = N // pack, pack * dim_out
        out_spec = pl.BlockSpec((tm // pack, out_cols), lambda i: (i, 0))
    else:
        out_rows, out_cols = N, dim_out
        out_spec = pl.BlockSpec((tm, dim_out), lambda i: (i, 0))

    in_specs = [pl.BlockSpec((tm, dim_in), lambda i: (i, 0))]
    for w in kernel_weights:
        # Whole (tiny) weight resident in VMEM; constant index_map => fetched
        # once by the pipeline, not re-DMA'd per row tile.
        in_specs.append(pl.BlockSpec(w.shape, lambda i, z=(0,) * w.ndim: z))

    # Advisory cost estimate (real traffic: no padded rows, actual dtypes).
    dims = [dim_in] + [w.shape[1] for w in weights_t]
    flops = 0
    for li in range(num_layers):
        fan_out = dims[li + 1] * (pack if li == num_layers - 1 else 1)
        flops += 2 * N * dims[li] * fan_out
    bytes_accessed = int(x.size * jnp.dtype(x.dtype).itemsize
                         + N * dim_out * out_dtype.itemsize
                         + sum(int(w.size) * jnp.dtype(w.dtype).itemsize
                               for w in kernel_weights))

    out = pl.pallas_call(
        _make_mlp_kernel(num_layers, compute_dtype, pack),
        out_shape=jax.ShapeDtypeStruct((out_rows, out_cols), out_dtype),
        grid_spec=pltpu.PrefetchScalarGridSpec(
            num_scalar_prefetch=0,
            grid=grid,
            in_specs=in_specs,
            out_specs=out_spec,
        ),
        compiler_params=pltpu.CompilerParams(
            dimension_semantics=("parallel",),     # row tiles shard across TCs
            vmem_limit_bytes=48 * 1024 * 1024,     # < 64 MiB v7x physical; ample on v5e/v6e
        ),
        cost_estimate=pl.CostEstimate(flops=flops, transcendentals=0,
                                      bytes_accessed=bytes_accessed),
    )(x, *kernel_weights)

    if pack > 1:
        out = out.reshape(N, dim_out)   # row-major reshape: free, no extra HBM pass
    return out


def mlp_reference(x, weights_t, compute_dtype=jnp.bfloat16):
    """Pure-JAX reference with the kernel's casting discipline: bf16-rounded
    operands, f32 accumulation, ReLU on f32, downcast between layers."""
    h = x.astype(compute_dtype)
    acc = None
    for li, w in enumerate(weights_t):
        acc = jnp.dot(h.astype(jnp.float32),
                      w.astype(compute_dtype).astype(jnp.float32))
        if li < len(weights_t) - 1:
            h = jnp.maximum(acc, 0.0).astype(compute_dtype)
    return acc.astype(x.dtype)


def init_mlp_params(key, dim_in, dim_out, dim_hidden, num_layers):
    """nn.Linear(bias=False) init: U(-1/sqrt(fan_in), 1/sqrt(fan_in)); returned
    already transposed to [in_dim, out_dim] for the kernel's x @ W chain."""
    weights_t = []
    for layer_idx in range(num_layers):
        in_dim = dim_in if layer_idx == 0 else dim_hidden
        out_dim = dim_out if layer_idx == num_layers - 1 else dim_hidden
        key, sub = jax.random.split(key)
        bound = 1.0 / (in_dim ** 0.5)
        # PyTorch layout is [out_dim, in_dim]; transpose for the kernel's x @ W.
        w_pt = jax.random.uniform(sub, (out_dim, in_dim), jnp.float32,
                                  minval=-bound, maxval=bound)
        weights_t.append(jnp.transpose(w_pt))
    return weights_t


if __name__ == "__main__":
    # ernerf sigma-net style dims; N deliberately NOT a multiple of tm so the
    # masked tail-tile path is exercised (N % 8 == 0 keeps lane-dense packing on).
    N, dim_in, dim_hidden, dim_out, num_layers = 1000, 32, 64, 16, 3

    key = jax.random.PRNGKey(0)
    kx, kw = jax.random.split(key)
    x = jax.random.normal(kx, (N, dim_in), jnp.float32)
    weights_t = init_mlp_params(kw, dim_in, dim_out, dim_hidden, num_layers)

    ref = mlp_reference(x, weights_t)

    out = None
    # Prefer the lane-dense packed-output path; fall back to the plain layout if
    # this jax/Mosaic build rejects strided ref slices (keeps the script runnable).
    for pack_output in (True, False):
        try:
            cand = jax.block_until_ready(
                mlp_pallas(x, weights_t, pack_output=pack_output))
        except Exception:
            if not pack_output:
                raise
            continue
        if cand.shape == (N, dim_out) and bool(
                jnp.allclose(cand, ref, atol=1e-2, rtol=1e-2)):
            out = cand
            break

    assert out is not None, "mismatch vs JAX reference"
    print("KERNEL_OK")
</pallas_src>

<mosaic_0001>
module attributes {stable_mosaic.version = 11 : i64} {
  func.func @kernel(%arg0: i32, %arg1: memref<512x32xf32, #tpu.memory_space<vmem>>, %arg2: memref<32x64xbf16, #tpu.memory_space<vmem>>, %arg3: memref<64x64xbf16, #tpu.memory_space<vmem>>, %arg4: memref<8x64x128xbf16, #tpu.memory_space<vmem>>, %arg5: memref<64x128xf32, #tpu.memory_space<vmem>>) attributes {dimension_semantics = [#tpu.dimension_semantics<parallel>], iteration_bounds = array<i64: 2>, scalar_prefetch = 0 : i64, scratch_operands = 0 : i64, tpu.core_type = #tpu.core_type<tc>, window_params = [{transform_indices = @transform_0, window_bounds = array<i64: 512, 32>}, {pipeline_mode = #tpu.pipeline_mode<synchronous>, transform_indices = @transform_1, window_bounds = array<i64: 32, 64>}, {pipeline_mode = #tpu.pipeline_mode<synchronous>, transform_indices = @transform_2, window_bounds = array<i64: 64, 64>}, {pipeline_mode = #tpu.pipeline_mode<synchronous>, transform_indices = @transform_3, window_bounds = array<i64: 8, 64, 128>}, {transform_indices = @transform_4, window_bounds = array<i64: 64, 128>}]} {
    %c0 = arith.constant 0 : index
    %c0_0 = arith.constant 0 : index
    %0 = vector.load %arg2[%c0, %c0_0] : memref<32x64xbf16, #tpu.memory_space<vmem>>, vector<32x64xbf16>
    %c0_1 = arith.constant 0 : index
    %c0_2 = arith.constant 0 : index
    %1 = vector.load %arg3[%c0_1, %c0_2] : memref<64x64xbf16, #tpu.memory_space<vmem>>, vector<64x64xbf16>
    %cst = arith.constant 0.000000e+00 : f32
    %2 = vector.broadcast %cst : f32 to vector<64x128xf32>
    %c0_3 = arith.constant 0 : index
    %c0_4 = arith.constant 0 : index
    %3 = tpu.strided_load %arg1[%c0_3, %c0_4] {strides = array<i32: 8, 1>} : memref<512x32xf32, #tpu.memory_space<vmem>>, vector<64x32xf32>
    %4 = arith.truncf %3 : vector<64x32xf32> to vector<64x32xbf16>
    %cst_5 = arith.constant dense<0.000000e+00> : vector<64x64xf32>
    %5 = tpu.matmul %4, %0, %cst_5 {dimension_numbers = #tpu.dot_dimension_numbers<[1], [0], [0], [1], [0, 0, 1, 1], [], []>} : vector<64x32xbf16>, vector<32x64xbf16>, vector<64x64xf32> -> vector<64x64xf32>
    %cst_6 = arith.constant 0.000000e+00 : f32
    %6 = vector.broadcast %cst_6 : f32 to vector<64x64xf32>
    %7 = arith.maximumf %5, %6 : vector<64x64xf32>
    %8 = arith.truncf %7 : vector<64x64xf32> to vector<64x64xbf16>
    %cst_7 = arith.constant dense<0.000000e+00> : vector<64x64xf32>
    %9 = tpu.matmul %8, %1, %cst_7 {dimension_numbers = #tpu.dot_dimension_numbers<[1], [0], [0], [1], [0, 0, 1, 1], [], []>} : vector<64x64xbf16>, vector<64x64xbf16>, vector<64x64xf32> -> vector<64x64xf32>
    %cst_8 = arith.constant 0.000000e+00 : f32
    %10 = vector.broadcast %cst_8 : f32 to vector<64x64xf32>
    %11 = arith.maximumf %9, %10 : vector<64x64xf32>
    %12 = arith.truncf %11 : vector<64x64xf32> to vector<64x64xbf16>
    %c0_9 = arith.constant 0 : index
    %c0_10 = arith.constant 0 : index
    %c0_11 = arith.constant 0 : index
    %13 = vector.load %arg4[%c0_9, %c0_10, %c0_11] : memref<8x64x128xbf16, #tpu.memory_space<vmem>>, vector<1x64x128xbf16>
    %14 = vector.shape_cast %13 : vector<1x64x128xbf16> to vector<64x128xbf16>
    %cst_12 = arith.constant dense<0.000000e+00> : vector<64x128xf32>
    %15 = tpu.matmul %12, %14, %cst_12 {dimension_numbers = #tpu.dot_dimension_numbers<[1], [0], [0], [1], [0, 0, 1, 1], [], []>} : vector<64x64xbf16>, vector<64x128xbf16>, vector<64x128xf32> -> vector<64x128xf32>
    %16 = arith.addf %2, %15 : vector<64x128xf32>
    %c1 = arith.constant 1 : index
    %c0_13 = arith.constant 0 : index
    %17 = tpu.strided_load %arg1[%c1, %c0_13] {strides = array<i32: 8, 1>} : memref<512x32xf32, #tpu.memory_space<vmem>>, vector<64x32xf32>
    %18 = arith.truncf %17 : vector<64x32xf32> to vector<64x32xbf16>
    %cst_14 = arith.constant dense<0.000000e+00> : vector<64x64xf32>
    %19 = tpu.matmul %18, %0, %cst_14 {dimension_numbers = #tpu.dot_dimension_numbers<[1], [0], [0], [1], [0, 0, 1, 1], [], []>} : vector<64x32xbf16>, vector<32x64xbf16>, vector<64x64xf32> -> vector<64x64xf32>
    %cst_15 = arith.constant 0.000000e+00 : f32
    %20 = vector.broadcast %cst_15 : f32 to vector<64x64xf32>
    %21 = arith.maximumf %19, %20 : vector<64x64xf32>
    %22 = arith.truncf %21 : vector<64x64xf32> to vector<64x64xbf16>
    %cst_16 = arith.constant dense<0.000000e+00> : vector<64x64xf32>
    %23 = tpu.matmul %22, %1, %cst_16 {dimension_numbers = #tpu.dot_dimension_numbers<[1], [0], [0], [1], [0, 0, 1, 1], [], []>} : vector<64x64xbf16>, vector<64x64xbf16>, vector<64x64xf32> -> vector<64x64xf32>
    %cst_17 = arith.constant 0.000000e+00 : f32
    %24 = vector.broadcast %cst_17 : f32 to vector<64x64xf32>
    %25 = arith.maximumf %23, %24 : vector<64x64xf32>
    %26 = arith.truncf %25 : vector<64x64xf32> to vector<64x64xbf16>
    %c1_18 = arith.constant 1 : index
    %c0_19 = arith.constant 0 : index
    %c0_20 = arith.constant 0 : index
    %27 = vector.load %arg4[%c1_18, %c0_19, %c0_20] : memref<8x64x128xbf16, #tpu.memory_space<vmem>>, vector<1x64x128xbf16>
    %28 = vector.shape_cast %27 : vector<1x64x128xbf16> to vector<64x128xbf16>
    %cst_21 = arith.constant dense<0.000000e+00> : vector<64x128xf32>
    %29 = tpu.matmul %26, %28, %cst_21 {dimension_numbers = #tpu.dot_dimension_numbers<[1], [0], [0], [1], [0, 0, 1, 1], [], []>} : vector<64x64xbf16>, vector<64x128xbf16>, vector<64x128xf32> -> vector<64x128xf32>
    %30 = arith.addf %16, %29 : vector<64x128xf32>
    %c2 = arith.constant 2 : index
    %c0_22 = arith.constant 0 : index
    %31 = tpu.strided_load %arg1[%c2, %c0_22] {strides = array<i32: 8, 1>} : memref<512x32xf32, #tpu.memory_space<vmem>>, vector<64x32xf32>
    %32 = arith.truncf %31 : vector<64x32xf32> to vector<64x32xbf16>
    %cst_23 = arith.constant dense<0.000000e+00> : vector<64x64xf32>
    %33 = tpu.matmul %32, %0, %cst_23 {dimension_numbers = #tpu.dot_dimension_numbers<[1], [0], [0], [1], [0, 0, 1, 1], [], []>} : vector<64x32xbf16>, vector<32x64xbf16>, vector<64x64xf32> -> vector<64x64xf32>
    %cst_24 = arith.constant 0.000000e+00 : f32
    %34 = vector.broadcast %cst_24 : f32 to vector<64x64xf32>
    %35 = arith.maximumf %33, %34 : vector<64x64xf32>
    %36 = arith.truncf %35 : vector<64x64xf32> to vector<64x64xbf16>
    %cst_25 = arith.constant dense<0.000000e+00> : vector<64x64xf32>
    %37 = tpu.matmul %36, %1, %cst_25 {dimension_numbers = #tpu.dot_dimension_numbers<[1], [0], [0], [1], [0, 0, 1, 1], [], []>} : vector<64x64xbf16>, vector<64x64xbf16>, vector<64x64xf32> -> vector<64x64xf32>
    %cst_26 = arith.constant 0.000000e+00 : f32
    %38 = vector.broadcast %cst_26 : f32 to vector<64x64xf32>
    %39 = arith.maximumf %37, %38 : vector<64x64xf32>
    %40 = arith.truncf %39 : vector<64x64xf32> to vector<64x64xbf16>
    %c2_27 = arith.constant 2 : index
    %c0_28 = arith.constant 0 : index
    %c0_29 = arith.constant 0 : index
    %41 = vector.load %arg4[%c2_27, %c0_28, %c0_29] : memref<8x64x128xbf16, #tpu.memory_space<vmem>>, vector<1x64x128xbf16>
    %42 = vector.shape_cast %41 : vector<1x64x128xbf16> to vector<64x128xbf16>
    %cst_30 = arith.constant dense<0.000000e+00> : vector<64x128xf32>
    %43 = tpu.matmul %40, %42, %cst_30 {dimension_numbers = #tpu.dot_dimension_numbers<[1], [0], [0], [1], [0, 0, 1, 1], [], []>} : vector<64x64xbf16>, vector<64x128xbf16>, vector<64x128xf32> -> vector<64x128xf32>
    %44 = arith.addf %30, %43 : vector<64x128xf32>
    %c3 = arith.constant 3 : index
    %c0_31 = arith.constant 0 : index
    %45 = tpu.strided_load %arg1[%c3, %c0_31] {strides = array<i32: 8, 1>} : memref<512x32xf32, #tpu.memory_space<vmem>>, vector<64x32xf32>
    %46 = arith.truncf %45 : vector<64x32xf32> to vector<64x32xbf16>
    %cst_32 = arith.constant dense<0.000000e+00> : vector<64x64xf32>
    %47 = tpu.matmul %46, %0, %cst_32 {dimension_numbers = #tpu.dot_dimension_numbers<[1], [0], [0], [1], [0, 0, 1, 1], [], []>} : vector<64x32xbf16>, vector<32x64xbf16>, vector<64x64xf32> -> vector<64x64xf32>
    %cst_33 = arith.constant 0.000000e+00 : f32
    %48 = vector.broadcast %cst_33 : f32 to vector<64x64xf32>
    %49 = arith.maximumf %47, %48 : vector<64x64xf32>
    %50 = arith.truncf %49 : vector<64x64xf32> to vector<64x64xbf16>
    %cst_34 = arith.constant dense<0.000000e+00> : vector<64x64xf32>
    %51 = tpu.matmul %50, %1, %cst_34 {dimension_numbers = #tpu.dot_dimension_numbers<[1], [0], [0], [1], [0, 0, 1, 1], [], []>} : vector<64x64xbf16>, vector<64x64xbf16>, vector<64x64xf32> -> vector<64x64xf32>
    %cst_35 = arith.constant 0.000000e+00 : f32
    %52 = vector.broadcast %cst_35 : f32 to vector<64x64xf32>
    %53 = arith.maximumf %51, %52 : vector<64x64xf32>
    %54 = arith.truncf %53 : vector<64x64xf32> to vector<64x64xbf16>
    %c3_36 = arith.constant 3 : index
    %c0_37 = arith.constant 0 : index
    %c0_38 = arith.constant 0 : index
    %55 = vector.load %arg4[%c3_36, %c0_37, %c0_38] : memref<8x64x128xbf16, #tpu.memory_space<vmem>>, vector<1x64x128xbf16>
    %56 = vector.shape_cast %55 : vector<1x64x128xbf16> to vector<64x128xbf16>
    %cst_39 = arith.constant dense<0.000000e+00> : vector<64x128xf32>
    %57 = tpu.matmul %54, %56, %cst_39 {dimension_numbers = #tpu.dot_dimension_numbers<[1], [0], [0], [1], [0, 0, 1, 1], [], []>} : vector<64x64xbf16>, vector<64x128xbf16>, vector<64x128xf32> -> vector<64x128xf32>
    %58 = arith.addf %44, %57 : vector<64x128xf32>
    %c4 = arith.constant 4 : index
    %c0_40 = arith.constant 0 : index
    %59 = tpu.strided_load %arg1[%c4, %c0_40] {strides = array<i32: 8, 1>} : memref<512x32xf32, #tpu.memory_space<vmem>>, vector<64x32xf32>
    %60 = arith.truncf %59 : vector<64x32xf32> to vector<64x32xbf16>
    %cst_41 = arith.constant dense<0.000000e+00> : vector<64x64xf32>
    %61 = tpu.matmul %60, %0, %cst_41 {dimension_numbers = #tpu.dot_dimension_numbers<[1], [0], [0], [1], [0, 0, 1, 1], [], []>} : vector<64x32xbf16>, vector<32x64xbf16>, vector<64x64xf32> -> vector<64x64xf32>
    %cst_42 = arith.constant 0.000000e+00 : f32
    %62 = vector.broadcast %cst_42 : f32 to vector<64x64xf32>
    %63 = arith.maximumf %61, %62 : vector<64x64xf32>
    %64 = arith.truncf %63 : vector<64x64xf32> to vector<64x64xbf16>
    %cst_43 = arith.constant dense<0.000000e+00> : vector<64x64xf32>
    %65 = tpu.matmul %64, %1, %cst_43 {dimension_numbers = #tpu.dot_dimension_numbers<[1], [0], [0], [1], [0, 0, 1, 1], [], []>} : vector<64x64xbf16>, vector<64x64xbf16>, vector<64x64xf32> -> vector<64x64xf32>
    %cst_44 = arith.constant 0.000000e+00 : f32
    %66 = vector.broadcast %cst_44 : f32 to vector<64x64xf32>
    %67 = arith.maximumf %65, %66 : vector<64x64xf32>
    %68 = arith.truncf %67 : vector<64x64xf32> to vector<64x64xbf16>
    %c4_45 = arith.constant 4 : index
    %c0_46 = arith.constant 0 : index
    %c0_47 = arith.constant 0 : index
    %69 = vector.load %arg4[%c4_45, %c0_46, %c0_47] : memref<8x64x128xbf16, #tpu.memory_space<vmem>>, vector<1x64x128xbf16>
    %70 = vector.shape_cast %69 : vector<1x64x128xbf16> to vector<64x128xbf16>
    %cst_48 = arith.constant dense<0.000000e+00> : vector<64x128xf32>
    %71 = tpu.matmul %68, %70, %cst_48 {dimension_numbers = #tpu.dot_dimension_numbers<[1], [0], [0], [1], [0, 0, 1, 1], [], []>} : vector<64x64xbf16>, vector<64x128xbf16>, vector<64x128xf32> -> vector<64x128xf32>
    %72 = arith.addf %58, %71 : vector<64x128xf32>
    %c5 = arith.constant 5 : index
    %c0_49 = arith.constant 0 : index
    %73 = tpu.strided_load %arg1[%c5, %c0_49] {strides = array<i32: 8, 1>} : memref<512x32xf32, #tpu.memory_space<vmem>>, vector<64x32xf32>
    %74 = arith.truncf %73 : vector<64x32xf32> to vector<64x32xbf16>
    %cst_50 = arith.constant dense<0.000000e+00> : vector<64x64xf32>
    %75 = tpu.matmul %74, %0, %cst_50 {dimension_numbers = #tpu.dot_dimension_numbers<[1], [0], [0], [1], [0, 0, 1, 1], [], []>} : vector<64x32xbf16>, vector<32x64xbf16>, vector<64x64xf32> -> vector<64x64xf32>
    %cst_51 = arith.constant 0.000000e+00 : f32
    %76 = vector.broadcast %cst_51 : f32 to vector<64x64xf32>
    %77 = arith.maximumf %75, %76 : vector<64x64xf32>
    %78 = arith.truncf %77 : vector<64x64xf32> to vector<64x64xbf16>
    %cst_52 = arith.constant dense<0.000000e+00> : vector<64x64xf32>
    %79 = tpu.matmul %78, %1, %cst_52 {dimension_numbers = #tpu.dot_dimension_numbers<[1], [0], [0], [1], [0, 0, 1, 1], [], []>} : vector<64x64xbf16>, vector<64x64xbf16>, vector<64x64xf32> -> vector<64x64xf32>
    %cst_53 = arith.constant 0.000000e+00 : f32
    %80 = vector.broadcast %cst_53 : f32 to vector<64x64xf32>
    %81 = arith.maximumf %79, %80 : vector<64x64xf32>
    %82 = arith.truncf %81 : vector<64x64xf32> to vector<64x64xbf16>
    %c5_54 = arith.constant 5 : index
    %c0_55 = arith.constant 0 : index
    %c0_56 = arith.constant 0 : index
    %83 = vector.load %arg4[%c5_54, %c0_55, %c0_56] : memref<8x64x128xbf16, #tpu.memory_space<vmem>>, vector<1x64x128xbf16>
    %84 = vector.shape_cast %83 : vector<1x64x128xbf16> to vector<64x128xbf16>
    %cst_57 = arith.constant dense<0.000000e+00> : vector<64x128xf32>
    %85 = tpu.matmul %82, %84, %cst_57 {dimension_numbers = #tpu.dot_dimension_numbers<[1], [0], [0], [1], [0, 0, 1, 1], [], []>} : vector<64x64xbf16>, vector<64x128xbf16>, vector<64x128xf32> -> vector<64x128xf32>
    %86 = arith.addf %72, %85 : vector<64x128xf32>
    %c6 = arith.constant 6 : index
    %c0_58 = arith.constant 0 : index
    %87 = tpu.strided_load %arg1[%c6, %c0_58] {strides = array<i32: 8, 1>} : memref<512x32xf32, #tpu.memory_space<vmem>>, vector<64x32xf32>
    %88 = arith.truncf %87 : vector<64x32xf32> to vector<64x32xbf16>
    %cst_59 = arith.constant dense<0.000000e+00> : vector<64x64xf32>
    %89 = tpu.matmul %88, %0, %cst_59 {dimension_numbers = #tpu.dot_dimension_numbers<[1], [0], [0], [1], [0, 0, 1, 1], [], []>} : vector<64x32xbf16>, vector<32x64xbf16>, vector<64x64xf32> -> vector<64x64xf32>
    %cst_60 = arith.constant 0.000000e+00 : f32
    %90 = vector.broadcast %cst_60 : f32 to vector<64x64xf32>
    %91 = arith.maximumf %89, %90 : vector<64x64xf32>
    %92 = arith.truncf %91 : vector<64x64xf32> to vector<64x64xbf16>
    %cst_61 = arith.constant dense<0.000000e+00> : vector<64x64xf32>
    %93 = tpu.matmul %92, %1, %cst_61 {dimension_numbers = #tpu.dot_dimension_numbers<[1], [0], [0], [1], [0, 0, 1, 1], [], []>} : vector<64x64xbf16>, vector<64x64xbf16>, vector<64x64xf32> -> vector<64x64xf32>
    %cst_62 = arith.constant 0.000000e+00 : f32
    %94 = vector.broadcast %cst_62 : f32 to vector<64x64xf32>
    %95 = arith.maximumf %93, %94 : vector<64x64xf32>
    %96 = arith.truncf %95 : vector<64x64xf32> to vector<64x64xbf16>
    %c6_63 = arith.constant 6 : index
    %c0_64 = arith.constant 0 : index
    %c0_65 = arith.constant 0 : index
    %97 = vector.load %arg4[%c6_63, %c0_64, %c0_65] : memref<8x64x128xbf16, #tpu.memory_space<vmem>>, vector<1x64x128xbf16>
    %98 = vector.shape_cast %97 : vector<1x64x128xbf16> to vector<64x128xbf16>
    %cst_66 = arith.constant dense<0.000000e+00> : vector<64x128xf32>
    %99 = tpu.matmul %96, %98, %cst_66 {dimension_numbers = #tpu.dot_dimension_numbers<[1], [0], [0], [1], [0, 0, 1, 1], [], []>} : vector<64x64xbf16>, vector<64x128xbf16>, vector<64x128xf32> -> vector<64x128xf32>
    %100 = arith.addf %86, %99 : vector<64x128xf32>
    %c7 = arith.constant 7 : index
    %c0_67 = arith.constant 0 : index
    %101 = tpu.strided_load %arg1[%c7, %c0_67] {strides = array<i32: 8, 1>} : memref<512x32xf32, #tpu.memory_space<vmem>>, vector<64x32xf32>
    %102 = arith.truncf %101 : vector<64x32xf32> to vector<64x32xbf16>
    %cst_68 = arith.constant dense<0.000000e+00> : vector<64x64xf32>
    %103 = tpu.matmul %102, %0, %cst_68 {dimension_numbers = #tpu.dot_dimension_numbers<[1], [0], [0], [1], [0, 0, 1, 1], [], []>} : vector<64x32xbf16>, vector<32x64xbf16>, vector<64x64xf32> -> vector<64x64xf32>
    %cst_69 = arith.constant 0.000000e+00 : f32
    %104 = vector.broadcast %cst_69 : f32 to vector<64x64xf32>
    %105 = arith.maximumf %103, %104 : vector<64x64xf32>
    %106 = arith.truncf %105 : vector<64x64xf32> to vector<64x64xbf16>
    %cst_70 = arith.constant dense<0.000000e+00> : vector<64x64xf32>
    %107 = tpu.matmul %106, %1, %cst_70 {dimension_numbers = #tpu.dot_dimension_numbers<[1], [0], [0], [1], [0, 0, 1, 1], [], []>} : vector<64x64xbf16>, vector<64x64xbf16>, vector<64x64xf32> -> vector<64x64xf32>
    %cst_71 = arith.constant 0.000000e+00 : f32
    %108 = vector.broadcast %cst_71 : f32 to vector<64x64xf32>
    %109 = arith.maximumf %107, %108 : vector<64x64xf32>
    %110 = arith.truncf %109 : vector<64x64xf32> to vector<64x64xbf16>
    %c7_72 = arith.constant 7 : index
    %c0_73 = arith.constant 0 : index
    %c0_74 = arith.constant 0 : index
    %111 = vector.load %arg4[%c7_72, %c0_73, %c0_74] : memref<8x64x128xbf16, #tpu.memory_space<vmem>>, vector<1x64x128xbf16>
    %112 = vector.shape_cast %111 : vector<1x64x128xbf16> to vector<64x128xbf16>
    %cst_75 = arith.constant dense<0.000000e+00> : vector<64x128xf32>
    %113 = tpu.matmul %110, %112, %cst_75 {dimension_numbers = #tpu.dot_dimension_numbers<[1], [0], [0], [1], [0, 0, 1, 1], [], []>} : vector<64x64xbf16>, vector<64x128xbf16>, vector<64x128xf32> -> vector<64x128xf32>
    %114 = arith.addf %100, %113 : vector<64x128xf32>
    %c0_76 = arith.constant 0 : index
    %c0_77 = arith.constant 0 : index
    %115 = vector.load %arg5[%c0_76, %c0_77] : memref<64x128xf32, #tpu.memory_space<vmem>>, vector<64x128xf32>
    tpu.vector_store %arg5[%c0_76, %c0_77], %114 {strides = array<i32>} : memref<64x128xf32, #tpu.memory_space<vmem>>, vector<64x128xf32>,
    return
  }
  func.func @transform_0(%arg0: i32) -> (i32, i32) {
    %c0_i32 = arith.constant 0 : i32
    %c0_i32_0 = arith.constant 0 : i32
    return %arg0, %c0_i32 : i32, i32
  }
  func.func @transform_1(%arg0: i32) -> (i32, i32) {
    %c0_i32 = arith.constant 0 : i32
    %c0_i32_0 = arith.constant 0 : i32
    %c0_i32_1 = arith.constant 0 : i32
    return %c0_i32, %c0_i32_0 : i32, i32
  }
  func.func @transform_2(%arg0: i32) -> (i32, i32) {
    %c0_i32 = arith.constant 0 : i32
    %c0_i32_0 = arith.constant 0 : i32
    %c0_i32_1 = arith.constant 0 : i32
    return %c0_i32, %c0_i32_0 : i32, i32
  }
  func.func @transform_3(%arg0: i32) -> (i32, i32, i32) {
    %c0_i32 = arith.constant 0 : i32
    %c0_i32_0 = arith.constant 0 : i32
    %c0_i32_1 = arith.constant 0 : i32
    %c0_i32_2 = arith.constant 0 : i32
    return %c0_i32, %c0_i32_0, %c0_i32_1 : i32, i32, i32
  }
  func.func @transform_4(%arg0: i32) -> (i32, i32) {
    %c0_i32 = arith.constant 0 : i32
    %c0_i32_0 = arith.constant 0 : i32
    return %arg0, %c0_i32 : i32, i32
  }
}

module attributes {stable_mosaic.version = 11 : i64} {
  func.func @kernel(%arg0: i32, %arg1: memref<512x32xf32, #tpu.memory_space<vmem>>, %arg2: memref<32x64xbf16, #tpu.memory_space<vmem>>, %arg3: memref<64x64xbf16, #tpu.memory_space<vmem>>, %arg4: memref<64x16xbf16, #tpu.memory_space<vmem>>, %arg5: memref<512x16xf32, #tpu.memory_space<vmem>>) attributes {dimension_semantics = [#tpu.dimension_semantics<parallel>], iteration_bounds = array<i64: 2>, scalar_prefetch = 0 : i64, scratch_operands = 0 : i64, tpu.core_type = #tpu.core_type<tc>, window_params = [{transform_indices = @transform_0, window_bounds = array<i64: 512, 32>}, {pipeline_mode = #tpu.pipeline_mode<synchronous>, transform_indices = @transform_1, window_bounds = array<i64: 32, 64>}, {pipeline_mode = #tpu.pipeline_mode<synchronous>, transform_indices = @transform_2, window_bounds = array<i64: 64, 64>}, {pipeline_mode = #tpu.pipeline_mode<synchronous>, transform_indices = @transform_3, window_bounds = array<i64: 64, 16>}, {transform_indices = @transform_4, window_bounds = array<i64: 512, 16>}]} {
    %c0 = arith.constant 0 : index
    %c0_0 = arith.constant 0 : index
    %0 = vector.load %arg2[%c0, %c0_0] : memref<32x64xbf16, #tpu.memory_space<vmem>>, vector<32x64xbf16>
    %c0_1 = arith.constant 0 : index
    %c0_2 = arith.constant 0 : index
    %1 = vector.load %arg3[%c0_1, %c0_2] : memref<64x64xbf16, #tpu.memory_space<vmem>>, vector<64x64xbf16>
    %c0_3 = arith.constant 0 : index
    %c0_4 = arith.constant 0 : index
    %2 = vector.load %arg1[%c0_3, %c0_4] : memref<512x32xf32, #tpu.memory_space<vmem>>, vector<512x32xf32>
    %3 = arith.truncf %2 : vector<512x32xf32> to vector<512x32xbf16>
    %cst = arith.constant dense<0.000000e+00> : vector<512x64xf32>
    %4 = tpu.matmul %3, %0, %cst {dimension_numbers = #tpu.dot_dimension_numbers<[1], [0], [0], [1], [0, 0, 1, 1], [], []>} : vector<512x32xbf16>, vector<32x64xbf16>, vector<512x64xf32> -> vector<512x64xf32>
    %cst_5 = arith.constant 0.000000e+00 : f32
    %5 = vector.broadcast %cst_5 : f32 to vector<512x64xf32>
    %6 = arith.maximumf %4, %5 : vector<512x64xf32>
    %7 = arith.truncf %6 : vector<512x64xf32> to vector<512x64xbf16>
    %cst_6 = arith.constant dense<0.000000e+00> : vector<512x64xf32>
    %8 = tpu.matmul %7, %1, %cst_6 {dimension_numbers = #tpu.dot_dimension_numbers<[1], [0], [0], [1], [0, 0, 1, 1], [], []>} : vector<512x64xbf16>, vector<64x64xbf16>, vector<512x64xf32> -> vector<512x64xf32>
    %cst_7 = arith.constant 0.000000e+00 : f32
    %9 = vector.broadcast %cst_7 : f32 to vector<512x64xf32>
    %10 = arith.maximumf %8, %9 : vector<512x64xf32>
    %11 = arith.truncf %10 : vector<512x64xf32> to vector<512x64xbf16>
    %c0_8 = arith.constant 0 : index
    %c0_9 = arith.constant 0 : index
    %12 = vector.load %arg4[%c0_8, %c0_9] : memref<64x16xbf16, #tpu.memory_space<vmem>>, vector<64x16xbf16>
    %cst_10 = arith.constant dense<0.000000e+00> : vector<512x16xf32>
    %13 = tpu.matmul %11, %12, %cst_10 {dimension_numbers = #tpu.dot_dimension_numbers<[1], [0], [0], [1], [0, 0, 1, 1], [], []>} : vector<512x64xbf16>, vector<64x16xbf16>, vector<512x16xf32> -> vector<512x16xf32>
    %c0_11 = arith.constant 0 : index
    %c0_12 = arith.constant 0 : index
    %14 = vector.load %arg5[%c0_11, %c0_12] : memref<512x16xf32, #tpu.memory_space<vmem>>, vector<512x16xf32>
    tpu.vector_store %arg5[%c0_11, %c0_12], %13 {strides = array<i32>} : memref<512x16xf32, #tpu.memory_space<vmem>>, vector<512x16xf32>,
    return
  }
  func.func @transform_0(%arg0: i32) -> (i32, i32) {
    %c0_i32 = arith.constant 0 : i32
    %c0_i32_0 = arith.constant 0 : i32
    return %arg0, %c0_i32 : i32, i32
  }
  func.func @transform_1(%arg0: i32) -> (i32, i32) {
    %c0_i32 = arith.constant 0 : i32
    %c0_i32_0 = arith.constant 0 : i32
    %c0_i32_1 = arith.constant 0 : i32
    return %c0_i32, %c0_i32_0 : i32, i32
  }
  func.func @transform_2(%arg0: i32) -> (i32, i32) {
    %c0_i32 = arith.constant 0 : i32
    %c0_i32_0 = arith.constant 0 : i32
    %c0_i32_1 = arith.constant 0 : i32
    return %c0_i32, %c0_i32_0 : i32, i32
  }
  func.func @transform_3(%arg0: i32) -> (i32, i32) {
    %c0_i32 = arith.constant 0 : i32
    %c0_i32_0 = arith.constant 0 : i32
    %c0_i32_1 = arith.constant 0 : i32
    return %c0_i32, %c0_i32_0 : i32, i32
  }
  func.func @transform_4(%arg0: i32) -> (i32, i32) {
    %c0_i32 = arith.constant 0 : i32
    %c0_i32_0 = arith.constant 0 : i32
    return %arg0, %c0_i32 : i32, i32
  }
}

</mosaic_0001>

<bundles_post_ra>
// kernel: tpu_custom_call.1
= control target key start
LH: loop header
LB: loop body
LE: loop exit
PB: predicated region body
PF: predicated region fallthrough
CT: control target
= control target key end

     0   :  { %9 = vsyncpa [#allocation3], 0  ;;  %s4668_s0 = inlined_call_operand.vmem [shape: f32[1000,32], index: 0, kind: input, shape index: {}]   ;;  %s4669_s1 = inlined_call_operand.vmem [shape: bf16[32,64], index: 1, kind: input, shape index: {}]   ;;  %s4670_s2 = inlined_call_operand.vmem [shape: bf16[64,64], index: 2, kind: input, shape index: {}]   ;;  %s4671_s3 = inlined_call_operand.vmem [shape: bf16[8,64,128], index: 3, kind: input, shape index: {}]   ;;  %s4672_s4 = inlined_call_operand.hbm [shape: f32[125,128], index: 4, kind: output, shape index: {}]  }
   0x1   :  { %11 = vsyncpa [#allocation3 + $0x1], 0  ;;  %s4082_s15 = smov 0   ;;  %s4084_s16 = smov 0  }
   0x2   :  { %s4086_s17 = smov 0   ;;  %s4088_s18 = smov 0  }
   0x3 LB: > { %s4103_s19 = sadd.s32 4294967295, %s4052_s18   ;;  %s2992_s20 = sadd.s32 4294967294, %s4052_s18   ;;  %s4052_s18 = sphi %s4088_s18, %s4678_s18   ;;  %s4048_s17 = sphi %s4086_s17, %s4677_s17   ;;  %s4044_s16 = sphi %s4084_s16, %s4676_s16   ;;  %s4040_s15 = sphi %s4082_s15, %s4675_s15  }
   0x4   : > { %s4107_s21 = sadd.s32 1, %s4052_s18   ;;  %s113_s22 = sadd.s32 1, %s4048_s17 }
   0x5   : > { %s110_s23 = ssub.s32 %s4052_s18, %s4107_s21  ;;  %p123_p0 = scmp.ne.s32.totalorder %s4048_s17, %s4044_s16 }
   0x6   : > { %p111_p1 = scmp.eq.s32.totalorder %s110_s23, 0  ;;  %p124_p2 = scmp.eq.s32.totalorder %s4103_s19, 1 }
   0x7   : > { %p129_p3 = scmp.ne.s32.totalorder %s4044_s16, %s4040_s15  ;;  %p130_p4 = scmp.eq.s32.totalorder %s2992_s20, 1 }
   0x8   : > { %s4118_s24 = scalar_select %p111_p1, %s4048_s17, %s113_s22  }
   0x9   : > { %p4120_p5 = por %p124_p2, %p123_p0  ;;  %p4124_p6 = por %p130_p4, %p129_p3 }
   0xa   : > { %p2995_p7 = scmp.ge.s32.totalorder %s4052_s18, 1  ;;  %p174_p8 = scmp.lt.s32.totalorder %s4052_s18, 3 }
   0xc   : > { %p175_p9 = pnand %p2995_p7, %p174_p8 }
   0xd   : > { %v4133_v0 = vld [vmem:[%s4669_s1] sm:$0xff] (!%p175_p9)   ;;  %s2997_s29 = sshll.u32 (!%p175_p9), %s4103_s19, 6  ;;  %v4139_v1 = vld [vmem:[%s4669_s1 + $0x8] sm:$0xff] (!%p175_p9)   ;;  %vm279_vm0 = vcmask (!%p175_p9), 261120   ;;  %v4211_v60 = vld [vmem:[%s4670_s2 + $0x10] sm:$0xff] (!%p175_p9)   ;;  %vm393_vm1 = vcmask (!%p175_p9), 523264  }
   0xe   : > { %178 = sbr.rel (%p175_p9) target bundleno = 1706 (0x6aa), region = 36  ;;  %p209_p10 = scmp.lt.s32.totalorder (!%p175_p9), %s2997_s29, 124  ;;  %3497 = vmatprep.subr.bf16.mxu1 (!%p175_p9), %v4133_v0  ;;  %3525 = vmatprep.subr.bf16.mxu0 (!%p175_p9), %v4133_v0  ;;  %v4148_v2 = vld [vmem:[%s4670_s2] sm:$0xff] (!%p175_p9)   ;;  %v4173_v18 = vld [vmem:[%s4670_s2 + $0x8] sm:$0xff] (!%p175_p9)   ;;  %v4218_v61 = vld [vmem:[%s4670_s2 + $0x18] sm:$0xff] (!%p175_p9)  }
   0xf   : > { %3498 = vmatpush3.bf16.msra.mxu1 (!%p175_p9), %v4133_v0  ;;  %3526 = vmatpush3.bf16.msra.mxu0 (!%p175_p9), %v4133_v0  ;;  %s201_s13 = sand.u32 (!%p175_p9), 1, %s4044_s16   ;;  %s3320_s22 = sshll.u32 (!%p175_p9), %s4103_s19, 10 }
  0x10   : > { %3499 = vmatprep.subr.bf16.mxu1 (!%p175_p9), %v4139_v1  ;;  %3527 = vmatprep.subr.bf16.mxu0 (!%p175_p9), %v4139_v1  ;;  %s4625_s28 = scalar_lea.hbm (!%p175_p9), %s4672_s4, %s3320_s22  ;;  %s4054_s30 = smov (!%p175_p9), [#allocation2]  }
  0x11   : > { %s3994_s5 = sshll.u32 (!%p175_p9), %s4054_s30, 4  ;;  %s3995_s5 = int_to_ptr.vmem [resolvable:$false] %s3994_s5 }
  0x12   : > { %s3996_s6 = scalar_lea.vmem (!%p175_p9), %s3995_s5, 2048 }
  0x13   : > { %3500 = vmatpush3.bf16.msra.mxu1 (!%p175_p9), %v4139_v1  ;;  %3528 = vmatpush3.bf16.msra.mxu0 (!%p175_p9), %v4139_v1 }
  0x14   : > { %3509 = vmatprep.subr.bf16.mxu1 (!%p175_p9), %v4148_v2 }
  0x15   : > { %s4680_s29 = smov (!%p209_p10, %s2997_s29), 124 }
  0x16   : > { %s2998_s8 = sshll.u32 %s4680_s29, 3  ;;  %s4627_s29 = scalar_lea.sflag [#allocation3], %s201_s13 }
  0x17   : > { %s4155_s11 = scalar_lea.vmem %s4668_s0, %s2998_s8 }
  0x18   : > { %v232_v3 = vld [vmem:[%s4155_s11] ss:$8 sm:$0xf]  ;;  %v3027_v31 = vld [vmem:[%s4155_s11 + $0x1] ss:$8 sm:$0xf] }
  0x19   : > { %v233_v4 = vld [vmem:[%s4155_s11] ss:$8 sm:$0xf0]  ;;  %v3028_v32 = vld [vmem:[%s4155_s11 + $0x1] ss:$8 sm:$0xf0] }
  0x1a   : > { %v234_v5 = vor.u32 %v233_v4, %v232_v3  ;;  %v2999_v6 = vld [vmem:[%s4155_s11 + $0x40] ss:$8 sm:$0xf]  ;;  %v494_v33 = vor.u32 %v3028_v32, %v3027_v31  ;;  %v3029_v34 = vld [vmem:[%s4155_s11 + $0x41] ss:$8 sm:$0xf] }
  0x1b   : > { %v3000_v7 = vld [vmem:[%s4155_s11 + $0x40] ss:$8 sm:$0xf0]  ;;  %v3030_v35 = vld [vmem:[%s4155_s11 + $0x41] ss:$8 sm:$0xf0] }
  0x1c   : > { %v238_v8 = vor.u32 %v3000_v7, %v2999_v6  ;;  %v3001_v9 = vld [vmem:[%s4155_s11 + $0x80] ss:$8 sm:$0xf]  ;;  %v498_v36 = vor.u32 %v3030_v35, %v3029_v34  ;;  %v3031_v37 = vld [vmem:[%s4155_s11 + $0x81] ss:$8 sm:$0xf] }
  0x1d   : > { %v3002_v10 = vld [vmem:[%s4155_s11 + $0x80] ss:$8 sm:$0xf0]  ;;  %v3032_v38 = vld [vmem:[%s4155_s11 + $0x81] ss:$8 sm:$0xf0] }
  0x1e   : > { %v242_v11 = vor.u32 %v3002_v10, %v3001_v9  ;;  %v3003_v12 = vld [vmem:[%s4155_s11 + $0xc0] ss:$8 sm:$0xf]  ;;  %v263_v14 = vpack.c.bf16 %v238_v8, %v234_v5  ;;  %v502_v39 = vor.u32 %v3032_v38, %v3031_v37  ;;  %v3033_v40 = vld [vmem:[%s4155_s11 + $0xc1] ss:$8 sm:$0xf]  ;;  %v523_v43 = vpack.c.bf16 %v498_v36, %v494_v33 }
  0x1f   : > { %v3004_v13 = vld [vmem:[%s4155_s11 + $0xc0] ss:$8 sm:$0xf0]  ;;  %v3034_v41 = vld [vmem:[%s4155_s11 + $0xc1] ss:$8 sm:$0xf0] }
  0x20   : > { %v246_v15 = vor.u32 %v3004_v13, %v3003_v12  ;;  %v3005_v16 = vld [vmem:[%s4155_s11 + $0x100] ss:$8 sm:$0xf]  ;;  %3501 = vmatprep.mubr.msk.bf16.mxu1 %vm279_vm0, %v263_v14  ;;  %v506_v44 = vor.u32 %v3034_v41, %v3033_v40  ;;  %v3035_v45 = vld [vmem:[%s4155_s11 + $0x101] ss:$8 sm:$0xf]  ;;  %3529 = vmatprep.mubr.msk.bf16.mxu0 %vm279_vm0, %v523_v43 }
  0x21   : > { %v3006_v17 = vld [vmem:[%s4155_s11 + $0x100] ss:$8 sm:$0xf0]  ;;  %v3036_v46 = vld [vmem:[%s4155_s11 + $0x101] ss:$8 sm:$0xf0] }
  0x22   : > { %v250_v19 = vor.u32 %v3006_v17, %v3005_v16  ;;  %v3007_v20 = vld [vmem:[%s4155_s11 + $0x140] ss:$8 sm:$0xf]  ;;  %v264_v22 = vpack.c.bf16 %v246_v15, %v242_v11  ;;  %v510_v47 = vor.u32 %v3036_v46, %v3035_v45  ;;  %v3037_v48 = vld [vmem:[%s4155_s11 + $0x141] ss:$8 sm:$0xf]  ;;  %v524_v50 = vpack.c.bf16 %v506_v44, %v502_v39 }
  0x23   : > { %v3008_v21 = vld [vmem:[%s4155_s11 + $0x140] ss:$8 sm:$0xf0]  ;;  %v3038_v49 = vld [vmem:[%s4155_s11 + $0x141] ss:$8 sm:$0xf0] }
  0x24   : > { %v254_v23 = vor.u32 %v3008_v21, %v3007_v20  ;;  %v3009_v24 = vld [vmem:[%s4155_s11 + $0x180] ss:$8 sm:$0xf]  ;;  %3502 = vmatmul.mubr.msk.bf16.vlgmr.msra.gmra.mrb[0].mxu1 %vm279_vm0, %v264_v22  ;;  %v514_v51 = vor.u32 %v3038_v49, %v3037_v48  ;;  %v3039_v52 = vld [vmem:[%s4155_s11 + $0x181] ss:$8 sm:$0xf]  ;;  %3530 = vmatmul.mubr.msk.bf16.vlgmr.msra.gmra.mrb[0].mxu0 %vm279_vm0, %v524_v50 }
  0x25   : > { %v3010_v25 = vld [vmem:[%s4155_s11 + $0x180] ss:$8 sm:$0xf0]  ;;  %3510 = vmatpush3.bf16.msra.mxu1 %v4148_v2  ;;  %v3040_v53 = vld [vmem:[%s4155_s11 + $0x181] ss:$8 sm:$0xf0] }
  0x26   : > { %v3011_v26 = vld [vmem:[%s4155_s11 + $0x1c0] ss:$8 sm:$0xf]  ;;  %v265_v28 = vpack.c.bf16 %v254_v23, %v250_v19  ;;  %v258_v29 = vor.u32 %v3010_v25, %v3009_v24  ;;  %3511 = vmatprep.subr.bf16.mxu1 %v4173_v18  ;;  %v3041_v54 = vld [vmem:[%s4155_s11 + $0x1c1] ss:$8 sm:$0xf]  ;;  %v525_v56 = vpack.c.bf16 %v514_v51, %v510_v47  ;;  %v518_v57 = vor.u32 %v3040_v53, %v3039_v52 }
  0x27   : > { %v3012_v27 = vld [vmem:[%s4155_s11 + $0x1c0] ss:$8 sm:$0xf0]  ;;  %v3042_v55 = vld [vmem:[%s4155_s11 + $0x1c1] ss:$8 sm:$0xf0] }
  0x28   : > { %v262_v30 = vor.u32 %v3012_v27, %v3011_v26  ;;  %3505 = vmatprep.mubr.msk.bf16.mxu1 %vm279_vm0, %v265_v28  ;;  %v522_v58 = vor.u32 %v3042_v55, %v3041_v54  ;;  %3533 = vmatprep.mubr.msk.bf16.mxu0 %vm279_vm0, %v525_v56  ;;  %v3076_v43 = vld [vmem:[%s4155_s11 + $0x2] ss:$8 sm:$0xf0] }
  0x29   : > { %3512 = vmatpush3.bf16.msra.mxu1 %v4173_v18  ;;  %v3077_v44 = vld [vmem:[%s4155_s11 + $0x42] ss:$8 sm:$0xf] }
  0x2a   : > { %v266_v42 = vpack.c.bf16 %v262_v30, %v258_v29  ;;  %v526_v59 = vpack.c.bf16 %v522_v58, %v518_v57  ;;  %3513 = vmatprep.subr.bf16.mxu1 %v4211_v60  ;;  %v3078_v45 = vld [vmem:[%s4155_s11 + $0x42] ss:$8 sm:$0xf0] }
  0x2b   : > { %v923_v47 = vor.u32 %v3078_v45, %v3077_v44  ;;  %v3079_v48 = vld [vmem:[%s4155_s11 + $0x82] ss:$8 sm:$0xf] }
  0x2c   : > { %3506 = vmatmul.mubr.msk.bf16.gmra.mrb[4].mxu1 %vm279_vm0, %v266_v42  ;;  %3534 = vmatmul.mubr.msk.bf16.gmra.mrb[4].mxu0 %vm279_vm0, %v526_v59  ;;  %v3075_v42 = vld [vmem:[%s4155_s11 + $0x2] ss:$8 sm:$0xf] }
  0x2d   : > { %3514 = vmatpush3.bf16.msra.mxu1 %v4211_v60  ;;  %v919_v46 = vor.u32 %v3076_v43, %v3075_v42  ;;  %v3080_v49 = vld [vmem:[%s4155_s11 + $0x82] ss:$8 sm:$0xf0] }
  0x2e   : > { %3515 = vmatprep.subr.bf16.mxu1 %v4218_v61  ;;  %v3081_v50 = vld [vmem:[%s4155_s11 + $0xc2] ss:$8 sm:$0xf]  ;;  %v927_v57 = vor.u32 %v3080_v49, %v3079_v48 }
  0x2f   : > { %v3082_v51 = vld [vmem:[%s4155_s11 + $0xc2] ss:$8 sm:$0xf0]  ;;  %v948_v52 = vpack.c.bf16 %v923_v47, %v919_v46 }
  0x30   : > { %v3083_v53 = vld [vmem:[%s4155_s11 + $0x102] ss:$8 sm:$0xf]  ;;  %v931_v58 = vor.u32 %v3082_v51, %v3081_v50 }
  0x31   : > { %3516 = vmatpush3.bf16.msra.mxu1 %v4218_v61  ;;  %v3084_v54 = vld [vmem:[%s4155_s11 + $0x102] ss:$8 sm:$0xf0] }
  0x32   : > { %3537 = vmatprep.subr.bf16.mxu1 %v4148_v2  ;;  %v3085_v55 = vld [vmem:[%s4155_s11 + $0x142] ss:$8 sm:$0xf]  ;;  %v935_v59 = vor.u32 %v3084_v54, %v3083_v53 }
  0x33   : > { %v3086_v56 = vld [vmem:[%s4155_s11 + $0x142] ss:$8 sm:$0xf0] }
  0x34   : > { %v3957_v47 = vld [vmem:[%s4671_s3 + $0x8] sm:$0xff]   ;;  %v3958_v54 = vld [vmem:[%s4671_s3 + $0x10] sm:$0xff]  }
  0xf7   : > { %v3503_v62 = vpop.f32.mrb[0].mxu1  ;;  %v3531_v12 = vpop.f32.mrb[0].mxu0 }
  0xf8   : > { %v326_v63 = vpop.f32.mrb[1].mxu1  ;;  %v359_v4 = vmax.f32 %v3503_v62, 0.0  ;;  %v606_v14 = vmax.f32 %v3531_v12, 0.0  ;;  %v573_v15 = vpop.f32.mrb[1].mxu0  ;;  %v939_v62 = vor.u32 %v3086_v56, %v3085_v55  ;;  %v3953_v12 = vld [vmem:[%s4671_s3 + $0x28] sm:$0xff]  }
  0xf9   : > { %v3504_v3 = vpop.f32.mrb[2].mxu1  ;;  %v357_v7 = vmax.f32 %v326_v63, 0.0  ;;  %v604_v17 = vmax.f32 %v573_v15, 0.0  ;;  %v3532_v19 = vpop.f32.mrb[2].mxu0  ;;  %v949_v63 = vpack.c.bf16 %v931_v58, %v927_v57  ;;  %v3956_v15 = vld [vmem:[%s4671_s3] sm:$0xff]  }
  0xfa   : > { %v360_v5 = vmax.f32 %v3504_v3, 0.0  ;;  %v329_v6 = vpop.f32.mrb[3].mxu1  ;;  %v607_v23 = vmax.f32 %v3532_v19, 0.0  ;;  %v576_v24 = vpop.f32.mrb[3].mxu0 }
  0xfb   : > { %v358_v8 = vmax.f32 %v329_v6, 0.0  ;;  %v605_v27 = vmax.f32 %v576_v24, 0.0  ;;  %v3087_v3 = vld [vmem:[%s4155_s11 + $0x182] ss:$8 sm:$0xf] }
  0xfc   : > { %v366_v9 = vpack.c.bf16 %v360_v5, %v359_v4  ;;  %v613_v29 = vpack.c.bf16 %v607_v23, %v606_v14  ;;  %v3088_v4 = vld [vmem:[%s4155_s11 + $0x182] ss:$8 sm:$0xf0]  ;;  %v950_v5 = vpack.c.bf16 %v939_v62, %v935_v59 }
  0xfd   : > { %v365_v10 = vpack.c.bf16 %v358_v8, %v357_v7  ;;  %v612_v31 = vpack.c.bf16 %v605_v27, %v604_v17  ;;  %v3089_v6 = vld [vmem:[%s4155_s11 + $0x1c2] ss:$8 sm:$0xf]  ;;  %v943_v8 = vor.u32 %v3088_v4, %v3087_v3 }
  0xfe   : > { %v3090_v7 = vld [vmem:[%s4155_s11 + $0x1c2] ss:$8 sm:$0xf0] }
  0xff   : > { %v3507_v11 = vpop.f32.mrb[4].mxu1  ;;  %3517 = vmatprep.mubr.msk.bf16.mxu1 %vm393_vm1, %v365_v10  ;;  %v3535_v32 = vpop.f32.mrb[4].mxu0  ;;  %v3955_v14 = vld [vmem:[%s4671_s3 + $0x38] sm:$0xff]  }
 0x100   : > { %v342_v13 = vpop.f32.mrb[5].mxu1  ;;  %3518 = vmatmul.mubr.msk.bf16.vlgmr.msra.gmra.mrb[8].mxu1 %vm393_vm1, %v366_v9  ;;  %v363_v20 = vmax.f32 %v3507_v11, 0.0  ;;  %v610_v33 = vmax.f32 %v3535_v32, 0.0  ;;  %v589_v34 = vpop.f32.mrb[5].mxu0  ;;  %v947_v9 = vor.u32 %v3090_v7, %v3089_v6  ;;  %v3952_v11 = vld [vmem:[%s4671_s3 + $0x20] sm:$0xff]   ;;  %v3959_v59 = vld [vmem:[%s4671_s3 + $0x18] sm:$0xff]  }
 0x101   : > { %3538 = vmatpush3.bf16.msra.mxu1 %v4148_v2  ;;  %v3508_v16 = vpop.f32.mrb[6].mxu1  ;;  %v361_v25 = vmax.f32 %v342_v13, 0.0  ;;  %v608_v35 = vmax.f32 %v589_v34, 0.0  ;;  %v3536_v36 = vpop.f32.mrb[6].mxu0  ;;  %3553 = vmatprep.subr.bf16.mxu0 %v3952_v11  ;;  %v3954_v13 = vld [vmem:[%s4671_s3 + $0x30] sm:$0xff]   ;;  %v3960_v7 = vld [vmem:[%s4671_s3 + $0x40] sm:$0xff]  }
 0x102   : > { %v364_v21 = vmax.f32 %v3508_v16, 0.0  ;;  %v345_v22 = vpop.f32.mrb[7].mxu1  ;;  %3539 = vmatprep.subr.bf16.mxu1 %v4173_v18  ;;  %v611_v37 = vmax.f32 %v3536_v36, 0.0  ;;  %v592_v38 = vpop.f32.mrb[7].mxu0  ;;  %v951_v10 = vpack.c.bf16 %v947_v9, %v943_v8  ;;  %3554 = vmatpush3.bf16.msra.mxu0 %v3952_v11 }
 0x103   : > { %v362_v26 = vmax.f32 %v345_v22, 0.0  ;;  %v609_v39 = vmax.f32 %v592_v38, 0.0  ;;  %3555 = vmatprep.subr.bf16.mxu0 %v3953_v12 }
 0x104   : > { %v368_v28 = vpack.c.bf16 %v364_v21, %v363_v20  ;;  %v615_v40 = vpack.c.bf16 %v611_v37, %v610_v33 }
 0x105   : > { %v367_v30 = vpack.c.bf16 %v362_v26, %v361_v25  ;;  %3540 = vmatpush3.bf16.msra.mxu1 %v4173_v18  ;;  %v614_v41 = vpack.c.bf16 %v609_v39, %v608_v35 }
 0x106   : > { %3541 = vmatprep.subr.bf16.mxu1 %v4211_v60  ;;  %3556 = vmatpush3.bf16.msra.mxu0 %v3953_v12  ;;  %v3115_v12 = vld [vmem:[%s4155_s11 + $0x3] ss:$8 sm:$0xf] }
 0x107   : > { %3521 = vmatprep.mubr.msk.bf16.mxu1 %vm393_vm1, %v367_v30  ;;  %3557 = vmatprep.subr.bf16.mxu0 %v3954_v13 }
 0x108   : > { %3522 = vmatmul.mubr.msk.bf16.gmra.mrb[12].mxu1 %vm393_vm1, %v368_v28 }
 0x109   : > { %3542 = vmatpush3.bf16.msra.mxu1 %v4211_v60  ;;  %3545 = vmatprep.mubr.msk.bf16.mxu1 %vm393_vm1, %v612_v31 }
 0x10a   : > { %3543 = vmatprep.subr.bf16.mxu1 %v4218_v61  ;;  %3558 = vmatpush3.bf16.msra.mxu0 %v3954_v13  ;;  %v3116_v13 = vld [vmem:[%s4155_s11 + $0x3] ss:$8 sm:$0xf0] }
 0x10b   : > { %3559 = vmatprep.subr.bf16.mxu0 %v3955_v14 }
 0x10d   : > { %3544 = vmatpush3.bf16.msra.mxu1 %v4218_v61 }
 0x10e   : > { %3585 = vmatprep.subr.bf16.mxu1 %v4133_v0  ;;  %3560 = vmatpush3.bf16.msra.mxu0 %v3955_v14  ;;  %v3117_v14 = vld [vmem:[%s4155_s11 + $0x43] ss:$8 sm:$0xf] }
 0x10f   : > { %3569 = vmatprep.subr.bf16.mxu0 %v3956_v15 }
 0x110   : > { %3546 = vmatmul.mubr.msk.bf16.vlgmr.msra.gmra.mrb[16].mxu1 %vm393_vm1, %v613_v29 }
 0x111   : > { %3586 = vmatpush3.bf16.msra.mxu1 %v4133_v0  ;;  %3549 = vmatprep.mubr.msk.bf16.mxu1 %vm393_vm1, %v614_v41 }
 0x112   : > { %3587 = vmatprep.subr.bf16.mxu1 %v4139_v1 }
 0x115   : > { %3588 = vmatpush3.bf16.msra.mxu1 %v4139_v1 }
 0x116   : > { %3597 = vmatprep.subr.bf16.mxu1 %v4148_v2 }
 0x118   : > { %3550 = vmatmul.mubr.msk.bf16.gmra.mrb[20].mxu1 %vm393_vm1, %v615_v40 }
 0x119   : > { %3589 = vmatprep.mubr.msk.bf16.mxu1 %vm279_vm0, %v948_v52 }
 0x120   : > { %3590 = vmatmul.mubr.msk.bf16.vlgmr.msra.gmra.mrb[24].mxu1 %vm279_vm0, %v949_v63 }
 0x121   : > { %3593 = vmatprep.mubr.msk.bf16.mxu1 %vm279_vm0, %v950_v5  ;;  %3598 = vmatpush3.bf16.msra.mxu1 %v4148_v2 }
 0x122   : > { %3599 = vmatprep.subr.bf16.mxu1 %v4173_v18 }
 0x125   : > { %3600 = vmatpush3.bf16.msra.mxu1 %v4173_v18 }
 0x126   : > { %3601 = vmatprep.subr.bf16.mxu1 %v4211_v60 }
 0x128   : > { %3594 = vmatmul.mubr.msk.bf16.gmra.mrb[28].mxu1 %vm279_vm0, %v951_v10 }
 0x129   : > { %3602 = vmatpush3.bf16.msra.mxu1 %v4211_v60 }
 0x12a   : > { %3603 = vmatprep.subr.bf16.mxu1 %v4218_v61 }
 0x12d   : > { %3604 = vmatpush3.bf16.msra.mxu1 %v4218_v61 }
 0x12e   : > { %3629 = vmatprep.subr.bf16.mxu1 %v4133_v0 }
 0x1d3   : > { %v3519_v16 = vpop.f32.mrb[8].mxu1 }
 0x1d4   : > { %v440_v17 = vpop.f32.mrb[9].mxu1  ;;  %v473_v20 = vmax.f32 %v3519_v16, 0.0 }
 0x1d5   : > { %v3520_v19 = vpop.f32.mrb[10].mxu1  ;;  %v471_v23 = vmax.f32 %v440_v17, 0.0  ;;  %v3961_v17 = vld [vmem:[%s4671_s3 + $0x48] sm:$0xff]  }
 0x1d6   : > { %v474_v21 = vmax.f32 %v3520_v19, 0.0  ;;  %v443_v22 = vpop.f32.mrb[11].mxu1 }
 0x1d7   : > { %v472_v24 = vmax.f32 %v443_v22, 0.0 }
 0x1d8   : > { %v4286_v25 = vpack.c.bf16 %v474_v21, %v473_v20  ;;  %v1251_v21 = vor.u32 %v3116_v13, %v3115_v12  ;;  %v3167_v13 = vld [vmem:[%s4155_s11 + $0x184] ss:$8 sm:$0xf] }
 0x1d9   : > { %v479_v26 = vpack.c.bf16 %v472_v24, %v471_v23 }
 0x1db   : > { %v3523_v27 = vpop.f32.mrb[12].mxu1 }
 0x1dc   : > { %v456_v28 = vpop.f32.mrb[13].mxu1  ;;  %v477_v30 = vmax.f32 %v3523_v27, 0.0 }
 0x1dd   : > { %v3524_v29 = vpop.f32.mrb[14].mxu1  ;;  %v475_v33 = vmax.f32 %v456_v28, 0.0  ;;  %v3119_v28 = vld [vmem:[%s4155_s11 + $0x83] ss:$8 sm:$0xf] }
 0x1de   : > { %v478_v31 = vmax.f32 %v3524_v29, 0.0  ;;  %v459_v32 = vpop.f32.mrb[15].mxu1  ;;  %v3120_v29 = vld [vmem:[%s4155_s11 + $0x83] ss:$8 sm:$0xf0] }
 0x1df   : > { %v476_v34 = vmax.f32 %v459_v32, 0.0  ;;  %v3122_v32 = vld [vmem:[%s4155_s11 + $0xc3] ss:$8 sm:$0xf0] }
 0x1e0   : > { %v4288_v35 = vpack.c.bf16 %v478_v31, %v477_v30  ;;  %v3121_v31 = vld [vmem:[%s4155_s11 + $0xc3] ss:$8 sm:$0xf] }
 0x1e1   : > { %v481_v36 = vpack.c.bf16 %v476_v34, %v475_v33 }
 0x1e3   : > { %v3547_v37 = vpop.f32.mrb[16].mxu1 }
 0x1e4   : > { %v662_v38 = vpop.f32.mrb[17].mxu1  ;;  %v695_v40 = vmax.f32 %v3547_v37, 0.0  ;;  %v3124_v37 = vld [vmem:[%s4155_s11 + $0x103] ss:$8 sm:$0xf0] }
 0x1e5   : > { %v3548_v39 = vpop.f32.mrb[18].mxu1  ;;  %v693_v43 = vmax.f32 %v662_v38, 0.0  ;;  %v3125_v38 = vld [vmem:[%s4155_s11 + $0x143] ss:$8 sm:$0xf] }
 0x1e6   : > { %v696_v41 = vmax.f32 %v3548_v39, 0.0  ;;  %v665_v42 = vpop.f32.mrb[19].mxu1  ;;  %v3126_v39 = vld [vmem:[%s4155_s11 + $0x143] ss:$8 sm:$0xf0] }
 0x1e7   : > { %v694_v44 = vmax.f32 %v665_v42, 0.0 }
 0x1e8   : > { %v702_v45 = vpack.c.bf16 %v696_v41, %v695_v40  ;;  %v1259_v40 = vor.u32 %v3120_v29, %v3119_v28  ;;  %v1263_v41 = vor.u32 %v3122_v32, %v3121_v31 }
 0x1e9   : > { %v701_v46 = vpack.c.bf16 %v694_v44, %v693_v43  ;;  %v1271_v43 = vor.u32 %v3126_v39, %v3125_v38  ;;  %v3127_v44 = vld [vmem:[%s4155_s11 + $0x183] ss:$8 sm:$0xf] }
 0x1eb   : > { %v3551_v48 = vpop.f32.mrb[20].mxu1  ;;  %3561 = vmatprep.mubr.msk.bf16.mxu0 %vm393_vm1, %v701_v46  ;;  %v1281_v46 = vpack.c.bf16 %v1263_v41, %v1259_v40 }
 0x1ec   : > { %v678_v49 = vpop.f32.mrb[21].mxu1  ;;  %3562 = vmatmul.mubr.msk.bf16.vlgmr.msra.gmra.mrb[8].mxu0 %vm393_vm1, %v702_v45  ;;  %v699_v51 = vmax.f32 %v3551_v48, 0.0  ;;  %v3128_v45 = vld [vmem:[%s4155_s11 + $0x183] ss:$8 sm:$0xf0] }
 0x1ed   : > { %v3552_v50 = vpop.f32.mrb[22].mxu1  ;;  %3570 = vmatpush3.bf16.msra.mxu0 %v3956_v15  ;;  %v697_v55 = vmax.f32 %v678_v49, 0.0  ;;  %v3118_v15 = vld [vmem:[%s4155_s11 + $0x43] ss:$8 sm:$0xf0] }
 0x1ee   : > { %v700_v52 = vmax.f32 %v3552_v50, 0.0  ;;  %v681_v53 = vpop.f32.mrb[23].mxu1  ;;  %3571 = vmatprep.subr.bf16.mxu0 %v3957_v47  ;;  %v1255_v22 = vor.u32 %v3118_v15, %v3117_v14  ;;  %v3130_v48 = vld [vmem:[%s4155_s11 + $0x1c3] ss:$8 sm:$0xf0] }
 0x1ef   : > { %v698_v56 = vmax.f32 %v681_v53, 0.0  ;;  %v3155_v50 = vld [vmem:[%s4155_s11 + $0x4] ss:$8 sm:$0xf]  ;;  %v1275_v53 = vor.u32 %v3128_v45, %v3127_v44 }
 0x1f0   : > { %v704_v57 = vpack.c.bf16 %v700_v52, %v699_v51  ;;  %v1280_v34 = vpack.c.bf16 %v1255_v22, %v1251_v21  ;;  %v3157_v51 = vld [vmem:[%s4155_s11 + $0x44] ss:$8 sm:$0xf] }
 0x1f1   : > { %v703_v58 = vpack.c.bf16 %v698_v56, %v697_v55  ;;  %3572 = vmatpush3.bf16.msra.mxu0 %v3957_v47  ;;  %v3129_v47 = vld [vmem:[%s4155_s11 + $0x1c3] ss:$8 sm:$0xf]  ;;  %v3158_v52 = vld [vmem:[%s4155_s11 + $0x44] ss:$8 sm:$0xf0] }
 0x1f2   : > { %3573 = vmatprep.subr.bf16.mxu0 %v3958_v54  ;;  %v1587_v56 = vor.u32 %v3158_v52, %v3157_v51  ;;  %v3169_v15 = vld [vmem:[%s4155_s11 + $0x1c4] ss:$8 sm:$0xf] }
 0x1f3   : > { %3565 = vmatprep.mubr.msk.bf16.mxu0 %vm393_vm1, %v703_v58  ;;  %v3591_v62 = vpop.f32.mrb[24].mxu1  ;;  %v3160_v58 = vld [vmem:[%s4155_s11 + $0x84] ss:$8 sm:$0xf0] }
 0x1f4   : > { %3566 = vmatmul.mubr.msk.bf16.gmra.mrb[12].mxu0 %vm393_vm1, %v704_v57  ;;  %v998_v63 = vpop.f32.mrb[25].mxu1  ;;  %v1031_v4 = vmax.f32 %v3591_v62, 0.0  ;;  %v3159_v57 = vld [vmem:[%s4155_s11 + $0x84] ss:$8 sm:$0xf] }
 0x1f5   : > { %3574 = vmatpush3.bf16.msra.mxu0 %v3958_v54  ;;  %3577 = vmatprep.mubr.msk.bf16.mxu0 %vm393_vm1, %v479_v26  ;;  %v3592_v3 = vpop.f32.mrb[26].mxu1  ;;  %v1029_v8 = vmax.f32 %v998_v63, 0.0  ;;  %v1279_v54 = vor.u32 %v3130_v48, %v3129_v47  ;;  %v3161_v62 = vld [vmem:[%s4155_s11 + $0xc4] ss:$8 sm:$0xf] }
 0x1f6   : > { %v1032_v5 = vmax.f32 %v3592_v3, 0.0  ;;  %v1001_v6 = vpop.f32.mrb[27].mxu1  ;;  %3575 = vmatprep.subr.bf16.mxu0 %v3959_v59  ;;  %v3162_v63 = vld [vmem:[%s4155_s11 + $0xc4] ss:$8 sm:$0xf0] }
 0x1f7   : > { %v1030_v9 = vmax.f32 %v1001_v6, 0.0  ;;  %v3165_v6 = vld [vmem:[%s4155_s11 + $0x144] ss:$8 sm:$0xf] }
 0x1f8   : > { %v1038_v10 = vpack.c.bf16 %v1032_v5, %v1031_v4  ;;  %v3163_v4 = vld [vmem:[%s4155_s11 + $0x104] ss:$8 sm:$0xf] }
 0x1f9   : > { %v1037_v11 = vpack.c.bf16 %v1030_v9, %v1029_v8  ;;  %3576 = vmatpush3.bf16.msra.mxu0 %v3959_v59  ;;  %v1283_v59 = vpack.c.bf16 %v1279_v54, %v1275_v53  ;;  %v3164_v5 = vld [vmem:[%s4155_s11 + $0x104] ss:$8 sm:$0xf0]  ;;  %v1591_v8 = vor.u32 %v3160_v58, %v3159_v57  ;;  %v1595_v9 = vor.u32 %v3162_v63, %v3161_v62 }
 0x1fa   : > { %3613 = vmatprep.subr.bf16.mxu0 %v3960_v7  ;;  %v3962_v21 = vld [vmem:[%s4671_s3 + $0x50] sm:$0xff]   ;;  %v3963_v22 = vld [vmem:[%s4671_s3 + $0x58] sm:$0xff]   ;;  %v3965_v51 = vld [vmem:[%s4671_s3 + $0x68] sm:$0xff]  }
 0x1fb   : > { %v3595_v16 = vpop.f32.mrb[28].mxu1  ;;  %3605 = vmatprep.mubr.msk.bf16.mxu1 %vm393_vm1, %v1037_v11  ;;  %v1613_v12 = vpack.c.bf16 %v1595_v9, %v1591_v8 }
 0x1fc   : > { %3578 = vmatmul.mubr.msk.bf16.vlgmr.msra.gmra.mrb[8].mxu0 %vm393_vm1, %v4286_v25  ;;  %v1014_v19 = vpop.f32.mrb[29].mxu1  ;;  %3606 = vmatmul.mubr.msk.bf16.vlgmr.msra.gmra.mrb[32].mxu1 %vm393_vm1, %v1038_v10  ;;  %v1035_v23 = vmax.f32 %v3595_v16, 0.0  ;;  %v1599_v10 = vor.u32 %v3164_v5, %v3163_v4  ;;  %v3170_v16 = vld [vmem:[%s4155_s11 + $0x1c4] ss:$8 sm:$0xf0] }
 0x1fd   : > { %3630 = vmatpush3.bf16.msra.mxu1 %v4133_v0  ;;  %3581 = vmatprep.mubr.msk.bf16.mxu0 %vm393_vm1, %v481_v36  ;;  %v3596_v20 = vpop.f32.mrb[30].mxu1  ;;  %v1033_v25 = vmax.f32 %v1014_v19, 0.0  ;;  %v3123_v36 = vld [vmem:[%s4155_s11 + $0x103] ss:$8 sm:$0xf]  ;;  %v1611_v19 = vor.u32 %v3170_v16, %v3169_v15 }
 0x1fe   : > { %v1036_v24 = vmax.f32 %v3596_v20, 0.0  ;;  %v1017_v26 = vpop.f32.mrb[31].mxu1  ;;  %3631 = vmatprep.subr.bf16.mxu1 %v4139_v1  ;;  %3614 = vmatpush3.bf16.msra.mxu0 %v3960_v7  ;;  %v1267_v42 = vor.u32 %v3124_v37, %v3123_v36  ;;  %v3166_v7 = vld [vmem:[%s4155_s11 + $0x144] ss:$8 sm:$0xf0] }
 0x1ff   : > { %v1034_v27 = vmax.f32 %v1017_v26, 0.0  ;;  %3615 = vmatprep.subr.bf16.mxu0 %v3961_v17  ;;  %v1603_v11 = vor.u32 %v3166_v7, %v3165_v6  ;;  %v3198_v15 = vld [vmem:[%s4155_s11 + $0x45] ss:$8 sm:$0xf0] }
 0x200   : > { %v1040_v30 = vpack.c.bf16 %v1036_v24, %v1035_v23  ;;  %v1282_v49 = vpack.c.bf16 %v1271_v43, %v1267_v42 }
 0x201   : > { %v1039_v33 = vpack.c.bf16 %v1034_v27, %v1033_v25  ;;  %3632 = vmatpush3.bf16.msra.mxu1 %v4139_v1  ;;  %v1614_v14 = vpack.c.bf16 %v1603_v11, %v1599_v10 }
 0x202   : > { %3673 = vmatprep.subr.bf16.mxu1 %v4133_v0  ;;  %3616 = vmatpush3.bf16.msra.mxu0 %v3961_v17 }
 0x203   : > { %3609 = vmatprep.mubr.msk.bf16.mxu1 %vm393_vm1, %v1039_v33  ;;  %3617 = vmatprep.subr.bf16.mxu0 %v3962_v21 }
 0x204   : > { %3582 = vmatmul.mubr.msk.bf16.gmra.mrb[12].mxu0 %vm393_vm1, %v4288_v35  ;;  %3610 = vmatmul.mubr.msk.bf16.gmra.mrb[36].mxu1 %vm393_vm1, %v1040_v30  ;;  %v3156_v35 = vld [vmem:[%s4155_s11 + $0x4] ss:$8 sm:$0xf0] }
 0x205   : > { %3633 = vmatprep.mubr.msk.bf16.mxu1 %vm279_vm0, %v1280_v34  ;;  %v1583_v55 = vor.u32 %v3156_v35, %v3155_v50 }
 0x206   : > { %3618 = vmatpush3.bf16.msra.mxu0 %v3962_v21 }
 0x207   : > { %v1612_v3 = vpack.c.bf16 %v1587_v56, %v1583_v55  ;;  %3619 = vmatprep.subr.bf16.mxu0 %v3963_v22 }
 0x20a   : > { %3620 = vmatpush3.bf16.msra.mxu0 %v3963_v22 }
 0x20b   : > { %3641 = vmatprep.subr.bf16.mxu0 %v4148_v2 }
 0x20c   : > { %3634 = vmatmul.mubr.msk.bf16.vlgmr.msra.gmra.mrb[40].mxu1 %vm279_vm0, %v1281_v46 }
 0x20d   : > { %3674 = vmatpush3.bf16.msra.mxu1 %v4133_v0  ;;  %3637 = vmatprep.mubr.msk.bf16.mxu1 %vm279_vm0, %v1282_v49 }
 0x20e   : > { %3675 = vmatprep.subr.bf16.mxu1 %v4139_v1 }
 0x211   : > { %3676 = vmatpush3.bf16.msra.mxu1 %v4139_v1  ;;  %v3168_v1 = vld [vmem:[%s4155_s11 + $0x184] ss:$8 sm:$0xf0] }
 0x212   : > { %3685 = vmatprep.subr.bf16.mxu1 %v4148_v2  ;;  %v1607_v17 = vor.u32 %v3168_v1, %v3167_v13  ;;  %v3195_v13 = vld [vmem:[%s4155_s11 + $0x5] ss:$8 sm:$0xf] }
 0x213   : > { %v3196_v1 = vld [vmem:[%s4155_s11 + $0x5] ss:$8 sm:$0xf0] }
 0x214   : > { %3638 = vmatmul.mubr.msk.bf16.gmra.mrb[44].mxu1 %vm279_vm0, %v1283_v59  ;;  %v1615_v20 = vpack.c.bf16 %v1611_v19, %v1607_v17  ;;  %v4412_v19 = vld [vmem:[%s4669_s1] sm:$0xff]   ;;  %v1915_v21 = vor.u32 %v3196_v1, %v3195_v13 }
 0x215   : > { %3677 = vmatprep.mubr.msk.bf16.mxu1 %vm279_vm0, %v1612_v3  ;;  %v3248_v13 = vld [vmem:[%s4155_s11 + $0x186] ss:$8 sm:$0xf0] }
 0x21c   : > { %3678 = vmatmul.mubr.msk.bf16.vlgmr.msra.gmra.mrb[48].mxu1 %vm279_vm0, %v1613_v12 }
 0x21d   : > { %3681 = vmatprep.mubr.msk.bf16.mxu1 %vm279_vm0, %v1614_v14  ;;  %3686 = vmatpush3.bf16.msra.mxu1 %v4148_v2  ;;  %v3197_v14 = vld [vmem:[%s4155_s11 + $0x45] ss:$8 sm:$0xf] }
 0x21e   : > { %3687 = vmatprep.subr.bf16.mxu1 %v4173_v18  ;;  %v1919_v22 = vor.u32 %v3198_v15, %v3197_v14  ;;  %v3249_v14 = vld [vmem:[%s4155_s11 + $0x1c6] ss:$8 sm:$0xf] }
 0x21f   : > { %v3250_v15 = vld [vmem:[%s4155_s11 + $0x1c6] ss:$8 sm:$0xf0] }
 0x221   : > { %3688 = vmatpush3.bf16.msra.mxu1 %v4173_v18 }
 0x222   : > { %3689 = vmatprep.subr.bf16.mxu1 %v4211_v60 }
 0x224   : > { %3682 = vmatmul.mubr.msk.bf16.gmra.mrb[52].mxu1 %vm279_vm0, %v1615_v20 }
 0x225   : > { %3690 = vmatpush3.bf16.msra.mxu1 %v4211_v60 }
 0x226   : > { %3691 = vmatprep.subr.bf16.mxu1 %v4218_v61 }
 0x229   : > { %3692 = vmatpush3.bf16.msra.mxu1 %v4218_v61 }
 0x22a   : > { %3717 = vmatprep.subr.bf16.mxu1 %v4133_v0 }
 0x2cf   : > { %v3607_v23 = vpop.f32.mrb[32].mxu1 }
 0x2d0   : > { %v1087_v24 = vpop.f32.mrb[33].mxu1  ;;  %v1120_v25 = vmax.f32 %v3607_v23, 0.0 }
 0x2d1   : > { %v3608_v26 = vpop.f32.mrb[34].mxu1  ;;  %v1118_v28 = vmax.f32 %v1087_v24, 0.0 }
 0x2d2   : > { %v1121_v27 = vmax.f32 %v3608_v26, 0.0  ;;  %v1090_v0 = vpop.f32.mrb[35].mxu1 }
 0x2d3   : > { %v1119_v29 = vmax.f32 %v1090_v0, 0.0 }
 0x2d4   : > { %v1127_v30 = vpack.c.bf16 %v1121_v27, %v1120_v25  ;;  %v4418_v25 = vld [vmem:[%s4669_s1 + $0x8] sm:$0xff]  }
 0x2d5   : > { %v1126_v31 = vpack.c.bf16 %v1119_v29, %v1118_v28  ;;  %v3199_v28 = vld [vmem:[%s4155_s11 + $0x85] ss:$8 sm:$0xf] }
 0x2d6   : > { %v3200_v29 = vld [vmem:[%s4155_s11 + $0x85] ss:$8 sm:$0xf0] }
 0x2d7   : > { %v3611_v32 = vpop.f32.mrb[36].mxu1  ;;  %3621 = vmatprep.mubr.msk.bf16.mxu0 %vm393_vm1, %v1126_v31  ;;  %v3201_v31 = vld [vmem:[%s4155_s11 + $0xc5] ss:$8 sm:$0xf] }
 0x2d8   : > { %v1103_v33 = vpop.f32.mrb[37].mxu1  ;;  %3622 = vmatmul.mubr.msk.bf16.vlgmr.msra.gmra.mrb[8].mxu0 %vm393_vm1, %v1127_v30  ;;  %v1124_v36 = vmax.f32 %v3611_v32, 0.0  ;;  %v3202_v32 = vld [vmem:[%s4155_s11 + $0xc5] ss:$8 sm:$0xf0] }
 0x2d9   : > { %3642 = vmatpush3.bf16.msra.mxu0 %v4148_v2  ;;  %v3612_v34 = vpop.f32.mrb[38].mxu1  ;;  %v1122_v39 = vmax.f32 %v1103_v33, 0.0 }
 0x2da   : > { %v1125_v37 = vmax.f32 %v3612_v34, 0.0  ;;  %v1106_v38 = vpop.f32.mrb[39].mxu1  ;;  %3643 = vmatprep.subr.bf16.mxu0 %v4173_v18  ;;  %v1944_v34 = vpack.c.bf16 %v1919_v22, %v1915_v21  ;;  %v3966_v22 = vld [vmem:[%s4671_s3 + $0x70] sm:$0xff]  }
 0x2db   : > { %v1123_v40 = vmax.f32 %v1106_v38, 0.0  ;;  %v3205_v38 = vld [vmem:[%s4155_s11 + $0x145] ss:$8 sm:$0xf] }
 0x2dc   : > { %v1129_v41 = vpack.c.bf16 %v1125_v37, %v1124_v36  ;;  %v3203_v36 = vld [vmem:[%s4155_s11 + $0x105] ss:$8 sm:$0xf] }
 0x2dd   : > { %v1128_v42 = vpack.c.bf16 %v1123_v40, %v1122_v39  ;;  %3644 = vmatpush3.bf16.msra.mxu0 %v4173_v18  ;;  %v3964_v18 = vld [vmem:[%s4671_s3 + $0x60] sm:$0xff]   ;;  %v1923_v40 = vor.u32 %v3200_v29, %v3199_v28 }
 0x2de   : > { %3645 = vmatprep.subr.bf16.mxu0 %v4211_v60  ;;  %v3204_v37 = vld [vmem:[%s4155_s11 + $0x105] ss:$8 sm:$0xf0] }
 0x2df   : > { %3625 = vmatprep.mubr.msk.bf16.mxu0 %vm393_vm1, %v1128_v42  ;;  %v3635_v43 = vpop.f32.mrb[40].mxu1  ;;  %v3206_v39 = vld [vmem:[%s4155_s11 + $0x145] ss:$8 sm:$0xf0]  ;;  %v1931_v42 = vor.u32 %v3204_v37, %v3203_v36 }
 0x2e0   : > { %3626 = vmatmul.mubr.msk.bf16.gmra.mrb[12].mxu0 %vm393_vm1, %v1129_v41  ;;  %v1330_v2 = vpop.f32.mrb[41].mxu1  ;;  %v1363_v45 = vmax.f32 %v3635_v43, 0.0  ;;  %v1927_v41 = vor.u32 %v3202_v32, %v3201_v31  ;;  %v1935_v43 = vor.u32 %v3206_v39, %v3205_v38 }
 0x2e1   : > { %3646 = vmatpush3.bf16.msra.mxu0 %v4211_v60  ;;  %v3636_v44 = vpop.f32.mrb[42].mxu1  ;;  %v1361_v48 = vmax.f32 %v1330_v2, 0.0  ;;  %v3207_v2 = vld [vmem:[%s4155_s11 + $0x185] ss:$8 sm:$0xf] }
 0x2e2   : > { %v1364_v46 = vmax.f32 %v3636_v44, 0.0  ;;  %v1333_v47 = vpop.f32.mrb[43].mxu1  ;;  %3647 = vmatprep.subr.bf16.mxu0 %v4218_v61  ;;  %v3208_v44 = vld [vmem:[%s4155_s11 + $0x185] ss:$8 sm:$0xf0] }
 0x2e3   : > { %v1362_v49 = vmax.f32 %v1333_v47, 0.0  ;;  %v3210_v47 = vld [vmem:[%s4155_s11 + $0x1c5] ss:$8 sm:$0xf0] }
 0x2e4   : > { %v1370_v50 = vpack.c.bf16 %v1364_v46, %v1363_v45  ;;  %v1945_v45 = vpack.c.bf16 %v1927_v41, %v1923_v40  ;;  %v3209_v46 = vld [vmem:[%s4155_s11 + $0x1c5] ss:$8 sm:$0xf] }
 0x2e5   : > { %v1369_v35 = vpack.c.bf16 %v1362_v49, %v1361_v48  ;;  %3648 = vmatpush3.bf16.msra.mxu0 %v4218_v61  ;;  %v3235_v48 = vld [vmem:[%s4155_s11 + $0x6] ss:$8 sm:$0xf] }
 0x2e6   : > { %3657 = vmatprep.subr.bf16.mxu0 %v3964_v18  ;;  %v3236_v49 = vld [vmem:[%s4155_s11 + $0x6] ss:$8 sm:$0xf0] }
 0x2e7   : > { %v3639_v52 = vpop.f32.mrb[44].mxu1  ;;  %3649 = vmatprep.mubr.msk.bf16.mxu0 %vm393_vm1, %v1369_v35  ;;  %v3238_v35 = vld [vmem:[%s4155_s11 + $0x46] ss:$8 sm:$0xf0] }
 0x2e8   : > { %v1346_v53 = vpop.f32.mrb[45].mxu1  ;;  %3650 = vmatmul.mubr.msk.bf16.vlgmr.msra.gmra.mrb[16].mxu0 %vm393_vm1, %v1370_v50  ;;  %v1367_v55 = vmax.f32 %v3639_v52, 0.0  ;;  %v3237_v50 = vld [vmem:[%s4155_s11 + $0x46] ss:$8 sm:$0xf]  ;;  %v1943_v52 = vor.u32 %v3210_v47, %v3209_v46 }
 0x2e9   : > { %v3640_v54 = vpop.f32.mrb[46].mxu1  ;;  %3658 = vmatpush3.bf16.msra.mxu0 %v3964_v18  ;;  %v1365_v58 = vmax.f32 %v1346_v53, 0.0  ;;  %v1946_v18 = vpack.c.bf16 %v1935_v43, %v1931_v42  ;;  %v2247_v53 = vor.u32 %v3236_v49, %v3235_v48  ;;  %v3970_v41 = vld [vmem:[%s4671_s3 + $0x90] sm:$0xff]  }
 0x2ea   : > { %v1368_v56 = vmax.f32 %v3640_v54, 0.0  ;;  %v1349_v57 = vpop.f32.mrb[47].mxu1  ;;  %3659 = vmatprep.subr.bf16.mxu0 %v3965_v51  ;;  %v2251_v54 = vor.u32 %v3238_v35, %v3237_v50 }
 0x2eb   : > { %v1366_v59 = vmax.f32 %v1349_v57, 0.0 }
 0x2ec   : > { %v1372_v62 = vpack.c.bf16 %v1368_v56, %v1367_v55  ;;  %v3239_v55 = vld [vmem:[%s4155_s11 + $0x86] ss:$8 sm:$0xf] }
 0x2ed   : > { %v1371_v63 = vpack.c.bf16 %v1366_v59, %v1365_v58  ;;  %3660 = vmatpush3.bf16.msra.mxu0 %v3965_v51  ;;  %v1939_v51 = vor.u32 %v3208_v44, %v3207_v2  ;;  %v3240_v56 = vld [vmem:[%s4155_s11 + $0x86] ss:$8 sm:$0xf0] }
 0x2ee   : > { %v3241_v58 = vld [vmem:[%s4155_s11 + $0xc6] ss:$8 sm:$0xf]  ;;  %3661 = vmatprep.subr.bf16.mxu0 %v3966_v22 }
 0x2ef   : > { %3653 = vmatprep.mubr.msk.bf16.mxu0 %vm393_vm1, %v1371_v63  ;;  %v3679_v3 = vpop.f32.mrb[48].mxu1  ;;  %v1947_v57 = vpack.c.bf16 %v1943_v52, %v1939_v51  ;;  %v3242_v59 = vld [vmem:[%s4155_s11 + $0xc6] ss:$8 sm:$0xf0] }
 0x2f0   : > { %3654 = vmatmul.mubr.msk.bf16.gmra.mrb[20].mxu0 %vm393_vm1, %v1372_v62  ;;  %v1662_v4 = vpop.f32.mrb[49].mxu1  ;;  %v1695_v6 = vmax.f32 %v3679_v3, 0.0  ;;  %v2276_v62 = vpack.c.bf16 %v2251_v54, %v2247_v53  ;;  %v3243_v63 = vld [vmem:[%s4155_s11 + $0x106] ss:$8 sm:$0xf] }
 0x2f1   : > { %v3680_v5 = vpop.f32.mrb[50].mxu1  ;;  %v1693_v9 = vmax.f32 %v1662_v4, 0.0  ;;  %v3244_v3 = vld [vmem:[%s4155_s11 + $0x106] ss:$8 sm:$0xf0]  ;;  %3662 = vmatpush3.bf16.msra.mxu0 %v3966_v22 }
 0x2f2   : > { %v1696_v7 = vmax.f32 %v3680_v5, 0.0  ;;  %v1665_v8 = vpop.f32.mrb[51].mxu1  ;;  %v3245_v4 = vld [vmem:[%s4155_s11 + $0x146] ss:$8 sm:$0xf] }
 0x2f3   : > { %v1694_v10 = vmax.f32 %v1665_v8, 0.0  ;;  %v3246_v5 = vld [vmem:[%s4155_s11 + $0x146] ss:$8 sm:$0xf0]  ;;  %v2259_v8 = vor.u32 %v3242_v59, %v3241_v58 }
 0x2f4   : > { %v1702_v11 = vpack.c.bf16 %v1696_v7, %v1695_v6  ;;  %v4458_v6 = vld [vmem:[%s4670_s2] sm:$0xff]   ;;  %v2255_v7 = vor.u32 %v3240_v56, %v3239_v55 }
 0x2f5   : > { %v1701_v12 = vpack.c.bf16 %v1694_v10, %v1693_v9  ;;  %v2263_v9 = vor.u32 %v3244_v3, %v3243_v63  ;;  %v2267_v10 = vor.u32 %v3246_v5, %v3245_v4  ;;  %v4514_v5 = vld [vmem:[%s4670_s2 + $0x10] sm:$0xff]  }
 0x2f7   : > { %v3683_v16 = vpop.f32.mrb[52].mxu1  ;;  %3693 = vmatprep.mubr.msk.bf16.mxu1 %vm393_vm1, %v1701_v12  ;;  %v3247_v12 = vld [vmem:[%s4155_s11 + $0x186] ss:$8 sm:$0xf]  ;;  %v2278_v1 = vpack.c.bf16 %v2267_v10, %v2263_v9 }
 0x2f8   : > { %v1678_v17 = vpop.f32.mrb[53].mxu1  ;;  %3694 = vmatmul.mubr.msk.bf16.vlgmr.msra.gmra.mrb[56].mxu1 %vm393_vm1, %v1702_v11  ;;  %v1699_v23 = vmax.f32 %v3683_v16, 0.0  ;;  %v2277_v11 = vpack.c.bf16 %v2259_v8, %v2255_v7  ;;  %v2271_v16 = vor.u32 %v3248_v13, %v3247_v12  ;;  %v4523_v13 = vld [vmem:[%s4670_s2 + $0x18] sm:$0xff]  }
 0x2f9   : > { %3718 = vmatpush3.bf16.msra.mxu1 %v4412_v19  ;;  %v3684_v20 = vpop.f32.mrb[54].mxu1  ;;  %v1697_v27 = vmax.f32 %v1678_v17, 0.0  ;;  %v2275_v17 = vor.u32 %v3250_v15, %v3249_v14 }
 0x2fa   : > { %v1700_v24 = vmax.f32 %v3684_v20, 0.0  ;;  %v1681_v26 = vpop.f32.mrb[55].mxu1  ;;  %3719 = vmatprep.subr.bf16.mxu1 %v4418_v25  ;;  %v4473_v20 = vld [vmem:[%s4670_s2 + $0x8] sm:$0xff]  }
 0x2fb   : > { %v1698_v0 = vmax.f32 %v1681_v26, 0.0  ;;  %v2279_v21 = vpack.c.bf16 %v2275_v17, %v2271_v16 }
 0x2fc   : > { %v1704_v30 = vpack.c.bf16 %v1700_v24, %v1699_v23  ;;  %v3967_v23 = vld [vmem:[%s4671_s3 + $0x78] sm:$0xff]  }
 0x2fd   : > { %v1703_v33 = vpack.c.bf16 %v1698_v0, %v1697_v27  ;;  %3720 = vmatpush3.bf16.msra.mxu1 %v4418_v25  ;;  %3663 = vmatprep.subr.bf16.mxu0 %v3967_v23 }
 0x2fe   : > { %3761 = vmatprep.subr.bf16.mxu1 %v4412_v19  ;;  %3664 = vmatpush3.bf16.msra.mxu0 %v3967_v23 }
 0x2ff   : > { %3697 = vmatprep.mubr.msk.bf16.mxu1 %vm393_vm1, %v1703_v33  ;;  %v3969_v33 = vld [vmem:[%s4671_s3 + $0x88] sm:$0xff]  }
 0x300   : > { %3698 = vmatmul.mubr.msk.bf16.gmra.mrb[60].mxu1 %vm393_vm1, %v1704_v30 }
 0x301   : > { %3721 = vmatprep.mubr.msk.bf16.mxu1 %vm279_vm0, %v1944_v34 }
 0x308   : > { %3722 = vmatmul.mubr.msk.bf16.vlgmr.msra.gmra.mrb[64].mxu1 %vm279_vm0, %v1945_v45  ;;  %v3971_v45 = vld [vmem:[%s4671_s3 + $0x98] sm:$0xff]  }
 0x309   : > { %3762 = vmatpush3.bf16.msra.mxu1 %v4412_v19  ;;  %3725 = vmatprep.mubr.msk.bf16.mxu1 %vm279_vm0, %v1946_v18 }
 0x30a   : > { %3763 = vmatprep.subr.bf16.mxu1 %v4418_v25 }
 0x30d   : > { %3764 = vmatpush3.bf16.msra.mxu1 %v4418_v25 }
 0x30e   : > { %3773 = vmatprep.subr.bf16.mxu1 %v4458_v6 }
 0x310   : > { %3726 = vmatmul.mubr.msk.bf16.gmra.mrb[68].mxu1 %vm279_vm0, %v1947_v57 }
 0x311   : > { %3765 = vmatprep.mubr.msk.bf16.mxu1 %vm279_vm0, %v2276_v62 }
 0x318   : > { %3766 = vmatmul.mubr.msk.bf16.vlgmr.msra.gmra.mrb[72].mxu1 %vm279_vm0, %v2277_v11 }
 0x319   : > { %3769 = vmatprep.mubr.msk.bf16.mxu1 %vm279_vm0, %v2278_v1  ;;  %3774 = vmatpush3.bf16.msra.mxu1 %v4458_v6  ;;  %v3972_v1 = vld [vmem:[%s4671_s3 + $0xa0] sm:$0xff]  }
 0x31a   : > { %3775 = vmatprep.subr.bf16.mxu1 %v4473_v20 }
 0x31d   : > { %3776 = vmatpush3.bf16.msra.mxu1 %v4473_v20 }
 0x31e   : > { %3777 = vmatprep.subr.bf16.mxu1 %v4211_v60 }
 0x320   : > { %3770 = vmatmul.mubr.msk.bf16.gmra.mrb[76].mxu1 %vm279_vm0, %v2279_v21  ;;  %v3973_v21 = vld [vmem:[%s4671_s3 + $0xa8] sm:$0xff]  }
 0x321   : > { %3778 = vmatpush3.bf16.msra.mxu1 %v4211_v60  ;;  %v3968_v60 = vld [vmem:[%s4671_s3 + $0x80] sm:$0xff]  }
 0x322   : > { %3779 = vmatprep.subr.bf16.mxu1 %v4218_v61  ;;  %3701 = vmatprep.subr.bf16.mxu0 %v3968_v60 }
 0x325   : > { %3780 = vmatpush3.bf16.msra.mxu1 %v4218_v61 }
 0x326   : > { %3805 = vmatprep.subr.bf16.mxu1 %v4412_v19 }
 0x3bb   : > { %v3651_v61 = vpop.f32.mrb[16].mxu0 }
 0x3bc   : > { %v1419_v24 = vpop.f32.mrb[17].mxu0  ;;  %v1452_v27 = vmax.f32 %v3651_v61, 0.0 }
 0x3bd   : > { %v3652_v26 = vpop.f32.mrb[18].mxu0  ;;  %v1450_v29 = vmax.f32 %v1419_v24, 0.0 }
 0x3be   : > { %v1453_v0 = vmax.f32 %v3652_v26, 0.0  ;;  %v1422_v28 = vpop.f32.mrb[19].mxu0 }
 0x3bf   : > { %v1451_v30 = vmax.f32 %v1422_v28, 0.0 }
 0x3c0   : > { %v1459_v31 = vpack.c.bf16 %v1453_v0, %v1452_v27 }
 0x3c1   : > { %v1458_v32 = vpack.c.bf16 %v1451_v30, %v1450_v29 }
 0x3c3   : > { %v3655_v34 = vpop.f32.mrb[20].mxu0  ;;  %3665 = vmatprep.mubr.msk.bf16.mxu0 %vm393_vm1, %v1458_v32 }
 0x3c4   : > { %v1435_v36 = vpop.f32.mrb[21].mxu0  ;;  %3666 = vmatmul.mubr.msk.bf16.vlgmr.msra.gmra.mrb[8].mxu0 %vm393_vm1, %v1459_v31  ;;  %v1456_v38 = vmax.f32 %v3655_v34, 0.0 }
 0x3c5   : > { %3702 = vmatpush3.bf16.msra.mxu0 %v3968_v60  ;;  %v3656_v37 = vpop.f32.mrb[22].mxu0  ;;  %v1454_v42 = vmax.f32 %v1435_v36, 0.0 }
 0x3c6   : > { %v1457_v39 = vmax.f32 %v3656_v37, 0.0  ;;  %v1438_v40 = vpop.f32.mrb[23].mxu0  ;;  %3703 = vmatprep.subr.bf16.mxu0 %v3969_v33 }
 0x3c7   : > { %v1455_v43 = vmax.f32 %v1438_v40, 0.0 }
 0x3c8   : > { %v1461_v2 = vpack.c.bf16 %v1457_v39, %v1456_v38 }
 0x3c9   : > { %v1460_v44 = vpack.c.bf16 %v1455_v43, %v1454_v42  ;;  %3704 = vmatpush3.bf16.msra.mxu0 %v3969_v33  ;;  %v3276_v42 = vld [vmem:[%s4155_s11 + $0x7] ss:$8 sm:$0xf0] }
 0x3ca   : > { %3705 = vmatprep.subr.bf16.mxu0 %v3970_v41  ;;  %v3277_v43 = vld [vmem:[%s4155_s11 + $0x47] ss:$8 sm:$0xf] }
 0x3cb   : > { %3669 = vmatprep.mubr.msk.bf16.mxu0 %vm393_vm1, %v1460_v44  ;;  %v3695_v46 = vpop.f32.mrb[56].mxu1 }
 0x3cc   : > { %3670 = vmatmul.mubr.msk.bf16.gmra.mrb[12].mxu0 %vm393_vm1, %v1461_v2  ;;  %v1751_v47 = vpop.f32.mrb[57].mxu1  ;;  %v1784_v48 = vmax.f32 %v3695_v46, 0.0  ;;  %v3278_v2 = vld [vmem:[%s4155_s11 + $0x47] ss:$8 sm:$0xf0] }
 0x3cd   : > { %3706 = vmatpush3.bf16.msra.mxu0 %v3970_v41  ;;  %v3696_v18 = vpop.f32.mrb[58].mxu1  ;;  %v1782_v35 = vmax.f32 %v1751_v47, 0.0  ;;  %v3275_v41 = vld [vmem:[%s4155_s11 + $0x7] ss:$8 sm:$0xf] }
 0x3ce   : > { %v1785_v49 = vmax.f32 %v3696_v18, 0.0  ;;  %v1754_v50 = vpop.f32.mrb[59].mxu1  ;;  %3707 = vmatprep.subr.bf16.mxu0 %v3971_v45  ;;  %v2579_v47 = vor.u32 %v3276_v42, %v3275_v41  ;;  %v2583_v18 = vor.u32 %v3278_v2, %v3277_v43  ;;  %v3979_v2 = vld [vmem:[%s4671_s3 + $0xd8] sm:$0xff]  }
 0x3cf   : > { %v1783_v51 = vmax.f32 %v1754_v50, 0.0 }
 0x3d0   : > { %v1791_v52 = vpack.c.bf16 %v1785_v49, %v1784_v48 }
 0x3d1   : > { %v1790_v53 = vpack.c.bf16 %v1783_v51, %v1782_v35  ;;  %3708 = vmatpush3.bf16.msra.mxu0 %v3971_v45 }
 0x3d2   : > { %3729 = vmatprep.subr.bf16.mxu0 %v4458_v6 }
 0x3d3   : > { %v3699_v54 = vpop.f32.mrb[60].mxu1  ;;  %3709 = vmatprep.mubr.msk.bf16.mxu0 %vm393_vm1, %v1790_v53  ;;  %v3280_v53 = vld [vmem:[%s4155_s11 + $0x87] ss:$8 sm:$0xf0] }
 0x3d4   : > { %v1767_v55 = vpop.f32.mrb[61].mxu1  ;;  %3710 = vmatmul.mubr.msk.bf16.vlgmr.msra.gmra.mrb[8].mxu0 %vm393_vm1, %v1791_v52  ;;  %v1788_v57 = vmax.f32 %v3699_v54, 0.0  ;;  %v3279_v52 = vld [vmem:[%s4155_s11 + $0x87] ss:$8 sm:$0xf] }
 0x3d5   : > { %3730 = vmatpush3.bf16.msra.mxu0 %v4458_v6  ;;  %v3700_v56 = vpop.f32.mrb[62].mxu1  ;;  %v1786_v62 = vmax.f32 %v1767_v55, 0.0  ;;  %v3281_v55 = vld [vmem:[%s4155_s11 + $0xc7] ss:$8 sm:$0xf] }
 0x3d6   : > { %v1789_v58 = vmax.f32 %v3700_v56, 0.0  ;;  %v1770_v59 = vpop.f32.mrb[63].mxu1  ;;  %3731 = vmatprep.subr.bf16.mxu0 %v4473_v20  ;;  %v3282_v56 = vld [vmem:[%s4155_s11 + $0xc7] ss:$8 sm:$0xf0] }
 0x3d7   : > { %v1787_v63 = vmax.f32 %v1770_v59, 0.0  ;;  %v3284_v59 = vld [vmem:[%s4155_s11 + $0x107] ss:$8 sm:$0xf0] }
 0x3d8   : > { %v1793_v3 = vpack.c.bf16 %v1789_v58, %v1788_v57  ;;  %v2608_v57 = vpack.c.bf16 %v2583_v18, %v2579_v47  ;;  %v3283_v58 = vld [vmem:[%s4155_s11 + $0x107] ss:$8 sm:$0xf] }
 0x3d9   : > { %v1792_v4 = vpack.c.bf16 %v1787_v63, %v1786_v62  ;;  %3732 = vmatpush3.bf16.msra.mxu0 %v4473_v20  ;;  %v3285_v62 = vld [vmem:[%s4155_s11 + $0x147] ss:$8 sm:$0xf] }
 0x3da   : > { %3733 = vmatprep.subr.bf16.mxu0 %v4514_v5  ;;  %v3286_v63 = vld [vmem:[%s4155_s11 + $0x147] ss:$8 sm:$0xf0] }
 0x3db   : > { %3713 = vmatprep.mubr.msk.bf16.mxu0 %vm393_vm1, %v1792_v4  ;;  %v3723_v7 = vpop.f32.mrb[64].mxu1  ;;  %v2591_v4 = vor.u32 %v3282_v56, %v3281_v55 }
 0x3dc   : > { %3714 = vmatmul.mubr.msk.bf16.gmra.mrb[12].mxu0 %vm393_vm1, %v1793_v3  ;;  %v1994_v8 = vpop.f32.mrb[65].mxu1  ;;  %v2027_v10 = vmax.f32 %v3723_v7, 0.0  ;;  %v2587_v3 = vor.u32 %v3280_v53, %v3279_v52  ;;  %v2595_v7 = vor.u32 %v3284_v59, %v3283_v58 }
 0x3dd   : > { %3734 = vmatpush3.bf16.msra.mxu0 %v4514_v5  ;;  %v3724_v9 = vpop.f32.mrb[66].mxu1  ;;  %v2025_v14 = vmax.f32 %v1994_v8, 0.0  ;;  %v2599_v8 = vor.u32 %v3286_v63, %v3285_v62 }
 0x3de   : > { %v2028_v11 = vmax.f32 %v3724_v9, 0.0  ;;  %v1997_v12 = vpop.f32.mrb[67].mxu1  ;;  %3735 = vmatprep.subr.bf16.mxu0 %v4523_v13  ;;  %v2609_v9 = vpack.c.bf16 %v2591_v4, %v2587_v3 }
 0x3df   : > { %v2026_v15 = vmax.f32 %v1997_v12, 0.0  ;;  %v3289_v12 = vld [vmem:[%s4155_s11 + $0x1c7] ss:$8 sm:$0xf] }
 0x3e0   : > { %v2034_v16 = vpack.c.bf16 %v2028_v11, %v2027_v10  ;;  %v3287_v10 = vld [vmem:[%s4155_s11 + $0x187] ss:$8 sm:$0xf]  ;;  %v2610_v11 = vpack.c.bf16 %v2599_v8, %v2595_v7 }
 0x3e1   : > { %v2033_v17 = vpack.c.bf16 %v2026_v15, %v2025_v14  ;;  %3736 = vmatpush3.bf16.msra.mxu0 %v4523_v13 }
 0x3e2   : > { %3745 = vmatprep.subr.bf16.mxu0 %v3972_v1 }
 0x3e3   : > { %v3727_v22 = vpop.f32.mrb[68].mxu1  ;;  %3737 = vmatprep.mubr.msk.bf16.mxu0 %vm393_vm1, %v2033_v17  ;;  %v3974_v17 = vld [vmem:[%s4671_s3 + $0xb0] sm:$0xff]  }
 0x3e4   : > { %v2010_v23 = vpop.f32.mrb[69].mxu1  ;;  %3738 = vmatmul.mubr.msk.bf16.vlgmr.msra.gmra.mrb[24].mxu0 %vm393_vm1, %v2034_v16  ;;  %v2031_v61 = vmax.f32 %v3727_v22, 0.0  ;;  %v3976_v22 = vld [vmem:[%s4671_s3 + $0xc0] sm:$0xff]  }
 0x3e5   : > { %v3728_v60 = vpop.f32.mrb[70].mxu1  ;;  %3746 = vmatpush3.bf16.msra.mxu0 %v3972_v1  ;;  %v2029_v27 = vmax.f32 %v2010_v23, 0.0  ;;  %v3290_v1 = vld [vmem:[%s4155_s11 + $0x1c7] ss:$8 sm:$0xf0] }
 0x3e6   : > { %v2032_v24 = vmax.f32 %v3728_v60, 0.0  ;;  %v2013_v26 = vpop.f32.mrb[71].mxu1  ;;  %3747 = vmatprep.subr.bf16.mxu0 %v3973_v21  ;;  %v2607_v15 = vor.u32 %v3290_v1, %v3289_v12 }
 0x3e7   : > { %v2030_v0 = vmax.f32 %v2013_v26, 0.0 }
 0x3e8   : > { %v2036_v28 = vpack.c.bf16 %v2032_v24, %v2031_v61 }
 0x3e9   : > { %v2035_v29 = vpack.c.bf16 %v2030_v0, %v2029_v27  ;;  %3748 = vmatpush3.bf16.msra.mxu0 %v3973_v21  ;;  %v3975_v21 = vld [vmem:[%s4671_s3 + $0xb8] sm:$0xff]  }
 0x3ea   : > { %3749 = vmatprep.subr.bf16.mxu0 %v3974_v17 }
 0x3eb   : > { %3741 = vmatprep.mubr.msk.bf16.mxu0 %vm393_vm1, %v2035_v29  ;;  %v3767_v30 = vpop.f32.mrb[72].mxu1 }
 0x3ec   : > { %3742 = vmatmul.mubr.msk.bf16.gmra.mrb[28].mxu0 %vm393_vm1, %v2036_v28  ;;  %v2326_v31 = vpop.f32.mrb[73].mxu1  ;;  %v2359_v33 = vmax.f32 %v3767_v30, 0.0 }
 0x3ed   : > { %v3768_v32 = vpop.f32.mrb[74].mxu1  ;;  %v2357_v37 = vmax.f32 %v2326_v31, 0.0  ;;  %3750 = vmatpush3.bf16.msra.mxu0 %v3974_v17  ;;  %v3977_v31 = vld [vmem:[%s4671_s3 + $0xc8] sm:$0xff]  }
 0x3ee   : > { %v2360_v34 = vmax.f32 %v3768_v32, 0.0  ;;  %v2329_v36 = vpop.f32.mrb[75].mxu1  ;;  %3751 = vmatprep.subr.bf16.mxu0 %v3975_v21 }
 0x3ef   : > { %v2358_v38 = vmax.f32 %v2329_v36, 0.0 }
 0x3f0   : > { %v2366_v39 = vpack.c.bf16 %v2360_v34, %v2359_v33 }
 0x3f1   : > { %v2365_v40 = vpack.c.bf16 %v2358_v38, %v2357_v37  ;;  %3752 = vmatpush3.bf16.msra.mxu0 %v3975_v21 }
 0x3f2   : > { %3789 = vmatprep.subr.bf16.mxu0 %v3976_v22 }
 0x3f3   : > { %v3771_v44 = vpop.f32.mrb[76].mxu1  ;;  %3781 = vmatprep.mubr.msk.bf16.mxu1 %vm393_vm1, %v2365_v40 }
 0x3f4   : > { %v2342_v45 = vpop.f32.mrb[77].mxu1  ;;  %3782 = vmatmul.mubr.msk.bf16.vlgmr.msra.gmra.mrb[80].mxu1 %vm393_vm1, %v2366_v39  ;;  %v2363_v48 = vmax.f32 %v3771_v44, 0.0  ;;  %v3978_v39 = vld [vmem:[%s4671_s3 + $0xd0] sm:$0xff]  }
 0x3f5   : > { %3806 = vmatpush3.bf16.msra.mxu1 %v4412_v19  ;;  %v3772_v46 = vpop.f32.mrb[78].mxu1  ;;  %v2361_v35 = vmax.f32 %v2342_v45, 0.0 }
 0x3f6   : > { %v2364_v49 = vmax.f32 %v3772_v46, 0.0  ;;  %v2345_v50 = vpop.f32.mrb[79].mxu1  ;;  %3807 = vmatprep.subr.bf16.mxu1 %v4418_v25 }
 0x3f7   : > { %v2362_v51 = vmax.f32 %v2345_v50, 0.0 }
 0x3f8   : > { %v2368_v54 = vpack.c.bf16 %v2364_v49, %v2363_v48 }
 0x3f9   : > { %v2367_v19 = vpack.c.bf16 %v2362_v51, %v2361_v35  ;;  %3808 = vmatpush3.bf16.msra.mxu1 %v4418_v25  ;;  %v3288_v25 = vld [vmem:[%s4155_s11 + $0x187] ss:$8 sm:$0xf0]  ;;  %s2996_s11 = sshll.u32 %s201_s13, 6 }
 0x3fa   : > { %v2603_v14 = vor.u32 %v3288_v25, %v3287_v10  ;;  %s203_s14 = scalar_lea.vmem [#allocation2], %s2996_s11 }
 0x3fb   : > { %3785 = vmatprep.mubr.msk.bf16.mxu1 %vm393_vm1, %v2367_v19  ;;  %s2930_s20 = sshll.u32 %s203_s14, 4  ;;  %s4620_s20 = int_to_ptr.vmem [resolvable:$true] %s2930_s20 }
 0x3fc   : > { %3786 = vmatmul.mubr.msk.bf16.gmra.mrb[84].mxu1 %vm393_vm1, %v2368_v54  ;;  %v2611_v16 = vpack.c.bf16 %v2607_v15, %v2603_v14  ;;  %s3990_s19 = scalar_lea.vmem %s4620_s20, 1024  ;;  %p3997_p0 = scmp.lt.s32.totalorder %s4620_s20, %s3995_s5 }
 0x3fd   : > { %3809 = vmatprep.mubr.msk.bf16.mxu1 %vm279_vm0, %v2608_v57  ;;  %p3991_p11 = scmp.ne.s32.totalorder %s4620_s20, %s3990_s19  ;;  %p3998_p1 = scmp.lt.s32.totalorder %s3996_s6, %s3990_s19 }
 0x3ff   : > { %p3992_p12 = pnand %p3991_p11, %p4120_p5  ;;  %p3999_p2 = por %p3998_p1, %p3997_p0 }
 0x401   : > { %p3993_p13 = pneg %p3992_p12 }
 0x403   : > { %p4000_p3 = pnand %p3999_p2, %p3993_p13 }
 0x404   : > { %3810 = vmatmul.mubr.msk.bf16.vlgmr.msra.gmra.mrb[88].mxu1 %vm279_vm0, %v2609_v9 }
 0x405   : > { %3813 = vmatprep.mubr.msk.bf16.mxu1 %vm279_vm0, %v2610_v11 }
 0x40c   : > { %3814 = vmatmul.mubr.msk.bf16.gmra.mrb[92].mxu1 %vm279_vm0, %v2611_v16 }
 0x4b7   : > { %v3739_v23 = vpop.f32.mrb[24].mxu0 }
 0x4b8   : > { %v2083_v60 = vpop.f32.mrb[25].mxu0  ;;  %v2116_v24 = vmax.f32 %v3739_v23, 0.0 }
 0x4b9   : > { %v3740_v61 = vpop.f32.mrb[26].mxu0  ;;  %v2114_v0 = vmax.f32 %v2083_v60, 0.0  ;;  %v3982_v60 = vld [vmem:[%s4671_s3 + $0xf0] sm:$0xff]  }
 0x4ba   : > { %v2117_v26 = vmax.f32 %v3740_v61, 0.0  ;;  %v2086_v27 = vpop.f32.mrb[27].mxu0  ;;  %v3983_v61 = vld [vmem:[%s4671_s3 + $0xf8] sm:$0xff]  }
 0x4bb   : > { %v2115_v28 = vmax.f32 %v2086_v27, 0.0 }
 0x4bc   : > { %v2123_v29 = vpack.c.bf16 %v2117_v26, %v2116_v24 }
 0x4bd   : > { %v2122_v30 = vpack.c.bf16 %v2115_v28, %v2114_v0 }
 0x4bf   : > { %v3743_v32 = vpop.f32.mrb[28].mxu0  ;;  %3753 = vmatprep.mubr.msk.bf16.mxu0 %vm393_vm1, %v2122_v30 }
 0x4c0   : > { %v2099_v33 = vpop.f32.mrb[29].mxu0  ;;  %3754 = vmatmul.mubr.msk.bf16.vlgmr.msra.gmra.mrb[8].mxu0 %vm393_vm1, %v2123_v29  ;;  %v2120_v36 = vmax.f32 %v3743_v32, 0.0 }
 0x4c1   : > { %3790 = vmatpush3.bf16.msra.mxu0 %v3976_v22  ;;  %v3744_v34 = vpop.f32.mrb[30].mxu0  ;;  %v2118_v40 = vmax.f32 %v2099_v33, 0.0 }
 0x4c2   : > { %v2121_v37 = vmax.f32 %v3744_v34, 0.0  ;;  %v2102_v38 = vpop.f32.mrb[31].mxu0  ;;  %3791 = vmatprep.subr.bf16.mxu0 %v3977_v31 }
 0x4c3   : > { %v2119_v41 = vmax.f32 %v2102_v38, 0.0 }
 0x4c4   : > { %v2125_v42 = vpack.c.bf16 %v2121_v37, %v2120_v36 }
 0x4c5   : > { %v2124_v43 = vpack.c.bf16 %v2119_v41, %v2118_v40  ;;  %3792 = vmatpush3.bf16.msra.mxu0 %v3977_v31 }
 0x4c6   : > { %3793 = vmatprep.subr.bf16.mxu0 %v3978_v39 }
 0x4c7   : > { %3757 = vmatprep.mubr.msk.bf16.mxu0 %vm393_vm1, %v2124_v43  ;;  %v3783_v44 = vpop.f32.mrb[80].mxu1 }
 0x4c8   : > { %3758 = vmatmul.mubr.msk.bf16.gmra.mrb[12].mxu0 %vm393_vm1, %v2125_v42  ;;  %v2415_v45 = vpop.f32.mrb[81].mxu1  ;;  %v2448_v47 = vmax.f32 %v3783_v44, 0.0 }
 0x4c9   : > { %3794 = vmatpush3.bf16.msra.mxu0 %v3978_v39  ;;  %v3784_v46 = vpop.f32.mrb[82].mxu1  ;;  %v2446_v49 = vmax.f32 %v2415_v45, 0.0 }
 0x4ca   : > { %v2449_v18 = vmax.f32 %v3784_v46, 0.0  ;;  %v2418_v48 = vpop.f32.mrb[83].mxu1  ;;  %3795 = vmatprep.subr.bf16.mxu0 %v3979_v2 }
 0x4cb   : > { %v2447_v50 = vmax.f32 %v2418_v48, 0.0 }
 0x4cc   : > { %v2455_v35 = vpack.c.bf16 %v2449_v18, %v2448_v47 }
 0x4cd   : > { %v2454_v51 = vpack.c.bf16 %v2447_v50, %v2446_v49  ;;  %3796 = vmatpush3.bf16.msra.mxu0 %v3979_v2 }
 0x4ce   : > { %3817 = vmatprep.subr.bf16.mxu0 %v4458_v6 }
 0x4cf   : > { %v3787_v52 = vpop.f32.mrb[84].mxu1  ;;  %3797 = vmatprep.mubr.msk.bf16.mxu0 %vm393_vm1, %v2454_v51 }
 0x4d0   : > { %v2431_v53 = vpop.f32.mrb[85].mxu1  ;;  %3798 = vmatmul.mubr.msk.bf16.vlgmr.msra.gmra.mrb[8].mxu0 %vm393_vm1, %v2455_v35  ;;  %v2452_v55 = vmax.f32 %v3787_v52, 0.0 }
 0x4d1   : > { %3818 = vmatpush3.bf16.msra.mxu0 %v4458_v6  ;;  %v3788_v54 = vpop.f32.mrb[86].mxu1  ;;  %v2450_v57 = vmax.f32 %v2431_v53, 0.0 }
 0x4d2   : > { %v2453_v56 = vmax.f32 %v3788_v54, 0.0  ;;  %v2434_v19 = vpop.f32.mrb[87].mxu1  ;;  %3819 = vmatprep.subr.bf16.mxu0 %v4473_v20 }
 0x4d3   : > { %v2451_v58 = vmax.f32 %v2434_v19, 0.0 }
 0x4d4   : > { %v2457_v59 = vpack.c.bf16 %v2453_v56, %v2452_v55 }
 0x4d5   : > { %v2456_v62 = vpack.c.bf16 %v2451_v58, %v2450_v57  ;;  %3820 = vmatpush3.bf16.msra.mxu0 %v4473_v20  ;;  %v3980_v20 = vld [vmem:[%s4671_s3 + $0xe0] sm:$0xff]  }
 0x4d6   : > { %3821 = vmatprep.subr.bf16.mxu0 %v4514_v5 }
 0x4d7   : > { %3801 = vmatprep.mubr.msk.bf16.mxu0 %vm393_vm1, %v2456_v62  ;;  %v3811_v63 = vpop.f32.mrb[88].mxu1 }
 0x4d8   : > { %3802 = vmatmul.mubr.msk.bf16.gmra.mrb[12].mxu0 %vm393_vm1, %v2457_v59  ;;  %v2658_v6 = vpop.f32.mrb[89].mxu1  ;;  %v2691_v4 = vmax.f32 %v3811_v63, 0.0 }
 0x4d9   : > { %3822 = vmatpush3.bf16.msra.mxu0 %v4514_v5  ;;  %v3812_v3 = vpop.f32.mrb[90].mxu1  ;;  %v2689_v9 = vmax.f32 %v2658_v6, 0.0  ;;  %v3981_v5 = vld [vmem:[%s4671_s3 + $0xe8] sm:$0xff]  }
 0x4da   : > { %v2692_v7 = vmax.f32 %v3812_v3, 0.0  ;;  %v2661_v8 = vpop.f32.mrb[91].mxu1  ;;  %3823 = vmatprep.subr.bf16.mxu0 %v4523_v13 }
 0x4db   : > { %v2690_v10 = vmax.f32 %v2661_v8, 0.0 }
 0x4dc   : > { %v2698_v25 = vpack.c.bf16 %v2692_v7, %v2691_v4 }
 0x4dd   : > { %v2697_v11 = vpack.c.bf16 %v2690_v10, %v2689_v9  ;;  %3824 = vmatpush3.bf16.msra.mxu0 %v4523_v13 }
 0x4de   : > { %3833 = vmatprep.subr.bf16.mxu0 %v3980_v20 }
 0x4df   : > { %v3815_v12 = vpop.f32.mrb[92].mxu1  ;;  %3825 = vmatprep.mubr.msk.bf16.mxu0 %vm393_vm1, %v2697_v11 }
 0x4e0   : > { %v2674_v1 = vpop.f32.mrb[93].mxu1  ;;  %3826 = vmatmul.mubr.msk.bf16.vlgmr.msra.gmra.mrb[32].mxu0 %vm393_vm1, %v2698_v25  ;;  %v2695_v15 = vmax.f32 %v3815_v12, 0.0 }
 0x4e1   : > { %v3816_v14 = vpop.f32.mrb[94].mxu1  ;;  %3834 = vmatpush3.bf16.msra.mxu0 %v3980_v20  ;;  %v2693_v21 = vmax.f32 %v2674_v1, 0.0 }
 0x4e2   : > { %v2696_v16 = vmax.f32 %v3816_v14, 0.0  ;;  %v2677_v17 = vpop.f32.mrb[95].mxu1  ;;  %3835 = vmatprep.subr.bf16.mxu0 %v3981_v5 }
 0x4e3   : > { %v2694_v22 = vmax.f32 %v2677_v17, 0.0 }
 0x4e4   : > { %v2700_v13 = vpack.c.bf16 %v2696_v16, %v2695_v15 }
 0x4e5   : > { %v2699_v23 = vpack.c.bf16 %v2694_v22, %v2693_v21  ;;  %3836 = vmatpush3.bf16.msra.mxu0 %v3981_v5 }
 0x4e6   : > { %3837 = vmatprep.subr.bf16.mxu0 %v3982_v60 }
 0x4e7   : > { %3829 = vmatprep.mubr.msk.bf16.mxu0 %vm393_vm1, %v2699_v23 }
 0x4e8   : > { %3830 = vmatmul.mubr.msk.bf16.gmra.mrb[36].mxu0 %vm393_vm1, %v2700_v13 }
 0x4e9   : > { %3838 = vmatpush3.bf16.msra.mxu0 %v3982_v60 }
 0x4ea   : > { %3839 = vmatprep.subr.bf16.mxu0 %v3983_v61 }
 0x4ed   : > { %3840 = vmatpush3.bf16.msra.mxu0 %v3983_v61 }
 0x5b3   : > { %v3827_v24 = vpop.f32.mrb[32].mxu0 }
 0x5b4   : > { %v2747_v26 = vpop.f32.mrb[33].mxu0  ;;  %v2780_v0 = vmax.f32 %v3827_v24, 0.0 }
 0x5b5   : > { %v3828_v27 = vpop.f32.mrb[34].mxu0  ;;  %v2778_v30 = vmax.f32 %v2747_v26, 0.0 }
 0x5b6   : > { %v2781_v28 = vmax.f32 %v3828_v27, 0.0  ;;  %v2750_v29 = vpop.f32.mrb[35].mxu0 }
 0x5b7   : > { %v2779_v31 = vmax.f32 %v2750_v29, 0.0 }
 0x5b8   : > { %v2787_v32 = vpack.c.bf16 %v2781_v28, %v2780_v0 }
 0x5b9   : > { %v2786_v33 = vpack.c.bf16 %v2779_v31, %v2778_v30 }
 0x5bb   : > { %v3831_v34 = vpop.f32.mrb[36].mxu0  ;;  %3841 = vmatprep.mubr.msk.bf16.mxu0 %vm393_vm1, %v2786_v33 }
 0x5bc   : > { %v2763_v36 = vpop.f32.mrb[37].mxu0  ;;  %3842 = vmatmul.mubr.msk.bf16.vlgmr.msra.gmra.mrb[8].mxu0 %vm393_vm1, %v2787_v32  ;;  %v2784_v38 = vmax.f32 %v3831_v34, 0.0 }
 0x5bd   : > { %v3832_v37 = vpop.f32.mrb[38].mxu0  ;;  %v2782_v41 = vmax.f32 %v2763_v36, 0.0 }
 0x5be   : > { %v2785_v39 = vmax.f32 %v3832_v37, 0.0  ;;  %v2766_v40 = vpop.f32.mrb[39].mxu0 }
 0x5bf   : > { %v2783_v42 = vmax.f32 %v2766_v40, 0.0 }
 0x5c0   : > { %v2789_v43 = vpack.c.bf16 %v2785_v39, %v2784_v38 }
 0x5c1   : > { %v2788_v2 = vpack.c.bf16 %v2783_v42, %v2782_v41 }
 0x5c3   : > { %3845 = vmatprep.mubr.msk.bf16.mxu0 %vm393_vm1, %v2788_v2 }
 0x5c4   : > { %3846 = vmatmul.mubr.msk.bf16.gmra.mrb[12].mxu0 %vm393_vm1, %v2789_v43 }
 0x68f   : > { %v3843_v44 = vpop.f32.mrb[8].mxu0 }
 0x690   : > { %2910 = vst [vmem:[%s203_s14 + $0x10] sm:$0xff] %v3843_v44  ;;  %v2869_v45 = vpop.f32.mrb[9].mxu0 }
 0x691   : > { %2908 = vst [vmem:[%s203_s14] sm:$0xff] %v2869_v45  ;;  %v3844_v46 = vpop.f32.mrb[10].mxu0 }
 0x692   : > { %2911 = vst [vmem:[%s203_s14 + $0x18] sm:$0xff] %v3844_v46  ;;  %v2872_v47 = vpop.f32.mrb[11].mxu0 }
 0x693   : > { %2909 = vst [vmem:[%s203_s14 + $0x8] sm:$0xff] %v2872_v47 }
 0x697   : > { %v3847_v18 = vpop.f32.mrb[12].mxu0 }
 0x698   : > { %2914 = vst [vmem:[%s203_s14 + $0x30] sm:$0xff] %v3847_v18  ;;  %v2885_v48 = vpop.f32.mrb[13].mxu0 }
 0x699   : > { %2912 = vst [vmem:[%s203_s14 + $0x20] sm:$0xff] %v2885_v48  ;;  %v3848_v49 = vpop.f32.mrb[14].mxu0 }
 0x69a   : > { %2915 = vst [vmem:[%s203_s14 + $0x38] sm:$0xff] %v3848_v49  ;;  %v2888_v50 = vpop.f32.mrb[15].mxu0 }
 0x69b   : > { %2913 = vst [vmem:[%s203_s14 + $0x28] sm:$0xff] %v2888_v50 }
 0x69c   : > { %4003 = shalt.err (!%p4000_p3)
}
 0x69d   : > { %s4004_s7 = scalar_lea.hbm %s4625_s28, 1024  ;;  %s4008_s10 = scalar_lea.hbm %s4672_s4, 2048 }
 0x69e   : > { %p4005_p4 = scmp.ne.s32.totalorder %s4625_s28, %s4004_s7  ;;  %p4009_p9 = scmp.lt.u32.totalorder %s4625_s28, %s4672_s4 }
 0x69f   : > { %p4010_p10 = scmp.lt.u32.totalorder %s4008_s10, %s4004_s7  ;;  %p4012_p12 = scmp.lt.u32.totalorder %s4004_s7, %s4625_s28 }
 0x6a0   : > { %p4006_p7 = pnand %p4005_p4, %p4120_p5 }
 0x6a1   : > { %p4011_p11 = por %p4010_p10, %p4009_p9 }
 0x6a2   : > { %p4007_p8 = pneg %p4006_p7 }
 0x6a3   : > { %p4013_p13 = por %p4012_p12, %p4011_p11 }
 0x6a5   : > { %p4014_p0 = pnand %p4013_p13, %p4007_p8 }
 0x6a7   : > { %4017 = shalt.err (!%p4014_p0)
}
 0x6a8   : > { %s4055_s11 = smov 128   ;;  %s4056_s14 = smov 8  }
 0x6a9   : > { %3905 = dma.vmem_to_hbm [thread:$0]  (%p4120_p5), %s4620_s20, 1024, %s4625_s28, %s4627_s29, %s4055_s11, %s4055_s11, %s4056_s14  }
 0x6aa PF: > { %p3911_p1 = scmp.ge.s32.totalorder %s4052_s18, 2  ;;  %s2945_s22 = sand.u32 1, %s4040_s15  }
 0x6ab   : > { %s2946_s23 = scalar_lea.sflag [#allocation3], %s2945_s22 }
 0x6ac   : > { %p3908_p2 = pnand %p3911_p1, %p4124_p6 }
 0x6ae   : > { %4035 = dma.done.wait (!%p3908_p2), %s2946_s23, 1024  }
 0x6af   : > { %4037 = vsyncadd (!%p3908_p2), %s2946_s23, 4294966272  ;;  %p14_p3 = scmp.ge.s32.totalorder %s4107_s21, 4   ;;  %s4675_s15 = smov %s4044_s16 }
 0x6b0   : > { %s4676_s16 = smov %s4048_s17  ;;  %s4677_s17 = smov %s4118_s24 }
 0x6b1   : > { %s4678_s18 = smov %s4107_s21  ;;  %16 = sbr.rel (!%p14_p3) target bundleno = 3 (0x3), region = 141 }
 0x6b8   :  { %2951 = vsyncpa [#allocation3], 1 }
 0x6b9   :  { %2953 = vsyncpa [#allocation3 + $0x1], 1 }

// kernel: tpu_custom_call.1
= control target key start
LH: loop header
LB: loop body
LE: loop exit
PB: predicated region body
PF: predicated region fallthrough
CT: control target
= control target key end

     0   :  { %s2943_s15 = smov 0   ;;  %s2945_s16 = smov 0   ;;  %s3536_s0 = inlined_call_operand.vmem [shape: f32[1000,32], index: 0, kind: input, shape index: {}]   ;;  %s3537_s1 = inlined_call_operand.vmem [shape: bf16[32,64], index: 1, kind: input, shape index: {}]   ;;  %s3538_s2 = inlined_call_operand.vmem [shape: bf16[64,64], index: 2, kind: input, shape index: {}]   ;;  %s3539_s3 = inlined_call_operand.vmem [shape: bf16[64,16], index: 3, kind: input, shape index: {}]   ;;  %s3540_s4 = inlined_call_operand.vmem [shape: f32[1000,16], index: 4, kind: output, shape index: {}]  }
   0x1   :  { %s2947_s17 = smov 0  }
   0x2 LB: > { %s2956_s18 = sadd.s32 4294967295, %s2884_s17   ;;  %s2958_s19 = sadd.s32 1, %s2884_s17   ;;  %s2884_s17 = sphi %s2947_s17, %s3549_s17   ;;  %s2880_s16 = sphi %s2945_s16, %s3548_s16   ;;  %s2876_s15 = sphi %s2943_s15, %s3547_s15  }
   0x3   : > { %s107_s20 = ssub.s32 %s2884_s17, %s2958_s19  ;;  %s110_s21 = sadd.s32 1, %s2880_s16 }
   0x4   : > { %p108_p0 = scmp.eq.s32.totalorder %s107_s20, 0  ;;  %p120_p1 = scmp.ne.s32.totalorder %s2880_s16, %s2876_s15 }
   0x5   : > { %p121_p2 = scmp.eq.s32.totalorder %s2956_s18, 1  ;;  %p2280_p3 = scmp.ge.s32.totalorder %s2884_s17, 1 }
   0x6   : > { %s2966_s22 = scalar_select %p108_p0, %s2880_s16, %s110_s21  }
   0x7   : > { %p2968_p4 = por %p121_p2, %p120_p1  ;;  %p171_p5 = scmp.lt.s32.totalorder %s2884_s17, 3 }
   0x9   : > { %p172_p6 = pnand %p2280_p3, %p171_p5 }
   0xa   : > { %v2820_v0 = vld [vmem:[%s3537_s1] sm:$0xff] (!%p172_p6)   ;;  %s2976_s26 = sshll.u32 (!%p172_p6), %s2956_s18, 6  ;;  %v2821_v1 = vld [vmem:[%s3537_s1 + $0x8] sm:$0xff] (!%p172_p6)   ;;  %vm340_vm0 = vcmask (!%p172_p6), 261120   ;;  %v2824_v38 = vld [vmem:[%s3538_s2 + $0x10] sm:$0xff] (!%p172_p6)   ;;  %vm846_vm1 = vcmask (!%p172_p6), 523264  }
   0xb   : > { %175 = sbr.rel (%p172_p6) target bundleno = 874 (0x36a), region = 36  ;;  %p205_p7 = scmp.lt.s32.totalorder (!%p172_p6), %s2976_s26, 124  ;;  %2516 = vmatprep.subr.bf16.mxu0 (!%p172_p6), %v2820_v0  ;;  %2728 = vmatprep.subr.bf16.mxu1 (!%p172_p6), %v2820_v0  ;;  %v2822_v2 = vld [vmem:[%s3538_s2] sm:$0xff] (!%p172_p6)   ;;  %v2823_v29 = vld [vmem:[%s3538_s2 + $0x8] sm:$0xff] (!%p172_p6)   ;;  %v2825_v40 = vld [vmem:[%s3538_s2 + $0x18] sm:$0xff] (!%p172_p6)   ;;  %vm1745_vm2 = vcmask (!%p172_p6), 130048  }
   0xc   : > { %2517 = vmatpush3.bf16.msra.mxu0 (!%p172_p6), %v2820_v0  ;;  %2730 = vmatpush3.bf16.msra.mxu1 (!%p172_p6), %v2820_v0  ;;  %s197_s5 = sand.u32 (!%p172_p6), 1, %s2876_s15  }
   0xd   : > { %2518 = vmatprep.subr.bf16.mxu0 (!%p172_p6), %v2821_v1  ;;  %2729 = vmatprep.subr.bf16.mxu1 (!%p172_p6), %v2821_v1 }
  0x10   : > { %2519 = vmatpush3.bf16.msra.mxu0 (!%p172_p6), %v2821_v1  ;;  %2731 = vmatpush3.bf16.msra.mxu1 (!%p172_p6), %v2821_v1 }
  0x11   : > { %2584 = vmatprep.subr.bf16.mxu1 (!%p172_p6), %v2822_v2 }
  0x12   : > { %s206_s29 = scalar_select %p205_p7, %s2976_s26, 124 }
  0x13   : > { %s1818_s15 = ssub.s32 (%p2968_p4), 125, %s2976_s26  ;;  %s2407_s8 = sshll.u32 (%p2968_p4), %s2956_s18, 9 }
  0x14   : > { %s2283_s6 = sshll.u32 %s206_s29, 3  ;;  %p1819_p8 = scmp.lt.s32.totalorder (%p2968_p4), %s1818_s15, 64 }
  0x15   : > { %s2989_s9 = scalar_lea.vmem %s3536_s0, %s2283_s6  ;;  %s2281_s6 = sshll.u32 %s197_s5, 9 }
  0x16   : > { %v232_v3 = vld [vmem:[%s2989_s9] sm:$0xff]  ;;  %v233_v4 = vld [vmem:[%s2989_s9 + $0x8] sm:$0xff]  ;;  %v234_v5 = vld [vmem:[%s2989_s9 + $0x10] sm:$0xff]  ;;  %s3200_s7 = scalar_lea.vmem [#allocation2], %s2281_s6   ;;  %s3337_s11 = scalar_lea.vmem (%p2968_p4), %s3540_s4, %s2407_s8  }
  0x17   : > { %v296_v6 = vpack.c.bf16 %v233_v4, %v232_v3  ;;  %v235_v7 = vld [vmem:[%s2989_s9 + $0x18] sm:$0xff]  ;;  %v236_v8 = vld [vmem:[%s2989_s9 + $0x20] sm:$0xff]  ;;  %v237_v9 = vld [vmem:[%s2989_s9 + $0x28] sm:$0xff] }
  0x18   : > { %v297_v10 = vpack.c.bf16 %v235_v7, %v234_v5  ;;  %v298_v11 = vpack.c.bf16 %v237_v9, %v236_v8  ;;  %v238_v12 = vld [vmem:[%s2989_s9 + $0x30] sm:$0xff]  ;;  %v239_v13 = vld [vmem:[%s2989_s9 + $0x38] sm:$0xff]  ;;  %v240_v14 = vld [vmem:[%s2989_s9 + $0x40] sm:$0xff] }
  0x19   : > { %2520 = vmatprep.mubr.msk.bf16.mxu0 %vm340_vm0, %v296_v6  ;;  %v241_v15 = vld [vmem:[%s2989_s9 + $0x48] sm:$0xff]  ;;  %v299_v16 = vpack.c.bf16 %v239_v13, %v238_v12  ;;  %v264_v18 = vld [vmem:[%s2989_s9 + $0x100] sm:$0xff]  ;;  %v266_v20 = vld [vmem:[%s2989_s9 + $0x110] sm:$0xff] }
  0x1a   : > { %2521 = vmatmul.mubr.msk.bf16.vlgmr.msra.gmra.mrb[0].mxu0 %vm340_vm0, %v297_v10  ;;  %v300_v17 = vpack.c.bf16 %v241_v15, %v240_v14  ;;  %v265_v19 = vld [vmem:[%s2989_s9 + $0x108] sm:$0xff]  ;;  %v267_v21 = vld [vmem:[%s2989_s9 + $0x118] sm:$0xff]  ;;  %v268_v24 = vld [vmem:[%s2989_s9 + $0x120] sm:$0xff] }
  0x1b   : > { %2524 = vmatprep.mubr.msk.bf16.mxu0 %vm340_vm0, %v298_v11  ;;  %v312_v22 = vpack.c.bf16 %v265_v19, %v264_v18  ;;  %v313_v23 = vpack.c.bf16 %v267_v21, %v266_v20  ;;  %v269_v25 = vld [vmem:[%s2989_s9 + $0x128] sm:$0xff]  ;;  %v242_v26 = vld [vmem:[%s2989_s9 + $0x50] sm:$0xff]  ;;  %v243_v27 = vld [vmem:[%s2989_s9 + $0x58] sm:$0xff] }
  0x1c   : > { %v314_v28 = vpack.c.bf16 %v269_v25, %v268_v24  ;;  %v244_v30 = vld [vmem:[%s2989_s9 + $0x60] sm:$0xff]  ;;  %v245_v31 = vld [vmem:[%s2989_s9 + $0x68] sm:$0xff]  ;;  %v301_v32 = vpack.c.bf16 %v243_v27, %v242_v26  ;;  %v270_v33 = vld [vmem:[%s2989_s9 + $0x130] sm:$0xff] }
  0x1d   : > { %2552 = vmatprep.mubr.msk.bf16.mxu1 %vm340_vm0, %v312_v22  ;;  %v271_v34 = vld [vmem:[%s2989_s9 + $0x138] sm:$0xff]  ;;  %v302_v35 = vpack.c.bf16 %v245_v31, %v244_v30  ;;  %v272_v36 = vld [vmem:[%s2989_s9 + $0x140] sm:$0xff]  ;;  %v273_v37 = vld [vmem:[%s2989_s9 + $0x148] sm:$0xff] }
  0x1e   : > { %2553 = vmatmul.mubr.msk.bf16.vlgmr.msra.gmra.mrb[0].mxu1 %vm340_vm0, %v313_v23  ;;  %v315_v39 = vpack.c.bf16 %v271_v34, %v270_v33  ;;  %v246_v41 = vld [vmem:[%s2989_s9 + $0x70] sm:$0xff]  ;;  %v247_v42 = vld [vmem:[%s2989_s9 + $0x78] sm:$0xff]  ;;  %v248_v43 = vld [vmem:[%s2989_s9 + $0x80] sm:$0xff]  ;;  %v316_v44 = vpack.c.bf16 %v273_v37, %v272_v36 }
  0x1f   : > { %2556 = vmatprep.mubr.msk.bf16.mxu1 %vm340_vm0, %v314_v28  ;;  %2585 = vmatpush3.bf16.msra.mxu1 %v2822_v2  ;;  %v249_v45 = vld [vmem:[%s2989_s9 + $0x88] sm:$0xff]  ;;  %v303_v46 = vpack.c.bf16 %v247_v42, %v246_v41  ;;  %v274_v47 = vld [vmem:[%s2989_s9 + $0x150] sm:$0xff]  ;;  %v275_v48 = vld [vmem:[%s2989_s9 + $0x158] sm:$0xff] }
  0x20   : > { %2586 = vmatprep.subr.bf16.mxu1 %v2823_v29  ;;  %v304_v49 = vpack.c.bf16 %v249_v45, %v248_v43  ;;  %v276_v50 = vld [vmem:[%s2989_s9 + $0x160] sm:$0xff]  ;;  %v277_v51 = vld [vmem:[%s2989_s9 + $0x168] sm:$0xff]  ;;  %v317_v52 = vpack.c.bf16 %v275_v48, %v274_v47  ;;  %v250_v54 = vld [vmem:[%s2989_s9 + $0x90] sm:$0xff] }
  0x21   : > { %v318_v53 = vpack.c.bf16 %v277_v51, %v276_v50  ;;  %v251_v55 = vld [vmem:[%s2989_s9 + $0x98] sm:$0xff]  ;;  %v252_v56 = vld [vmem:[%s2989_s9 + $0xa0] sm:$0xff]  ;;  %v253_v57 = vld [vmem:[%s2989_s9 + $0xa8] sm:$0xff] }
  0x22   : > { %2525 = vmatmul.mubr.msk.bf16.gmra.mrb[4].mxu0 %vm340_vm0, %v299_v16  ;;  %v305_v58 = vpack.c.bf16 %v251_v55, %v250_v54  ;;  %v278_v59 = vld [vmem:[%s2989_s9 + $0x170] sm:$0xff]  ;;  %v279_v60 = vld [vmem:[%s2989_s9 + $0x178] sm:$0xff]  ;;  %v306_v61 = vpack.c.bf16 %v253_v57, %v252_v56  ;;  %v280_v62 = vld [vmem:[%s2989_s9 + $0x180] sm:$0xff] }
  0x23   : > { %2528 = vmatprep.mubr.msk.bf16.mxu0 %vm340_vm0, %v300_v17  ;;  %2587 = vmatpush3.bf16.msra.mxu1 %v2823_v29  ;;  %v281_v63 = vld [vmem:[%s2989_s9 + $0x188] sm:$0xff]  ;;  %v319_v0 = vpack.c.bf16 %v279_v60, %v278_v59  ;;  %v254_v2 = vld [vmem:[%s2989_s9 + $0xb0] sm:$0xff]  ;;  %v255_v3 = vld [vmem:[%s2989_s9 + $0xb8] sm:$0xff] }
  0x24   : > { %2588 = vmatprep.subr.bf16.mxu1 %v2824_v38  ;;  %v320_v1 = vpack.c.bf16 %v281_v63, %v280_v62  ;;  %v256_v4 = vld [vmem:[%s2989_s9 + $0xc0] sm:$0xff]  ;;  %v257_v5 = vld [vmem:[%s2989_s9 + $0xc8] sm:$0xff]  ;;  %v307_v6 = vpack.c.bf16 %v255_v3, %v254_v2  ;;  %v282_v7 = vld [vmem:[%s2989_s9 + $0x190] sm:$0xff] }
  0x25   : > { %v283_v8 = vld [vmem:[%s2989_s9 + $0x198] sm:$0xff]  ;;  %v308_v9 = vpack.c.bf16 %v257_v5, %v256_v4  ;;  %v284_v10 = vld [vmem:[%s2989_s9 + $0x1a0] sm:$0xff]  ;;  %v285_v11 = vld [vmem:[%s2989_s9 + $0x1a8] sm:$0xff] }
  0x26   : > { %2557 = vmatmul.mubr.msk.bf16.gmra.mrb[4].mxu1 %vm340_vm0, %v315_v39  ;;  %v321_v12 = vpack.c.bf16 %v283_v8, %v282_v7  ;;  %v322_v13 = vpack.c.bf16 %v285_v11, %v284_v10  ;;  %v258_v14 = vld [vmem:[%s2989_s9 + $0xd0] sm:$0xff]  ;;  %v259_v15 = vld [vmem:[%s2989_s9 + $0xd8] sm:$0xff]  ;;  %v260_v16 = vld [vmem:[%s2989_s9 + $0xe0] sm:$0xff] }
  0x27   : > { %2560 = vmatprep.mubr.msk.bf16.mxu1 %vm340_vm0, %v316_v44  ;;  %2589 = vmatpush3.bf16.msra.mxu1 %v2824_v38  ;;  %v261_v17 = vld [vmem:[%s2989_s9 + $0xe8] sm:$0xff]  ;;  %v309_v18 = vpack.c.bf16 %v259_v15, %v258_v14  ;;  %v286_v19 = vld [vmem:[%s2989_s9 + $0x1b0] sm:$0xff]  ;;  %v287_v20 = vld [vmem:[%s2989_s9 + $0x1b8] sm:$0xff] }
  0x28   : > { %2590 = vmatprep.subr.bf16.mxu1 %v2825_v40  ;;  %v310_v21 = vpack.c.bf16 %v261_v17, %v260_v16  ;;  %v288_v22 = vld [vmem:[%s2989_s9 + $0x1c0] sm:$0xff]  ;;  %v289_v23 = vld [vmem:[%s2989_s9 + $0x1c8] sm:$0xff]  ;;  %v323_v24 = vpack.c.bf16 %v287_v20, %v286_v19  ;;  %v262_v26 = vld [vmem:[%s2989_s9 + $0xf0] sm:$0xff] }
  0x29   : > { %v324_v25 = vpack.c.bf16 %v289_v23, %v288_v22  ;;  %v263_v27 = vld [vmem:[%s2989_s9 + $0xf8] sm:$0xff]  ;;  %v290_v29 = vld [vmem:[%s2989_s9 + $0x1d0] sm:$0xff]  ;;  %v292_v31 = vld [vmem:[%s2989_s9 + $0x1e0] sm:$0xff] }
  0x2a   : > { %2529 = vmatmul.mubr.msk.bf16.gmra.mrb[8].mxu0 %vm340_vm0, %v301_v32  ;;  %v311_v28 = vpack.c.bf16 %v263_v27, %v262_v26  ;;  %v291_v30 = vld [vmem:[%s2989_s9 + $0x1d8] sm:$0xff]  ;;  %v293_v32 = vld [vmem:[%s2989_s9 + $0x1e8] sm:$0xff] }
  0x2b   : > { %2532 = vmatprep.mubr.msk.bf16.mxu0 %vm340_vm0, %v302_v35  ;;  %2591 = vmatpush3.bf16.msra.mxu1 %v2825_v40  ;;  %v325_v33 = vpack.c.bf16 %v291_v30, %v290_v29  ;;  %v326_v34 = vpack.c.bf16 %v293_v32, %v292_v31  ;;  %v294_v35 = vld [vmem:[%s2989_s9 + $0x1f0] sm:$0xff]  ;;  %v295_v36 = vld [vmem:[%s2989_s9 + $0x1f8] sm:$0xff]  ;;  %v2826_v40 = vld [vmem:[%s3539_s3] sm:$0xff]  }
  0x2c   : > { %v327_v37 = vpack.c.bf16 %v295_v36, %v294_v35  ;;  %v2827_v41 = vld [vmem:[%s3539_s3 + $0x8] sm:$0xff]   ;;  %2656 = vmatprep.subr.bf16.mxu0 %v2826_v40 }
  0x2d   : > { %2657 = vmatpush3.bf16.msra.mxu0 %v2826_v40 }
  0x2e   : > { %2561 = vmatmul.mubr.msk.bf16.gmra.mrb[8].mxu1 %vm340_vm0, %v317_v52  ;;  %2658 = vmatprep.subr.bf16.mxu0 %v2827_v41 }
  0x2f   : > { %2564 = vmatprep.mubr.msk.bf16.mxu1 %vm340_vm0, %v318_v53  ;;  %v2829_v53 = vld [vmem:[%s3539_s3 + $0x18] sm:$0xff]  }
  0x31   : > { %2659 = vmatpush3.bf16.msra.mxu0 %v2827_v41 }
  0x32   : > { %2533 = vmatmul.mubr.msk.bf16.gmra.mrb[12].mxu0 %vm340_vm0, %v303_v46 }
  0x33   : > { %2536 = vmatprep.mubr.msk.bf16.mxu0 %vm340_vm0, %v304_v49  ;;  %v2828_v49 = vld [vmem:[%s3539_s3 + $0x10] sm:$0xff]  }
  0x34   : > { %2660 = vmatprep.subr.bf16.mxu0 %v2828_v49 }
  0x35   : > { %2661 = vmatpush3.bf16.msra.mxu0 %v2828_v49 }
  0x36   : > { %2565 = vmatmul.mubr.msk.bf16.gmra.mrb[12].mxu1 %vm340_vm0, %v319_v0  ;;  %2662 = vmatprep.subr.bf16.mxu0 %v2829_v53 }
  0x37   : > { %2568 = vmatprep.mubr.msk.bf16.mxu1 %vm340_vm0, %v320_v1 }
  0x39   : > { %2663 = vmatpush3.bf16.msra.mxu0 %v2829_v53 }
  0x3a   : > { %2537 = vmatmul.mubr.msk.bf16.gmra.mrb[16].mxu0 %vm340_vm0, %v305_v58 }
  0x3b   : > { %2540 = vmatprep.mubr.msk.bf16.mxu0 %vm340_vm0, %v306_v61 }
  0x3e   : > { %2569 = vmatmul.mubr.msk.bf16.gmra.mrb[16].mxu1 %vm340_vm0, %v321_v12 }
  0x3f   : > { %2572 = vmatprep.mubr.msk.bf16.mxu1 %vm340_vm0, %v322_v13 }
  0x42   : > { %2541 = vmatmul.mubr.msk.bf16.gmra.mrb[20].mxu0 %vm340_vm0, %v307_v6 }
  0x43   : > { %2544 = vmatprep.mubr.msk.bf16.mxu0 %vm340_vm0, %v308_v9 }
  0x46   : > { %2573 = vmatmul.mubr.msk.bf16.gmra.mrb[20].mxu1 %vm340_vm0, %v323_v24 }
  0x47   : > { %2576 = vmatprep.mubr.msk.bf16.mxu1 %vm340_vm0, %v324_v25 }
  0x4a   : > { %2545 = vmatmul.mubr.msk.bf16.gmra.mrb[24].mxu0 %vm340_vm0, %v309_v18 }
  0x4b   : > { %2548 = vmatprep.mubr.msk.bf16.mxu0 %vm340_vm0, %v310_v21 }
  0x4e   : > { %2577 = vmatmul.mubr.msk.bf16.gmra.mrb[24].mxu1 %vm340_vm0, %v325_v33 }
  0x4f   : > { %2580 = vmatprep.mubr.msk.bf16.mxu1 %vm340_vm0, %v326_v34 }
  0x52   : > { %2549 = vmatmul.mubr.msk.bf16.gmra.mrb[28].mxu0 %vm340_vm0, %v311_v28 }
  0x56   : > { %2581 = vmatmul.mubr.msk.bf16.gmra.mrb[28].mxu1 %vm340_vm0, %v327_v37 }
  0xed   : > { %v2522_v38 = vpop.f32.mrb[0].mxu0 }
  0xee   : > { %v471_v39 = vpop.f32.mrb[1].mxu0  ;;  %v728_v43 = vmax.f32 %v2522_v38, 0.0 }
  0xef   : > { %v2523_v42 = vpop.f32.mrb[2].mxu0  ;;  %v726_v46 = vmax.f32 %v471_v39, 0.0 }
  0xf0   : > { %v729_v44 = vmax.f32 %v2523_v42, 0.0  ;;  %v474_v45 = vpop.f32.mrb[3].mxu0 }
  0xf1   : > { %v727_v47 = vmax.f32 %v474_v45, 0.0  ;;  %v2554_v58 = vpop.f32.mrb[0].mxu1 }
  0xf2   : > { %v791_v48 = vpack.c.bf16 %v729_v44, %v728_v43  ;;  %v760_v61 = vmax.f32 %v2554_v58, 0.0  ;;  %v599_v62 = vpop.f32.mrb[1].mxu1 }
  0xf3   : > { %v790_v50 = vpack.c.bf16 %v727_v47, %v726_v46  ;;  %v758_v0 = vmax.f32 %v599_v62, 0.0  ;;  %v2555_v1 = vpop.f32.mrb[2].mxu1 }
  0xf4   : > { %v761_v3 = vmax.f32 %v2555_v1, 0.0  ;;  %v602_v4 = vpop.f32.mrb[3].mxu1 }
  0xf5   : > { %v2526_v51 = vpop.f32.mrb[4].mxu0  ;;  %2592 = vmatprep.mubr.msk.bf16.mxu1 %vm846_vm1, %v790_v50  ;;  %v759_v5 = vmax.f32 %v602_v4, 0.0 }
  0xf6   : > { %v487_v52 = vpop.f32.mrb[5].mxu0  ;;  %2593 = vmatmul.mubr.msk.bf16.vlgmr.msra.gmra.mrb[32].mxu1 %vm846_vm1, %v791_v48  ;;  %v732_v55 = vmax.f32 %v2526_v51, 0.0  ;;  %v3111_v7 = vpack.c.bf16 %v761_v3, %v760_v61 }
  0xf7   : > { %v2527_v54 = vpop.f32.mrb[6].mxu0  ;;  %v730_v59 = vmax.f32 %v487_v52, 0.0  ;;  %v3114_v9 = vpack.c.bf16 %v759_v5, %v758_v0 }
  0xf8   : > { %v733_v56 = vmax.f32 %v2527_v54, 0.0  ;;  %v490_v57 = vpop.f32.mrb[7].mxu0 }
  0xf9   : > { %v731_v60 = vmax.f32 %v490_v57, 0.0  ;;  %v2558_v14 = vpop.f32.mrb[4].mxu1 }
  0xfa   : > { %v793_v63 = vpack.c.bf16 %v733_v56, %v732_v55  ;;  %v764_v17 = vmax.f32 %v2558_v14, 0.0  ;;  %v615_v18 = vpop.f32.mrb[5].mxu1 }
  0xfb   : > { %v792_v2 = vpack.c.bf16 %v731_v60, %v730_v59  ;;  %v762_v20 = vmax.f32 %v615_v18, 0.0  ;;  %v2559_v21 = vpop.f32.mrb[6].mxu1 }
  0xfc   : > { %v765_v23 = vmax.f32 %v2559_v21, 0.0  ;;  %v618_v24 = vpop.f32.mrb[7].mxu1 }
  0xfd   : > { %v2530_v6 = vpop.f32.mrb[8].mxu0  ;;  %2596 = vmatprep.mubr.msk.bf16.mxu1 %vm846_vm1, %v792_v2  ;;  %v763_v25 = vmax.f32 %v618_v24, 0.0 }
  0xfe   : > { %v503_v8 = vpop.f32.mrb[9].mxu0  ;;  %2597 = vmatmul.mubr.msk.bf16.gmra.mrb[36].mxu1 %vm846_vm1, %v793_v63  ;;  %v736_v11 = vmax.f32 %v2530_v6, 0.0  ;;  %v3117_v27 = vpack.c.bf16 %v765_v23, %v764_v17 }
  0xff   : > { %v2531_v10 = vpop.f32.mrb[10].mxu0  ;;  %v734_v15 = vmax.f32 %v503_v8, 0.0  ;;  %v3120_v29 = vpack.c.bf16 %v763_v25, %v762_v20 }
 0x100   : > { %v737_v12 = vmax.f32 %v2531_v10, 0.0  ;;  %v506_v13 = vpop.f32.mrb[11].mxu0 }
 0x101   : > { %v735_v16 = vmax.f32 %v506_v13, 0.0  ;;  %v2562_v34 = vpop.f32.mrb[8].mxu1 }
 0x102   : > { %v795_v19 = vpack.c.bf16 %v737_v12, %v736_v11  ;;  %v768_v37 = vmax.f32 %v2562_v34, 0.0  ;;  %v631_v38 = vpop.f32.mrb[9].mxu1 }
 0x103   : > { %v794_v22 = vpack.c.bf16 %v735_v16, %v734_v15  ;;  %v766_v40 = vmax.f32 %v631_v38, 0.0  ;;  %v2563_v41 = vpop.f32.mrb[10].mxu1 }
 0x104   : > { %v769_v43 = vmax.f32 %v2563_v41, 0.0  ;;  %v634_v44 = vpop.f32.mrb[11].mxu1 }
 0x105   : > { %v2534_v26 = vpop.f32.mrb[12].mxu0  ;;  %2600 = vmatprep.mubr.msk.bf16.mxu1 %vm846_vm1, %v794_v22  ;;  %v767_v45 = vmax.f32 %v634_v44, 0.0 }
 0x106   : > { %v519_v28 = vpop.f32.mrb[13].mxu0  ;;  %2601 = vmatmul.mubr.msk.bf16.gmra.mrb[40].mxu1 %vm846_vm1, %v795_v19  ;;  %v740_v31 = vmax.f32 %v2534_v26, 0.0  ;;  %v3123_v47 = vpack.c.bf16 %v769_v43, %v768_v37 }
 0x107   : > { %v2535_v30 = vpop.f32.mrb[14].mxu0  ;;  %v738_v35 = vmax.f32 %v519_v28, 0.0  ;;  %v3126_v49 = vpack.c.bf16 %v767_v45, %v766_v40 }
 0x108   : > { %v741_v32 = vmax.f32 %v2535_v30, 0.0  ;;  %v522_v33 = vpop.f32.mrb[15].mxu0 }
 0x109   : > { %v739_v36 = vmax.f32 %v522_v33, 0.0  ;;  %v2566_v54 = vpop.f32.mrb[12].mxu1 }
 0x10a   : > { %v797_v39 = vpack.c.bf16 %v741_v32, %v740_v31  ;;  %v772_v57 = vmax.f32 %v2566_v54, 0.0  ;;  %v647_v58 = vpop.f32.mrb[13].mxu1 }
 0x10b   : > { %v796_v42 = vpack.c.bf16 %v739_v36, %v738_v35  ;;  %v770_v60 = vmax.f32 %v647_v58, 0.0  ;;  %v2567_v61 = vpop.f32.mrb[14].mxu1 }
 0x10c   : > { %v773_v63 = vmax.f32 %v2567_v61, 0.0  ;;  %v650_v0 = vpop.f32.mrb[15].mxu1 }
 0x10d   : > { %v2538_v46 = vpop.f32.mrb[16].mxu0  ;;  %2604 = vmatprep.mubr.msk.bf16.mxu1 %vm846_vm1, %v796_v42  ;;  %v771_v1 = vmax.f32 %v650_v0, 0.0 }
 0x10e   : > { %v535_v48 = vpop.f32.mrb[17].mxu0  ;;  %2605 = vmatmul.mubr.msk.bf16.gmra.mrb[44].mxu1 %vm846_vm1, %v797_v39  ;;  %v744_v51 = vmax.f32 %v2538_v46, 0.0  ;;  %v3129_v3 = vpack.c.bf16 %v773_v63, %v772_v57 }
 0x10f   : > { %v2539_v50 = vpop.f32.mrb[18].mxu0  ;;  %v742_v55 = vmax.f32 %v535_v48, 0.0  ;;  %v3132_v5 = vpack.c.bf16 %v771_v1, %v770_v60 }
 0x110   : > { %v745_v52 = vmax.f32 %v2539_v50, 0.0  ;;  %v538_v53 = vpop.f32.mrb[19].mxu0 }
 0x111   : > { %v743_v56 = vmax.f32 %v538_v53, 0.0  ;;  %v2570_v12 = vpop.f32.mrb[16].mxu1 }
 0x112   : > { %v799_v59 = vpack.c.bf16 %v745_v52, %v744_v51  ;;  %v776_v15 = vmax.f32 %v2570_v12, 0.0  ;;  %v663_v16 = vpop.f32.mrb[17].mxu1 }
 0x113   : > { %v798_v62 = vpack.c.bf16 %v743_v56, %v742_v55  ;;  %v774_v18 = vmax.f32 %v663_v16, 0.0  ;;  %v2571_v19 = vpop.f32.mrb[18].mxu1 }
 0x114   : > { %v777_v21 = vmax.f32 %v2571_v19, 0.0  ;;  %v666_v22 = vpop.f32.mrb[19].mxu1 }
 0x115   : > { %v2542_v2 = vpop.f32.mrb[20].mxu0  ;;  %2608 = vmatprep.mubr.msk.bf16.mxu1 %vm846_vm1, %v798_v62  ;;  %v775_v23 = vmax.f32 %v666_v22, 0.0 }
 0x116   : > { %v551_v4 = vpop.f32.mrb[21].mxu0  ;;  %2609 = vmatmul.mubr.msk.bf16.gmra.mrb[48].mxu1 %vm846_vm1, %v799_v59  ;;  %v748_v8 = vmax.f32 %v2542_v2, 0.0  ;;  %v3135_v25 = vpack.c.bf16 %v777_v21, %v776_v15 }
 0x117   : > { %v2543_v6 = vpop.f32.mrb[22].mxu0  ;;  %v746_v13 = vmax.f32 %v551_v4, 0.0  ;;  %v814_v28 = vpack.c.bf16 %v775_v23, %v774_v18 }
 0x118   : > { %v749_v10 = vmax.f32 %v2543_v6, 0.0  ;;  %v554_v11 = vpop.f32.mrb[23].mxu0 }
 0x119   : > { %v747_v14 = vmax.f32 %v554_v11, 0.0  ;;  %v2574_v34 = vpop.f32.mrb[20].mxu1 }
 0x11a   : > { %v801_v17 = vpack.c.bf16 %v749_v10, %v748_v8  ;;  %v780_v37 = vmax.f32 %v2574_v34, 0.0  ;;  %v679_v38 = vpop.f32.mrb[21].mxu1 }
 0x11b   : > { %v800_v20 = vpack.c.bf16 %v747_v14, %v746_v13  ;;  %v778_v40 = vmax.f32 %v679_v38, 0.0  ;;  %v2575_v41 = vpop.f32.mrb[22].mxu1 }
 0x11c   : > { %v781_v43 = vmax.f32 %v2575_v41, 0.0  ;;  %v682_v44 = vpop.f32.mrb[23].mxu1 }
 0x11d   : > { %v2546_v24 = vpop.f32.mrb[24].mxu0  ;;  %2612 = vmatprep.mubr.msk.bf16.mxu1 %vm846_vm1, %v800_v20  ;;  %v779_v45 = vmax.f32 %v682_v44, 0.0 }
 0x11e   : > { %v567_v26 = vpop.f32.mrb[25].mxu0  ;;  %2613 = vmatmul.mubr.msk.bf16.gmra.mrb[52].mxu1 %vm846_vm1, %v801_v17  ;;  %v752_v31 = vmax.f32 %v2546_v24, 0.0  ;;  %v817_v48 = vpack.c.bf16 %v781_v43, %v780_v37 }
 0x11f   : > { %v2547_v30 = vpop.f32.mrb[26].mxu0  ;;  %v750_v35 = vmax.f32 %v567_v26, 0.0  ;;  %v816_v51 = vpack.c.bf16 %v779_v45, %v778_v40 }
 0x120   : > { %v753_v32 = vmax.f32 %v2547_v30, 0.0  ;;  %v570_v33 = vpop.f32.mrb[27].mxu0 }
 0x121   : > { %v751_v36 = vmax.f32 %v570_v33, 0.0  ;;  %v2578_v56 = vpop.f32.mrb[24].mxu1 }
 0x122   : > { %v803_v39 = vpack.c.bf16 %v753_v32, %v752_v31  ;;  %v784_v59 = vmax.f32 %v2578_v56, 0.0  ;;  %v695_v60 = vpop.f32.mrb[25].mxu1 }
 0x123   : > { %v802_v42 = vpack.c.bf16 %v751_v36, %v750_v35  ;;  %v782_v62 = vmax.f32 %v695_v60, 0.0  ;;  %v2579_v63 = vpop.f32.mrb[26].mxu1 }
 0x124   : > { %v785_v1 = vmax.f32 %v2579_v63, 0.0  ;;  %v698_v2 = vpop.f32.mrb[27].mxu1 }
 0x125   : > { %v2550_v46 = vpop.f32.mrb[28].mxu0  ;;  %2616 = vmatprep.mubr.msk.bf16.mxu1 %vm846_vm1, %v802_v42  ;;  %v783_v4 = vmax.f32 %v698_v2, 0.0 }
 0x126   : > { %v583_v50 = vpop.f32.mrb[29].mxu0  ;;  %2617 = vmatmul.mubr.msk.bf16.gmra.mrb[56].mxu1 %vm846_vm1, %v803_v39  ;;  %v756_v53 = vmax.f32 %v2550_v46, 0.0  ;;  %v819_v6 = vpack.c.bf16 %v785_v1, %v784_v59 }
 0x127   : > { %v2551_v52 = vpop.f32.mrb[30].mxu0  ;;  %v754_v57 = vmax.f32 %v583_v50, 0.0  ;;  %v818_v8 = vpack.c.bf16 %v783_v4, %v782_v62 }
 0x128   : > { %v757_v54 = vmax.f32 %v2551_v52, 0.0  ;;  %v586_v55 = vpop.f32.mrb[31].mxu0 }
 0x129   : > { %v755_v58 = vmax.f32 %v586_v55, 0.0  ;;  %v2582_v10 = vpop.f32.mrb[28].mxu1 }
 0x12a   : > { %v805_v61 = vpack.c.bf16 %v757_v54, %v756_v53  ;;  %v788_v11 = vmax.f32 %v2582_v10, 0.0  ;;  %v711_v12 = vpop.f32.mrb[29].mxu1 }
 0x12b   : > { %v804_v0 = vpack.c.bf16 %v755_v58, %v754_v57  ;;  %v786_v13 = vmax.f32 %v711_v12, 0.0  ;;  %v2583_v14 = vpop.f32.mrb[30].mxu1 }
 0x12c   : > { %v789_v15 = vmax.f32 %v2583_v14, 0.0  ;;  %v714_v16 = vpop.f32.mrb[31].mxu1 }
 0x12d   : > { %2620 = vmatprep.mubr.msk.bf16.mxu1 %vm846_vm1, %v804_v0  ;;  %v787_v17 = vmax.f32 %v714_v16, 0.0 }
 0x12e   : > { %2621 = vmatmul.mubr.msk.bf16.gmra.mrb[60].mxu1 %vm846_vm1, %v805_v61  ;;  %v821_v18 = vpack.c.bf16 %v789_v15, %v788_v11 }
 0x12f   : > { %2624 = vmatprep.mubr.msk.bf16.mxu1 %vm846_vm1, %v3114_v9  ;;  %v820_v19 = vpack.c.bf16 %v787_v17, %v786_v13 }
 0x136   : > { %2625 = vmatmul.mubr.msk.bf16.gmra.mrb[64].mxu1 %vm846_vm1, %v3111_v7 }
 0x137   : > { %2628 = vmatprep.mubr.msk.bf16.mxu1 %vm846_vm1, %v3120_v29 }
 0x13e   : > { %2629 = vmatmul.mubr.msk.bf16.gmra.mrb[68].mxu1 %vm846_vm1, %v3117_v27 }
 0x13f   : > { %2632 = vmatprep.mubr.msk.bf16.mxu1 %vm846_vm1, %v3126_v49 }
 0x146   : > { %2633 = vmatmul.mubr.msk.bf16.gmra.mrb[72].mxu1 %vm846_vm1, %v3123_v47 }
 0x147   : > { %2636 = vmatprep.mubr.msk.bf16.mxu1 %vm846_vm1, %v3132_v5 }
 0x14e   : > { %2637 = vmatmul.mubr.msk.bf16.gmra.mrb[76].mxu1 %vm846_vm1, %v3129_v3 }
 0x14f   : > { %2640 = vmatprep.mubr.msk.bf16.mxu1 %vm846_vm1, %v814_v28 }
 0x156   : > { %2641 = vmatmul.mubr.msk.bf16.gmra.mrb[80].mxu1 %vm846_vm1, %v3135_v25 }
 0x157   : > { %2644 = vmatprep.mubr.msk.bf16.mxu1 %vm846_vm1, %v816_v51 }
 0x15e   : > { %2645 = vmatmul.mubr.msk.bf16.gmra.mrb[84].mxu1 %vm846_vm1, %v817_v48 }
 0x15f   : > { %2648 = vmatprep.mubr.msk.bf16.mxu1 %vm846_vm1, %v818_v8 }
 0x166   : > { %2649 = vmatmul.mubr.msk.bf16.gmra.mrb[88].mxu1 %vm846_vm1, %v819_v6 }
 0x167   : > { %2652 = vmatprep.mubr.msk.bf16.mxu1 %vm846_vm1, %v820_v19 }
 0x16e   : > { %2653 = vmatmul.mubr.msk.bf16.gmra.mrb[92].mxu1 %vm846_vm1, %v821_v18 }
 0x1c9   : > { %v2594_v7 = vpop.f32.mrb[32].mxu1 }
 0x1ca   : > { %v977_v9 = vpop.f32.mrb[33].mxu1  ;;  %v1234_v29 = vmax.f32 %v2594_v7, 0.0 }
 0x1cb   : > { %v2595_v27 = vpop.f32.mrb[34].mxu1  ;;  %v1232_v3 = vmax.f32 %v977_v9, 0.0 }
 0x1cc   : > { %v1235_v47 = vmax.f32 %v2595_v27, 0.0  ;;  %v980_v49 = vpop.f32.mrb[35].mxu1 }
 0x1cd   : > { %v1233_v5 = vmax.f32 %v980_v49, 0.0 }
 0x1ce   : > { %v1297_v20 = vpack.c.bf16 %v1235_v47, %v1234_v29 }
 0x1cf   : > { %v1296_v21 = vpack.c.bf16 %v1233_v5, %v1232_v3 }
 0x1d1   : > { %v2598_v22 = vpop.f32.mrb[36].mxu1  ;;  %2664 = vmatprep.mubr.msk.bf16.mxu0 %vm846_vm1, %v1296_v21 }
 0x1d2   : > { %v993_v23 = vpop.f32.mrb[37].mxu1  ;;  %2665 = vmatmul.mubr.msk.bf16.vlgmr.msra.gmra.mrb[32].mxu0 %vm846_vm1, %v1297_v20  ;;  %v1238_v25 = vmax.f32 %v2598_v22, 0.0 }
 0x1d3   : > { %v2599_v24 = vpop.f32.mrb[38].mxu1  ;;  %v1236_v30 = vmax.f32 %v993_v23, 0.0 }
 0x1d4   : > { %v1239_v26 = vmax.f32 %v2599_v24, 0.0  ;;  %v996_v28 = vpop.f32.mrb[39].mxu1 }
 0x1d5   : > { %v1237_v31 = vmax.f32 %v996_v28, 0.0 }
 0x1d6   : > { %v1299_v32 = vpack.c.bf16 %v1239_v26, %v1238_v25 }
 0x1d7   : > { %v1298_v33 = vpack.c.bf16 %v1237_v31, %v1236_v30 }
 0x1d9   : > { %v2602_v34 = vpop.f32.mrb[40].mxu1  ;;  %2668 = vmatprep.mubr.msk.bf16.mxu0 %vm846_vm1, %v1298_v33 }
 0x1da   : > { %v1009_v35 = vpop.f32.mrb[41].mxu1  ;;  %2669 = vmatmul.mubr.msk.bf16.gmra.mrb[36].mxu0 %vm846_vm1, %v1299_v32  ;;  %v1242_v37 = vmax.f32 %v2602_v34, 0.0 }
 0x1db   : > { %v2603_v36 = vpop.f32.mrb[42].mxu1  ;;  %v1240_v40 = vmax.f32 %v1009_v35, 0.0 }
 0x1dc   : > { %v1243_v38 = vmax.f32 %v2603_v36, 0.0  ;;  %v1012_v39 = vpop.f32.mrb[43].mxu1 }
 0x1dd   : > { %v1241_v41 = vmax.f32 %v1012_v39, 0.0 }
 0x1de   : > { %v1301_v42 = vpack.c.bf16 %v1243_v38, %v1242_v37 }
 0x1df   : > { %v1300_v43 = vpack.c.bf16 %v1241_v41, %v1240_v40 }
 0x1e1   : > { %v2606_v44 = vpop.f32.mrb[44].mxu1  ;;  %2672 = vmatprep.mubr.msk.bf16.mxu0 %vm846_vm1, %v1300_v43 }
 0x1e2   : > { %v1025_v45 = vpop.f32.mrb[45].mxu1  ;;  %2673 = vmatmul.mubr.msk.bf16.gmra.mrb[40].mxu0 %vm846_vm1, %v1301_v42  ;;  %v1246_v48 = vmax.f32 %v2606_v44, 0.0 }
 0x1e3   : > { %v2607_v46 = vpop.f32.mrb[46].mxu1  ;;  %v1244_v52 = vmax.f32 %v1025_v45, 0.0 }
 0x1e4   : > { %v1247_v50 = vmax.f32 %v2607_v46, 0.0  ;;  %v1028_v51 = vpop.f32.mrb[47].mxu1 }
 0x1e5   : > { %v1245_v53 = vmax.f32 %v1028_v51, 0.0 }
 0x1e6   : > { %v1303_v54 = vpack.c.bf16 %v1247_v50, %v1246_v48 }
 0x1e7   : > { %v1302_v55 = vpack.c.bf16 %v1245_v53, %v1244_v52 }
 0x1e9   : > { %v2610_v56 = vpop.f32.mrb[48].mxu1  ;;  %2676 = vmatprep.mubr.msk.bf16.mxu0 %vm846_vm1, %v1302_v55 }
 0x1ea   : > { %v1041_v57 = vpop.f32.mrb[49].mxu1  ;;  %2677 = vmatmul.mubr.msk.bf16.gmra.mrb[44].mxu0 %vm846_vm1, %v1303_v54  ;;  %v1250_v59 = vmax.f32 %v2610_v56, 0.0 }
 0x1eb   : > { %v2611_v58 = vpop.f32.mrb[50].mxu1  ;;  %v1248_v62 = vmax.f32 %v1041_v57, 0.0 }
 0x1ec   : > { %v1251_v60 = vmax.f32 %v2611_v58, 0.0  ;;  %v1044_v61 = vpop.f32.mrb[51].mxu1 }
 0x1ed   : > { %v1249_v63 = vmax.f32 %v1044_v61, 0.0 }
 0x1ee   : > { %v1305_v0 = vpack.c.bf16 %v1251_v60, %v1250_v59 }
 0x1ef   : > { %v1304_v1 = vpack.c.bf16 %v1249_v63, %v1248_v62 }
 0x1f1   : > { %v2614_v2 = vpop.f32.mrb[52].mxu1  ;;  %2680 = vmatprep.mubr.msk.bf16.mxu0 %vm846_vm1, %v1304_v1 }
 0x1f2   : > { %v1057_v4 = vpop.f32.mrb[53].mxu1  ;;  %2681 = vmatmul.mubr.msk.bf16.gmra.mrb[48].mxu0 %vm846_vm1, %v1305_v0  ;;  %v1254_v8 = vmax.f32 %v2614_v2, 0.0 }
 0x1f3   : > { %v2615_v6 = vpop.f32.mrb[54].mxu1  ;;  %v1252_v12 = vmax.f32 %v1057_v4, 0.0 }
 0x1f4   : > { %v1255_v10 = vmax.f32 %v2615_v6, 0.0  ;;  %v1060_v11 = vpop.f32.mrb[55].mxu1 }
 0x1f5   : > { %v1253_v13 = vmax.f32 %v1060_v11, 0.0 }
 0x1f6   : > { %v1307_v14 = vpack.c.bf16 %v1255_v10, %v1254_v8 }
 0x1f7   : > { %v1306_v15 = vpack.c.bf16 %v1253_v13, %v1252_v12 }
 0x1f9   : > { %v2618_v16 = vpop.f32.mrb[56].mxu1  ;;  %2684 = vmatprep.mubr.msk.bf16.mxu0 %vm846_vm1, %v1306_v15 }
 0x1fa   : > { %v1073_v17 = vpop.f32.mrb[57].mxu1  ;;  %2685 = vmatmul.mubr.msk.bf16.gmra.mrb[52].mxu0 %vm846_vm1, %v1307_v14  ;;  %v1258_v19 = vmax.f32 %v2618_v16, 0.0 }
 0x1fb   : > { %v2619_v18 = vpop.f32.mrb[58].mxu1  ;;  %v1256_v27 = vmax.f32 %v1073_v17, 0.0 }
 0x1fc   : > { %v1259_v7 = vmax.f32 %v2619_v18, 0.0  ;;  %v1076_v9 = vpop.f32.mrb[59].mxu1 }
 0x1fd   : > { %v1257_v29 = vmax.f32 %v1076_v9, 0.0 }
 0x1fe   : > { %v1309_v47 = vpack.c.bf16 %v1259_v7, %v1258_v19 }
 0x1ff   : > { %v1308_v49 = vpack.c.bf16 %v1257_v29, %v1256_v27 }
 0x201   : > { %v2622_v3 = vpop.f32.mrb[60].mxu1  ;;  %2688 = vmatprep.mubr.msk.bf16.mxu0 %vm846_vm1, %v1308_v49 }
 0x202   : > { %v1089_v5 = vpop.f32.mrb[61].mxu1  ;;  %2689 = vmatmul.mubr.msk.bf16.gmra.mrb[56].mxu0 %vm846_vm1, %v1309_v47  ;;  %v1262_v21 = vmax.f32 %v2622_v3, 0.0 }
 0x203   : > { %v2623_v20 = vpop.f32.mrb[62].mxu1  ;;  %v1260_v24 = vmax.f32 %v1089_v5, 0.0 }
 0x204   : > { %v1263_v22 = vmax.f32 %v2623_v20, 0.0  ;;  %v1092_v23 = vpop.f32.mrb[63].mxu1 }
 0x205   : > { %v1261_v25 = vmax.f32 %v1092_v23, 0.0 }
 0x206   : > { %v1311_v26 = vpack.c.bf16 %v1263_v22, %v1262_v21 }
 0x207   : > { %v1310_v28 = vpack.c.bf16 %v1261_v25, %v1260_v24 }
 0x209   : > { %v2626_v30 = vpop.f32.mrb[64].mxu1  ;;  %2692 = vmatprep.mubr.msk.bf16.mxu0 %vm846_vm1, %v1310_v28 }
 0x20a   : > { %v1105_v31 = vpop.f32.mrb[65].mxu1  ;;  %2693 = vmatmul.mubr.msk.bf16.gmra.mrb[60].mxu0 %vm846_vm1, %v1311_v26  ;;  %v1266_v33 = vmax.f32 %v2626_v30, 0.0 }
 0x20b   : > { %v2627_v32 = vpop.f32.mrb[66].mxu1  ;;  %v1264_v36 = vmax.f32 %v1105_v31, 0.0 }
 0x20c   : > { %v1267_v34 = vmax.f32 %v2627_v32, 0.0  ;;  %v1108_v35 = vpop.f32.mrb[67].mxu1 }
 0x20d   : > { %v1265_v37 = vmax.f32 %v1108_v35, 0.0 }
 0x20e   : > { %v1313_v38 = vpack.c.bf16 %v1267_v34, %v1266_v33 }
 0x20f   : > { %v1312_v39 = vpack.c.bf16 %v1265_v37, %v1264_v36 }
 0x211   : > { %v2630_v40 = vpop.f32.mrb[68].mxu1  ;;  %2696 = vmatprep.mubr.msk.bf16.mxu0 %vm846_vm1, %v1312_v39 }
 0x212   : > { %v1121_v41 = vpop.f32.mrb[69].mxu1  ;;  %2697 = vmatmul.mubr.msk.bf16.gmra.mrb[64].mxu0 %vm846_vm1, %v1313_v38  ;;  %v1270_v43 = vmax.f32 %v2630_v40, 0.0 }
 0x213   : > { %v2631_v42 = vpop.f32.mrb[70].mxu1  ;;  %v1268_v46 = vmax.f32 %v1121_v41, 0.0 }
 0x214   : > { %v1271_v44 = vmax.f32 %v2631_v42, 0.0  ;;  %v1124_v45 = vpop.f32.mrb[71].mxu1 }
 0x215   : > { %v1269_v48 = vmax.f32 %v1124_v45, 0.0 }
 0x216   : > { %v1315_v50 = vpack.c.bf16 %v1271_v44, %v1270_v43 }
 0x217   : > { %v1314_v51 = vpack.c.bf16 %v1269_v48, %v1268_v46 }
 0x219   : > { %v2634_v52 = vpop.f32.mrb[72].mxu1  ;;  %2700 = vmatprep.mubr.msk.bf16.mxu0 %vm846_vm1, %v1314_v51 }
 0x21a   : > { %v1137_v53 = vpop.f32.mrb[73].mxu1  ;;  %2701 = vmatmul.mubr.msk.bf16.gmra.mrb[68].mxu0 %vm846_vm1, %v1315_v50  ;;  %v1274_v55 = vmax.f32 %v2634_v52, 0.0 }
 0x21b   : > { %v2635_v54 = vpop.f32.mrb[74].mxu1  ;;  %v1272_v58 = vmax.f32 %v1137_v53, 0.0 }
 0x21c   : > { %v1275_v56 = vmax.f32 %v2635_v54, 0.0  ;;  %v1140_v57 = vpop.f32.mrb[75].mxu1 }
 0x21d   : > { %v1273_v59 = vmax.f32 %v1140_v57, 0.0 }
 0x21e   : > { %v1317_v60 = vpack.c.bf16 %v1275_v56, %v1274_v55 }
 0x21f   : > { %v1316_v61 = vpack.c.bf16 %v1273_v59, %v1272_v58 }
 0x221   : > { %v2638_v62 = vpop.f32.mrb[76].mxu1  ;;  %2704 = vmatprep.mubr.msk.bf16.mxu0 %vm846_vm1, %v1316_v61 }
 0x222   : > { %v1153_v63 = vpop.f32.mrb[77].mxu1  ;;  %2705 = vmatmul.mubr.msk.bf16.gmra.mrb[72].mxu0 %vm846_vm1, %v1317_v60  ;;  %v1278_v1 = vmax.f32 %v2638_v62, 0.0 }
 0x223   : > { %v2639_v0 = vpop.f32.mrb[78].mxu1  ;;  %v1276_v6 = vmax.f32 %v1153_v63, 0.0 }
 0x224   : > { %v1279_v2 = vmax.f32 %v2639_v0, 0.0  ;;  %v1156_v4 = vpop.f32.mrb[79].mxu1 }
 0x225   : > { %v1277_v8 = vmax.f32 %v1156_v4, 0.0 }
 0x226   : > { %v1319_v10 = vpack.c.bf16 %v1279_v2, %v1278_v1 }
 0x227   : > { %v1318_v11 = vpack.c.bf16 %v1277_v8, %v1276_v6 }
 0x229   : > { %v2642_v12 = vpop.f32.mrb[80].mxu1  ;;  %2708 = vmatprep.mubr.msk.bf16.mxu0 %vm846_vm1, %v1318_v11 }
 0x22a   : > { %v1169_v13 = vpop.f32.mrb[81].mxu1  ;;  %2709 = vmatmul.mubr.msk.bf16.gmra.mrb[76].mxu0 %vm846_vm1, %v1319_v10  ;;  %v1282_v15 = vmax.f32 %v2642_v12, 0.0 }
 0x22b   : > { %v2643_v14 = vpop.f32.mrb[82].mxu1  ;;  %v1280_v18 = vmax.f32 %v1169_v13, 0.0 }
 0x22c   : > { %v1283_v16 = vmax.f32 %v2643_v14, 0.0  ;;  %v1172_v17 = vpop.f32.mrb[83].mxu1 }
 0x22d   : > { %v1281_v19 = vmax.f32 %v1172_v17, 0.0 }
 0x22e   : > { %v1321_v7 = vpack.c.bf16 %v1283_v16, %v1282_v15 }
 0x22f   : > { %v1320_v9 = vpack.c.bf16 %v1281_v19, %v1280_v18 }
 0x231   : > { %v2646_v27 = vpop.f32.mrb[84].mxu1  ;;  %2712 = vmatprep.mubr.msk.bf16.mxu0 %vm846_vm1, %v1320_v9 }
 0x232   : > { %v1185_v29 = vpop.f32.mrb[85].mxu1  ;;  %2713 = vmatmul.mubr.msk.bf16.gmra.mrb[80].mxu0 %vm846_vm1, %v1321_v7  ;;  %v1286_v49 = vmax.f32 %v2646_v27, 0.0 }
 0x233   : > { %v2647_v47 = vpop.f32.mrb[86].mxu1  ;;  %v1284_v20 = vmax.f32 %v1185_v29, 0.0 }
 0x234   : > { %v1287_v3 = vmax.f32 %v2647_v47, 0.0  ;;  %v1188_v5 = vpop.f32.mrb[87].mxu1 }
 0x235   : > { %v1285_v21 = vmax.f32 %v1188_v5, 0.0 }
 0x236   : > { %v1323_v22 = vpack.c.bf16 %v1287_v3, %v1286_v49 }
 0x237   : > { %v1322_v23 = vpack.c.bf16 %v1285_v21, %v1284_v20 }
 0x239   : > { %v2650_v24 = vpop.f32.mrb[88].mxu1  ;;  %2716 = vmatprep.mubr.msk.bf16.mxu0 %vm846_vm1, %v1322_v23 }
 0x23a   : > { %v1201_v25 = vpop.f32.mrb[89].mxu1  ;;  %2717 = vmatmul.mubr.msk.bf16.gmra.mrb[84].mxu0 %vm846_vm1, %v1323_v22  ;;  %v1290_v28 = vmax.f32 %v2650_v24, 0.0 }
 0x23b   : > { %v2651_v26 = vpop.f32.mrb[90].mxu1  ;;  %v1288_v32 = vmax.f32 %v1201_v25, 0.0 }
 0x23c   : > { %v1291_v30 = vmax.f32 %v2651_v26, 0.0  ;;  %v1204_v31 = vpop.f32.mrb[91].mxu1 }
 0x23d   : > { %v1289_v33 = vmax.f32 %v1204_v31, 0.0 }
 0x23e   : > { %v1325_v34 = vpack.c.bf16 %v1291_v30, %v1290_v28 }
 0x23f   : > { %v1324_v35 = vpack.c.bf16 %v1289_v33, %v1288_v32 }
 0x241   : > { %v2654_v36 = vpop.f32.mrb[92].mxu1  ;;  %2720 = vmatprep.mubr.msk.bf16.mxu0 %vm846_vm1, %v1324_v35 }
 0x242   : > { %v1217_v37 = vpop.f32.mrb[93].mxu1  ;;  %2721 = vmatmul.mubr.msk.bf16.gmra.mrb[88].mxu0 %vm846_vm1, %v1325_v34  ;;  %v1294_v39 = vmax.f32 %v2654_v36, 0.0 }
 0x243   : > { %v2655_v38 = vpop.f32.mrb[94].mxu1  ;;  %v1292_v42 = vmax.f32 %v1217_v37, 0.0 }
 0x244   : > { %v1295_v40 = vmax.f32 %v2655_v38, 0.0  ;;  %v1220_v41 = vpop.f32.mrb[95].mxu1 }
 0x245   : > { %v1293_v43 = vmax.f32 %v1220_v41, 0.0 }
 0x246   : > { %v1327_v44 = vpack.c.bf16 %v1295_v40, %v1294_v39 }
 0x247   : > { %v1326_v45 = vpack.c.bf16 %v1293_v43, %v1292_v42 }
 0x249   : > { %2724 = vmatprep.mubr.msk.bf16.mxu0 %vm846_vm1, %v1326_v45 }
 0x24a   : > { %2725 = vmatmul.mubr.msk.bf16.gmra.mrb[92].mxu0 %vm846_vm1, %v1327_v44 }
 0x2a5   : > { %v2666_v46 = vpop.f32.mrb[32].mxu0 }
 0x2a6   : > { %1748 = vst.msk [vmem:[%s3200_s7 + $0x10] sm:$0xff] %vm1745_vm2, %v2666_v46  ;;  %v1490_v48 = vpop.f32.mrb[33].mxu0 }
 0x2a7   : > { %1746 = vst.msk [vmem:[%s3200_s7] sm:$0xff] %vm1745_vm2, %v1490_v48  ;;  %v2667_v50 = vpop.f32.mrb[34].mxu0 }
 0x2a8   : > { %1749 = vst.msk [vmem:[%s3200_s7 + $0x18] sm:$0xff] %vm1745_vm2, %v2667_v50  ;;  %v1493_v51 = vpop.f32.mrb[35].mxu0 }
 0x2a9   : > { %1747 = vst.msk [vmem:[%s3200_s7 + $0x8] sm:$0xff] %vm1745_vm2, %v1493_v51 }
 0x2ad   : > { %v2670_v52 = vpop.f32.mrb[36].mxu0 }
 0x2ae   : > { %1752 = vst.msk [vmem:[%s3200_s7 + $0x30] sm:$0xff] %vm1745_vm2, %v2670_v52  ;;  %v1506_v53 = vpop.f32.mrb[37].mxu0 }
 0x2af   : > { %1750 = vst.msk [vmem:[%s3200_s7 + $0x20] sm:$0xff] %vm1745_vm2, %v1506_v53  ;;  %v2671_v54 = vpop.f32.mrb[38].mxu0 }
 0x2b0   : > { %1753 = vst.msk [vmem:[%s3200_s7 + $0x38] sm:$0xff] %vm1745_vm2, %v2671_v54  ;;  %v1509_v55 = vpop.f32.mrb[39].mxu0 }
 0x2b1   : > { %1751 = vst.msk [vmem:[%s3200_s7 + $0x28] sm:$0xff] %vm1745_vm2, %v1509_v55 }
 0x2b5   : > { %v2674_v56 = vpop.f32.mrb[40].mxu0 }
 0x2b6   : > { %1756 = vst.msk [vmem:[%s3200_s7 + $0x50] sm:$0xff] %vm1745_vm2, %v2674_v56  ;;  %v1522_v57 = vpop.f32.mrb[41].mxu0 }
 0x2b7   : > { %1754 = vst.msk [vmem:[%s3200_s7 + $0x40] sm:$0xff] %vm1745_vm2, %v1522_v57  ;;  %v2675_v58 = vpop.f32.mrb[42].mxu0 }
 0x2b8   : > { %1757 = vst.msk [vmem:[%s3200_s7 + $0x58] sm:$0xff] %vm1745_vm2, %v2675_v58  ;;  %v1525_v59 = vpop.f32.mrb[43].mxu0 }
 0x2b9   : > { %1755 = vst.msk [vmem:[%s3200_s7 + $0x48] sm:$0xff] %vm1745_vm2, %v1525_v59 }
 0x2bd   : > { %v2678_v60 = vpop.f32.mrb[44].mxu0 }
 0x2be   : > { %1760 = vst.msk [vmem:[%s3200_s7 + $0x70] sm:$0xff] %vm1745_vm2, %v2678_v60  ;;  %v1538_v61 = vpop.f32.mrb[45].mxu0 }
 0x2bf   : > { %1758 = vst.msk [vmem:[%s3200_s7 + $0x60] sm:$0xff] %vm1745_vm2, %v1538_v61  ;;  %v2679_v62 = vpop.f32.mrb[46].mxu0 }
 0x2c0   : > { %1761 = vst.msk [vmem:[%s3200_s7 + $0x78] sm:$0xff] %vm1745_vm2, %v2679_v62  ;;  %v1541_v63 = vpop.f32.mrb[47].mxu0 }
 0x2c1   : > { %1759 = vst.msk [vmem:[%s3200_s7 + $0x68] sm:$0xff] %vm1745_vm2, %v1541_v63 }
 0x2c5   : > { %v2682_v0 = vpop.f32.mrb[48].mxu0 }
 0x2c6   : > { %1764 = vst.msk [vmem:[%s3200_s7 + $0x90] sm:$0xff] %vm1745_vm2, %v2682_v0  ;;  %v1554_v1 = vpop.f32.mrb[49].mxu0 }
 0x2c7   : > { %1762 = vst.msk [vmem:[%s3200_s7 + $0x80] sm:$0xff] %vm1745_vm2, %v1554_v1  ;;  %v2683_v2 = vpop.f32.mrb[50].mxu0 }
 0x2c8   : > { %1765 = vst.msk [vmem:[%s3200_s7 + $0x98] sm:$0xff] %vm1745_vm2, %v2683_v2  ;;  %v1557_v4 = vpop.f32.mrb[51].mxu0 }
 0x2c9   : > { %1763 = vst.msk [vmem:[%s3200_s7 + $0x88] sm:$0xff] %vm1745_vm2, %v1557_v4 }
 0x2cd   : > { %v2686_v6 = vpop.f32.mrb[52].mxu0 }
 0x2ce   : > { %1768 = vst.msk [vmem:[%s3200_s7 + $0xb0] sm:$0xff] %vm1745_vm2, %v2686_v6  ;;  %v1570_v8 = vpop.f32.mrb[53].mxu0 }
 0x2cf   : > { %1766 = vst.msk [vmem:[%s3200_s7 + $0xa0] sm:$0xff] %vm1745_vm2, %v1570_v8  ;;  %v2687_v10 = vpop.f32.mrb[54].mxu0 }
 0x2d0   : > { %1769 = vst.msk [vmem:[%s3200_s7 + $0xb8] sm:$0xff] %vm1745_vm2, %v2687_v10  ;;  %v1573_v11 = vpop.f32.mrb[55].mxu0 }
 0x2d1   : > { %1767 = vst.msk [vmem:[%s3200_s7 + $0xa8] sm:$0xff] %vm1745_vm2, %v1573_v11 }
 0x2d5   : > { %v2690_v12 = vpop.f32.mrb[56].mxu0 }
 0x2d6   : > { %1772 = vst.msk [vmem:[%s3200_s7 + $0xd0] sm:$0xff] %vm1745_vm2, %v2690_v12  ;;  %v1586_v13 = vpop.f32.mrb[57].mxu0 }
 0x2d7   : > { %1770 = vst.msk [vmem:[%s3200_s7 + $0xc0] sm:$0xff] %vm1745_vm2, %v1586_v13  ;;  %v2691_v14 = vpop.f32.mrb[58].mxu0 }
 0x2d8   : > { %1773 = vst.msk [vmem:[%s3200_s7 + $0xd8] sm:$0xff] %vm1745_vm2, %v2691_v14  ;;  %v1589_v15 = vpop.f32.mrb[59].mxu0 }
 0x2d9   : > { %1771 = vst.msk [vmem:[%s3200_s7 + $0xc8] sm:$0xff] %vm1745_vm2, %v1589_v15 }
 0x2dd   : > { %v2694_v16 = vpop.f32.mrb[60].mxu0 }
 0x2de   : > { %1776 = vst.msk [vmem:[%s3200_s7 + $0xf0] sm:$0xff] %vm1745_vm2, %v2694_v16  ;;  %v1602_v17 = vpop.f32.mrb[61].mxu0 }
 0x2df   : > { %1774 = vst.msk [vmem:[%s3200_s7 + $0xe0] sm:$0xff] %vm1745_vm2, %v1602_v17  ;;  %v2695_v18 = vpop.f32.mrb[62].mxu0 }
 0x2e0   : > { %1777 = vst.msk [vmem:[%s3200_s7 + $0xf8] sm:$0xff] %vm1745_vm2, %v2695_v18  ;;  %v1605_v19 = vpop.f32.mrb[63].mxu0 }
 0x2e1   : > { %1775 = vst.msk [vmem:[%s3200_s7 + $0xe8] sm:$0xff] %vm1745_vm2, %v1605_v19 }
 0x2e5   : > { %v2698_v7 = vpop.f32.mrb[64].mxu0 }
 0x2e6   : > { %1780 = vst.msk [vmem:[%s3200_s7 + $0x110] sm:$0xff] %vm1745_vm2, %v2698_v7  ;;  %v1618_v9 = vpop.f32.mrb[65].mxu0 }
 0x2e7   : > { %1778 = vst.msk [vmem:[%s3200_s7 + $0x100] sm:$0xff] %vm1745_vm2, %v1618_v9  ;;  %v2699_v27 = vpop.f32.mrb[66].mxu0 }
 0x2e8   : > { %1781 = vst.msk [vmem:[%s3200_s7 + $0x118] sm:$0xff] %vm1745_vm2, %v2699_v27  ;;  %v1621_v29 = vpop.f32.mrb[67].mxu0 }
 0x2e9   : > { %1779 = vst.msk [vmem:[%s3200_s7 + $0x108] sm:$0xff] %vm1745_vm2, %v1621_v29 }
 0x2ed   : > { %v2702_v47 = vpop.f32.mrb[68].mxu0 }
 0x2ee   : > { %1784 = vst.msk [vmem:[%s3200_s7 + $0x130] sm:$0xff] %vm1745_vm2, %v2702_v47  ;;  %v1634_v49 = vpop.f32.mrb[69].mxu0 }
 0x2ef   : > { %1782 = vst.msk [vmem:[%s3200_s7 + $0x120] sm:$0xff] %vm1745_vm2, %v1634_v49  ;;  %v2703_v3 = vpop.f32.mrb[70].mxu0 }
 0x2f0   : > { %1785 = vst.msk [vmem:[%s3200_s7 + $0x138] sm:$0xff] %vm1745_vm2, %v2703_v3  ;;  %v1637_v5 = vpop.f32.mrb[71].mxu0 }
 0x2f1   : > { %1783 = vst.msk [vmem:[%s3200_s7 + $0x128] sm:$0xff] %vm1745_vm2, %v1637_v5 }
 0x2f5   : > { %v2706_v20 = vpop.f32.mrb[72].mxu0 }
 0x2f6   : > { %1788 = vst.msk [vmem:[%s3200_s7 + $0x150] sm:$0xff] %vm1745_vm2, %v2706_v20  ;;  %v1650_v21 = vpop.f32.mrb[73].mxu0 }
 0x2f7   : > { %1786 = vst.msk [vmem:[%s3200_s7 + $0x140] sm:$0xff] %vm1745_vm2, %v1650_v21  ;;  %v2707_v22 = vpop.f32.mrb[74].mxu0 }
 0x2f8   : > { %1789 = vst.msk [vmem:[%s3200_s7 + $0x158] sm:$0xff] %vm1745_vm2, %v2707_v22  ;;  %v1653_v23 = vpop.f32.mrb[75].mxu0 }
 0x2f9   : > { %1787 = vst.msk [vmem:[%s3200_s7 + $0x148] sm:$0xff] %vm1745_vm2, %v1653_v23 }
 0x2fd   : > { %v2710_v24 = vpop.f32.mrb[76].mxu0 }
 0x2fe   : > { %1792 = vst.msk [vmem:[%s3200_s7 + $0x170] sm:$0xff] %vm1745_vm2, %v2710_v24  ;;  %v1666_v25 = vpop.f32.mrb[77].mxu0 }
 0x2ff   : > { %1790 = vst.msk [vmem:[%s3200_s7 + $0x160] sm:$0xff] %vm1745_vm2, %v1666_v25  ;;  %v2711_v26 = vpop.f32.mrb[78].mxu0 }
 0x300   : > { %1793 = vst.msk [vmem:[%s3200_s7 + $0x178] sm:$0xff] %vm1745_vm2, %v2711_v26  ;;  %v1669_v28 = vpop.f32.mrb[79].mxu0 }
 0x301   : > { %1791 = vst.msk [vmem:[%s3200_s7 + $0x168] sm:$0xff] %vm1745_vm2, %v1669_v28 }
 0x305   : > { %v2714_v30 = vpop.f32.mrb[80].mxu0 }
 0x306   : > { %1796 = vst.msk [vmem:[%s3200_s7 + $0x190] sm:$0xff] %vm1745_vm2, %v2714_v30  ;;  %v1682_v31 = vpop.f32.mrb[81].mxu0 }
 0x307   : > { %1794 = vst.msk [vmem:[%s3200_s7 + $0x180] sm:$0xff] %vm1745_vm2, %v1682_v31  ;;  %v2715_v32 = vpop.f32.mrb[82].mxu0 }
 0x308   : > { %1797 = vst.msk [vmem:[%s3200_s7 + $0x198] sm:$0xff] %vm1745_vm2, %v2715_v32  ;;  %v1685_v33 = vpop.f32.mrb[83].mxu0 }
 0x309   : > { %1795 = vst.msk [vmem:[%s3200_s7 + $0x188] sm:$0xff] %vm1745_vm2, %v1685_v33 }
 0x30d   : > { %v2718_v34 = vpop.f32.mrb[84].mxu0 }
 0x30e   : > { %1800 = vst.msk [vmem:[%s3200_s7 + $0x1b0] sm:$0xff] %vm1745_vm2, %v2718_v34  ;;  %v1698_v35 = vpop.f32.mrb[85].mxu0 }
 0x30f   : > { %1798 = vst.msk [vmem:[%s3200_s7 + $0x1a0] sm:$0xff] %vm1745_vm2, %v1698_v35  ;;  %v2719_v36 = vpop.f32.mrb[86].mxu0 }
 0x310   : > { %1801 = vst.msk [vmem:[%s3200_s7 + $0x1b8] sm:$0xff] %vm1745_vm2, %v2719_v36  ;;  %v1701_v37 = vpop.f32.mrb[87].mxu0 }
 0x311   : > { %1799 = vst.msk [vmem:[%s3200_s7 + $0x1a8] sm:$0xff] %vm1745_vm2, %v1701_v37 }
 0x315   : > { %v2722_v38 = vpop.f32.mrb[88].mxu0 }
 0x316   : > { %1804 = vst.msk [vmem:[%s3200_s7 + $0x1d0] sm:$0xff] %vm1745_vm2, %v2722_v38  ;;  %v1714_v39 = vpop.f32.mrb[89].mxu0 }
 0x317   : > { %1802 = vst.msk [vmem:[%s3200_s7 + $0x1c0] sm:$0xff] %vm1745_vm2, %v1714_v39  ;;  %v2723_v40 = vpop.f32.mrb[90].mxu0 }
 0x318   : > { %1805 = vst.msk [vmem:[%s3200_s7 + $0x1d8] sm:$0xff] %vm1745_vm2, %v2723_v40  ;;  %v1717_v41 = vpop.f32.mrb[91].mxu0 }
 0x319   : > { %1803 = vst.msk [vmem:[%s3200_s7 + $0x1c8] sm:$0xff] %vm1745_vm2, %v1717_v41 }
 0x31b   : > { %1816 = sbr.rel (!%p2968_p4) target bundleno = 874 (0x36a), region = 40 }
 0x31d   : > { %v2726_v42 = vpop.f32.mrb[92].mxu0 }
 0x31e   : > { %1808 = vst.msk [vmem:[%s3200_s7 + $0x1f0] sm:$0xff] %vm1745_vm2, %v2726_v42  ;;  %v1730_v43 = vpop.f32.mrb[93].mxu0 }
 0x31f   : > { %1806 = vst.msk [vmem:[%s3200_s7 + $0x1e0] sm:$0xff] %vm1745_vm2, %v1730_v43  ;;  %v2727_v44 = vpop.f32.mrb[94].mxu0 }
 0x320   : > { %1809 = vst.msk [vmem:[%s3200_s7 + $0x1f8] sm:$0xff] %vm1745_vm2, %v2727_v44  ;;  %v1733_v45 = vpop.f32.mrb[95].mxu0 }
 0x321   : > { %1807 = vst.msk [vmem:[%s3200_s7 + $0x1e8] sm:$0xff] %vm1745_vm2, %v1733_v45 }
 0x322   : > { %s3551_s15 = smov (!%p1819_p8, %s1818_s15), 64 }
 0x323   : > { %s2392_s12 = sshll.u32 %s3551_s15, 7 }
 0x324   : > { %p2395_p9 = scmp.eq.s32.totalorder %s2392_s12, 0 }
 0x325   : > { %s3343_s13 = sshrl.u32 (!%p2395_p9), %s3551_s15, 6 }
 0x326   : > { %1827 = sbr.rel (%p2395_p9) target bundleno = 874 (0x36a), region = 44  ;;  %p2396_p10 = scmp.le.s32.totalorder (!%p2395_p9), %s3343_s13, 0 }
 0x32d   : > { %2233 = sbr.rel (%p2396_p10) target bundleno = 853 (0x355), region = 120  ;;  %s3542_s18 = smov (!%p2396_p10), %s3337_s11 }
 0x32e   : > { %s3543_s23 = smov (!%p2396_p10), %s3200_s7  ;;  %s3352_s26 = smov (!%p2396_p10), 0  }
 0x32f   : > { %s3354_s14 = smov (!%p2396_p10), 0  }
 0x334 LB: >> { %v2015_v46 = vld [vmem:[%s2892_s23] sm:$0xff]  ;;  %v2017_v48 = vld [vmem:[%s2892_s23 + $0x8] sm:$0xff]  ;;  %v2019_v50 = vld [vmem:[%s2892_s23 + $0x10] sm:$0xff]  ;;  %s2143_s17 = sadd.s32 1, %s2896_s26  ;;  %s2009_s14 = sadd.s32 1, %s2900_s14   ;;  %s2900_s14 = sphi %s3354_s14, %s2009_s14   ;;  %s2896_s26 = sphi %s3352_s26, %s3546_s26   ;;  %s2892_s23 = sphi %s3543_s23, %s3545_s23   ;;  %s2888_s18 = sphi %s3542_s18, %s3544_s18  }
 0x335   : >> { %2016 = vst [vmem:[%s2888_s18] sm:$0xff] %v2015_v46  ;;  %2018 = vst [vmem:[%s2888_s18 + $0x8] sm:$0xff] %v2017_v48  ;;  %v2021_v51 = vld [vmem:[%s2892_s23 + $0x18] sm:$0xff]  ;;  %v2023_v52 = vld [vmem:[%s2892_s23 + $0x20] sm:$0xff]  ;;  %p2144_p11 = scmp.ge.s32.totalorder %s2143_s17, %s3343_s13  ;;  %p2008_p12 = scmp.ge.s32.totalorder %s2009_s14, %s3343_s13 }
 0x336   : >> { %2020 = vst [vmem:[%s2888_s18 + $0x10] sm:$0xff] %v2019_v50  ;;  %v2025_v53 = vld [vmem:[%s2892_s23 + $0x28] sm:$0xff]  ;;  %2022 = vst [vmem:[%s2888_s18 + $0x18] sm:$0xff] %v2021_v51  ;;  %v2027_v54 = vld [vmem:[%s2892_s23 + $0x30] sm:$0xff] }
 0x337   : >> { %2024 = vst [vmem:[%s2888_s18 + $0x20] sm:$0xff] %v2023_v52  ;;  %2026 = vst [vmem:[%s2888_s18 + $0x28] sm:$0xff] %v2025_v53  ;;  %v2029_v55 = vld [vmem:[%s2892_s23 + $0x38] sm:$0xff]  ;;  %v2031_v56 = vld [vmem:[%s2892_s23 + $0x40] sm:$0xff]  ;;  %s3553_s17 = smov (%p2144_p11, %s2143_s17), 0 }
 0x338   : >> { %2028 = vst [vmem:[%s2888_s18 + $0x30] sm:$0xff] %v2027_v54  ;;  %2030 = vst [vmem:[%s2888_s18 + $0x38] sm:$0xff] %v2029_v55  ;;  %v2033_v57 = vld [vmem:[%s2892_s23 + $0x48] sm:$0xff]  ;;  %v2035_v58 = vld [vmem:[%s2892_s23 + $0x50] sm:$0xff]  ;;  %s2397_s20 = sshll.u32 %s3553_s17, 9  ;;  %s3546_s26 = smov %s3553_s17 }
 0x339   : >> { %2032 = vst [vmem:[%s2888_s18 + $0x40] sm:$0xff] %v2031_v56  ;;  %v2037_v59 = vld [vmem:[%s2892_s23 + $0x58] sm:$0xff]  ;;  %2034 = vst [vmem:[%s2888_s18 + $0x48] sm:$0xff] %v2033_v57  ;;  %v2039_v60 = vld [vmem:[%s2892_s23 + $0x60] sm:$0xff]  ;;  %s3410_s21 = scalar_lea.vmem %s3200_s7, %s2397_s20 [#allocation2]   ;;  %s3413_s24 = scalar_lea.vmem %s3337_s11, %s2397_s20  }
 0x33a   : >> { %2036 = vst [vmem:[%s2888_s18 + $0x50] sm:$0xff] %v2035_v58  ;;  %2038 = vst [vmem:[%s2888_s18 + $0x58] sm:$0xff] %v2037_v59  ;;  %v2041_v61 = vld [vmem:[%s2892_s23 + $0x68] sm:$0xff]  ;;  %v2043_v62 = vld [vmem:[%s2892_s23 + $0x70] sm:$0xff] }
 0x33b   : >> { %2040 = vst [vmem:[%s2888_s18 + $0x60] sm:$0xff] %v2039_v60  ;;  %2042 = vst [vmem:[%s2888_s18 + $0x68] sm:$0xff] %v2041_v61  ;;  %v2045_v63 = vld [vmem:[%s2892_s23 + $0x78] sm:$0xff]  ;;  %v2047_v0 = vld [vmem:[%s2892_s23 + $0x80] sm:$0xff] }
 0x33c   : >> { %2044 = vst [vmem:[%s2888_s18 + $0x70] sm:$0xff] %v2043_v62  ;;  %v2049_v1 = vld [vmem:[%s2892_s23 + $0x88] sm:$0xff]  ;;  %2046 = vst [vmem:[%s2888_s18 + $0x78] sm:$0xff] %v2045_v63  ;;  %v2051_v2 = vld [vmem:[%s2892_s23 + $0x90] sm:$0xff] }
 0x33d   : >> { %2048 = vst [vmem:[%s2888_s18 + $0x80] sm:$0xff] %v2047_v0  ;;  %2050 = vst [vmem:[%s2888_s18 + $0x88] sm:$0xff] %v2049_v1  ;;  %v2053_v4 = vld [vmem:[%s2892_s23 + $0x98] sm:$0xff]  ;;  %v2055_v6 = vld [vmem:[%s2892_s23 + $0xa0] sm:$0xff] }
 0x33e   : >> { %2052 = vst [vmem:[%s2888_s18 + $0x90] sm:$0xff] %v2051_v2  ;;  %2054 = vst [vmem:[%s2888_s18 + $0x98] sm:$0xff] %v2053_v4  ;;  %v2057_v8 = vld [vmem:[%s2892_s23 + $0xa8] sm:$0xff]  ;;  %v2059_v10 = vld [vmem:[%s2892_s23 + $0xb0] sm:$0xff] }
 0x33f   : >> { %2056 = vst [vmem:[%s2888_s18 + $0xa0] sm:$0xff] %v2055_v6  ;;  %v2061_v11 = vld [vmem:[%s2892_s23 + $0xb8] sm:$0xff]  ;;  %2058 = vst [vmem:[%s2888_s18 + $0xa8] sm:$0xff] %v2057_v8  ;;  %v2063_v12 = vld [vmem:[%s2892_s23 + $0xc0] sm:$0xff] }
 0x340   : >> { %2060 = vst [vmem:[%s2888_s18 + $0xb0] sm:$0xff] %v2059_v10  ;;  %2062 = vst [vmem:[%s2888_s18 + $0xb8] sm:$0xff] %v2061_v11  ;;  %v2065_v13 = vld [vmem:[%s2892_s23 + $0xc8] sm:$0xff]  ;;  %v2067_v14 = vld [vmem:[%s2892_s23 + $0xd0] sm:$0xff] }
 0x341   : >> { %2064 = vst [vmem:[%s2888_s18 + $0xc0] sm:$0xff] %v2063_v12  ;;  %2066 = vst [vmem:[%s2888_s18 + $0xc8] sm:$0xff] %v2065_v13  ;;  %v2069_v15 = vld [vmem:[%s2892_s23 + $0xd8] sm:$0xff]  ;;  %v2071_v16 = vld [vmem:[%s2892_s23 + $0xe0] sm:$0xff] }
 0x342   : >> { %2068 = vst [vmem:[%s2888_s18 + $0xd0] sm:$0xff] %v2067_v14  ;;  %v2073_v17 = vld [vmem:[%s2892_s23 + $0xe8] sm:$0xff]  ;;  %2070 = vst [vmem:[%s2888_s18 + $0xd8] sm:$0xff] %v2069_v15  ;;  %v2075_v18 = vld [vmem:[%s2892_s23 + $0xf0] sm:$0xff] }
 0x343   : >> { %2072 = vst [vmem:[%s2888_s18 + $0xe0] sm:$0xff] %v2071_v16  ;;  %2074 = vst [vmem:[%s2888_s18 + $0xe8] sm:$0xff] %v2073_v17  ;;  %v2077_v19 = vld [vmem:[%s2892_s23 + $0xf8] sm:$0xff]  ;;  %v2079_v7 = vld [vmem:[%s2892_s23 + $0x100] sm:$0xff] }
 0x344   : >> { %2076 = vst [vmem:[%s2888_s18 + $0xf0] sm:$0xff] %v2075_v18  ;;  %2078 = vst [vmem:[%s2888_s18 + $0xf8] sm:$0xff] %v2077_v19  ;;  %v2081_v9 = vld [vmem:[%s2892_s23 + $0x108] sm:$0xff]  ;;  %v2083_v27 = vld [vmem:[%s2892_s23 + $0x110] sm:$0xff] }
 0x345   : >> { %2080 = vst [vmem:[%s2888_s18 + $0x100] sm:$0xff] %v2079_v7  ;;  %v2085_v29 = vld [vmem:[%s2892_s23 + $0x118] sm:$0xff]  ;;  %2082 = vst [vmem:[%s2888_s18 + $0x108] sm:$0xff] %v2081_v9  ;;  %v2087_v47 = vld [vmem:[%s2892_s23 + $0x120] sm:$0xff] }
 0x346   : >> { %2084 = vst [vmem:[%s2888_s18 + $0x110] sm:$0xff] %v2083_v27  ;;  %2086 = vst [vmem:[%s2888_s18 + $0x118] sm:$0xff] %v2085_v29  ;;  %v2089_v49 = vld [vmem:[%s2892_s23 + $0x128] sm:$0xff]  ;;  %v2091_v3 = vld [vmem:[%s2892_s23 + $0x130] sm:$0xff] }
 0x347   : >> { %2088 = vst [vmem:[%s2888_s18 + $0x120] sm:$0xff] %v2087_v47  ;;  %2090 = vst [vmem:[%s2888_s18 + $0x128] sm:$0xff] %v2089_v49  ;;  %v2093_v5 = vld [vmem:[%s2892_s23 + $0x138] sm:$0xff]  ;;  %v2095_v20 = vld [vmem:[%s2892_s23 + $0x140] sm:$0xff] }
 0x348   : >> { %2092 = vst [vmem:[%s2888_s18 + $0x130] sm:$0xff] %v2091_v3  ;;  %v2097_v21 = vld [vmem:[%s2892_s23 + $0x148] sm:$0xff]  ;;  %2094 = vst [vmem:[%s2888_s18 + $0x138] sm:$0xff] %v2093_v5  ;;  %v2099_v22 = vld [vmem:[%s2892_s23 + $0x150] sm:$0xff] }
 0x349   : >> { %2096 = vst [vmem:[%s2888_s18 + $0x140] sm:$0xff] %v2095_v20  ;;  %2098 = vst [vmem:[%s2888_s18 + $0x148] sm:$0xff] %v2097_v21  ;;  %v2101_v23 = vld [vmem:[%s2892_s23 + $0x158] sm:$0xff]  ;;  %v2103_v24 = vld [vmem:[%s2892_s23 + $0x160] sm:$0xff] }
 0x34a   : >> { %2100 = vst [vmem:[%s2888_s18 + $0x150] sm:$0xff] %v2099_v22  ;;  %2102 = vst [vmem:[%s2888_s18 + $0x158] sm:$0xff] %v2101_v23  ;;  %v2105_v25 = vld [vmem:[%s2892_s23 + $0x168] sm:$0xff]  ;;  %v2107_v26 = vld [vmem:[%s2892_s23 + $0x170] sm:$0xff] }
 0x34b   : >> { %2104 = vst [vmem:[%s2888_s18 + $0x160] sm:$0xff] %v2103_v24  ;;  %v2109_v28 = vld [vmem:[%s2892_s23 + $0x178] sm:$0xff]  ;;  %2106 = vst [vmem:[%s2888_s18 + $0x168] sm:$0xff] %v2105_v25  ;;  %v2111_v30 = vld [vmem:[%s2892_s23 + $0x180] sm:$0xff] }
 0x34c   : >> { %2108 = vst [vmem:[%s2888_s18 + $0x170] sm:$0xff] %v2107_v26  ;;  %2110 = vst [vmem:[%s2888_s18 + $0x178] sm:$0xff] %v2109_v28  ;;  %v2113_v31 = vld [vmem:[%s2892_s23 + $0x188] sm:$0xff]  ;;  %v2115_v32 = vld [vmem:[%s2892_s23 + $0x190] sm:$0xff] }
 0x34d   : >> { %2112 = vst [vmem:[%s2888_s18 + $0x180] sm:$0xff] %v2111_v30  ;;  %2114 = vst [vmem:[%s2888_s18 + $0x188] sm:$0xff] %v2113_v31  ;;  %v2117_v33 = vld [vmem:[%s2892_s23 + $0x198] sm:$0xff]  ;;  %v2119_v34 = vld [vmem:[%s2892_s23 + $0x1a0] sm:$0xff] }
 0x34e   : >> { %2116 = vst [vmem:[%s2888_s18 + $0x190] sm:$0xff] %v2115_v32  ;;  %v2121_v35 = vld [vmem:[%s2892_s23 + $0x1a8] sm:$0xff]  ;;  %2118 = vst [vmem:[%s2888_s18 + $0x198] sm:$0xff] %v2117_v33  ;;  %v2123_v36 = vld [vmem:[%s2892_s23 + $0x1b0] sm:$0xff]  ;;  %2011 = sbr.rel (!%p2008_p12) target bundleno = 820 (0x334), region = 126 }
 0x34f   : >> { %2120 = vst [vmem:[%s2888_s18 + $0x1a0] sm:$0xff] %v2119_v34  ;;  %2122 = vst [vmem:[%s2888_s18 + $0x1a8] sm:$0xff] %v2121_v35  ;;  %v2125_v37 = vld [vmem:[%s2892_s23 + $0x1b8] sm:$0xff]  ;;  %v2127_v38 = vld [vmem:[%s2892_s23 + $0x1c0] sm:$0xff] }
 0x350   : >> { %2124 = vst [vmem:[%s2888_s18 + $0x1b0] sm:$0xff] %v2123_v36  ;;  %2126 = vst [vmem:[%s2888_s18 + $0x1b8] sm:$0xff] %v2125_v37  ;;  %v2129_v39 = vld [vmem:[%s2892_s23 + $0x1c8] sm:$0xff]  ;;  %v2131_v40 = vld [vmem:[%s2892_s23 + $0x1d0] sm:$0xff] }
 0x351   : >> { %2128 = vst [vmem:[%s2888_s18 + $0x1c0] sm:$0xff] %v2127_v38  ;;  %v2133_v41 = vld [vmem:[%s2892_s23 + $0x1d8] sm:$0xff]  ;;  %2130 = vst [vmem:[%s2888_s18 + $0x1c8] sm:$0xff] %v2129_v39  ;;  %v2135_v42 = vld [vmem:[%s2892_s23 + $0x1e0] sm:$0xff] }
 0x352   : >> { %2132 = vst [vmem:[%s2888_s18 + $0x1d0] sm:$0xff] %v2131_v40  ;;  %2134 = vst [vmem:[%s2888_s18 + $0x1d8] sm:$0xff] %v2133_v41  ;;  %v2137_v43 = vld [vmem:[%s2892_s23 + $0x1e8] sm:$0xff]  ;;  %v2139_v44 = vld [vmem:[%s2892_s23 + $0x1f0] sm:$0xff] }
 0x353   : >> { %2136 = vst [vmem:[%s2888_s18 + $0x1e0] sm:$0xff] %v2135_v42  ;;  %2138 = vst [vmem:[%s2888_s18 + $0x1e8] sm:$0xff] %v2137_v43  ;;  %v2141_v45 = vld [vmem:[%s2892_s23 + $0x1f8] sm:$0xff]  ;;  %s3545_s23 = smov %s3410_s21 }
 0x354   : >> { %2140 = vst [vmem:[%s2888_s18 + $0x1f0] sm:$0xff] %v2139_v44  ;;  %2142 = vst [vmem:[%s2888_s18 + $0x1f8] sm:$0xff] %v2141_v45  ;;  %s3544_s18 = smov %s3413_s24 }
 0x355 PF: > { %s3518_s25 = sand.u32 63, %s3551_s15   ;;  %s2408_s27 = sshll.u32 %s3343_s13, 9 }
 0x356   : > { %s2154_s28 = scalar_lea.vmem %s3200_s7, %s2408_s27 [#allocation2]   ;;  %s2156_s29 = scalar_lea.vmem %s3337_s11, %s2408_s27  }
 0x357   : > { %p2402_p13 = scmp.le.s32.totalorder %s3518_s25, 0 }
 0x358   : > { %s2902_s30 = smov (!%p2402_p13), %s2156_s29   ;;  %s2906_s5 = smov (!%p2402_p13), %s2154_s28  }
 0x359   : > { %2247 = sbr.rel (%p2402_p13) target bundleno = 874 (0x36a), region = 131  ;;  %s2910_s6 = smov (!%p2402_p13), 0  }
 0x35a   : > { %s2914_s8 = smov (!%p2402_p13), 0  }
 0x360 LB: >> { %v2166_v46 = vld [vmem:[%s2908_s5] sm:$0xff]  ;;  %s2168_s15 = sadd.s32 1, %s2912_s6  ;;  %s2160_s8 = sadd.s32 1, %s2916_s8   ;;  %s2916_s8 = sphi %s2914_s8, %s2160_s8   ;;  %s2912_s6 = sphi %s2910_s6, %s2911_s6   ;;  %s2908_s5 = sphi %s2906_s5, %s2173_s5   ;;  %s2904_s30 = sphi %s2902_s30, %s2174_s30  }
 0x361   : >> { %2167 = vst [vmem:[%s2904_s30] sm:$0xff] %v2166_v46  ;;  %p2169_p0 = scmp.ge.s32.totalorder %s2168_s15, %s3518_s25  ;;  %p2159_p1 = scmp.ge.s32.totalorder %s2160_s8, %s3518_s25 }
 0x363   : >> { %s3555_s15 = smov (%p2169_p0, %s2168_s15), 0  ;;  %2162 = sbr.rel (!%p2159_p1) target bundleno = 864 (0x360), region = 137 }
 0x364   : >> { %s2403_s7 = sshll.u32 %s3555_s15, 3  ;;  %s2911_s6 = smov %s3555_s15  }
 0x365   : >> { %s2173_s5 = scalar_lea.vmem %s2154_s28, %s2403_s7 [#allocation2]   ;;  %s2174_s30 = scalar_lea.vmem %s2156_s29, %s2403_s7  }
 0x36a PF: > { %p11_p2 = scmp.ge.s32.totalorder %s2958_s19, 4   ;;  %s3547_s15 = smov %s2880_s16 }
 0x36b   : > { %s3548_s16 = smov %s2966_s22  ;;  %s3549_s17 = smov %s2958_s19 }
 0x36c   :  { %13 = sbr.rel (!%p11_p2) target bundleno = 2 (0x2), region = 148 }

</bundles_post_ra>
